<compile_context>
chip_gen: v7x
topology: tpu7x:2x2x1
jax: 0.10.0
libtpu: 0.0.40
codegen_flags: <defaults>
</compile_context>

<pallas_src>
import jax
import jax.numpy as jnp
import numpy as np
from jax import lax
from jax.experimental import pallas as pl
from jax.experimental.pallas import tpu as pltpu

# ----------------------------- configuration ------------------------------
B = 2                     # batch of graphs
NODES_PER_GRAPH = 8
V = B * NODES_PER_GRAPH   # total nodes
NUM_ATOM_FEATS = 32       # number_atom_features (reduced from 134)
NUM_BOND_FEATS = 8        # number_bond_features (reduced from 6 -> padded 8)
NODE_OUT = 32             # node_out_feats
EDGE_HIDDEN = 64          # edge_hidden_feats
EDGE_OUT = 32             # edge_out_feats
NUM_MP_STEPS = 3          # num_step_message_passing
NUM_S2S_STEPS = 3         # num_step_set2set (reduced from 6)
NUM_S2S_LAYERS = 2        # num_layer_set2set (reduced from 3; hard-coded below)
FFN_HIDDEN = 64           # ffn_hidden_list = [FFN_HIDDEN]
FFN_EMBED = 64            # ffn_embeddings
N_TASKS = 4
N_CLASSES = 1

IN_DIM = NODE_OUT + EDGE_OUT          # set2set input dim (64)
FFN_INPUT = 2 * IN_DIM                # set2set output dim (128)
OUT_HEAD = N_TASKS * N_CLASSES        # 4
OUT_PACK = 128                        # lane-dense packed output width
assert FFN_EMBED + 2 * OUT_HEAD <= OUT_PACK


# ------------------------------ pallas utils ------------------------------
def _full_spec(shape):
    nd = len(shape)
    return pl.BlockSpec(shape, lambda i, _nd=nd: (0,) * _nd)


# --------------------------- fused forward kernel --------------------------
def mpnn_fused_kernel(
        node_ref, ef_ref, src_ref, dst_ref, mem_ref, memt_ref,
        pnw_ref, pnb_ref,
        enw1_ref, enb1_ref, enw2_ref, enb2_ref,
        conv_b_ref, pew_ref, peb_ref,
        gru_w_ref, gru_b_ref,
        l0_w_ref, l0_b_ref, l1_w_ref, l1_b_ref,
        ffn_w0_ref, ffn_b0_ref, ffn_w1_ref, ffn_b1_ref,
        ffn_wo_ref, ffn_bo_ref,
        out_ref,
        ew_scr, feat_scr):
    D = NODE_OUT
    f32 = jnp.float32

    # ---------------- edge network (computed once -> VMEM scratch) ----------
    ef = ef_ref[...]                                                   # (E, Fb)
    eh = jnp.maximum(
        jnp.dot(ef, enw1_ref[...], preferred_element_type=f32) + enb1_ref[...],
        0.0)                                                           # (E, H)
    # flat, lane-dense per-edge weight matrices; W_e[i, j] = ew[e, i*D + j]
    ew_scr[...] = (jnp.dot(eh, enw2_ref[...], preferred_element_type=f32)
                   + enb2_ref[...])                                    # (E, D*D)

    # ---------------- CustomMPNNGNN: project_node_feats ---------------------
    h0n = jnp.maximum(
        jnp.dot(node_ref[...], pnw_ref[...], preferred_element_type=f32)
        + pnb_ref[...], 0.0)                                           # (V, D)

    # ---------------- NUM_MP_STEPS x (NNConv + GRU) --------------------------
    def mp_body(_, carry):
        node, hidden = carry
        # gather source-node features per edge
        src_feats = jnp.dot(src_ref[...], node,
                            preferred_element_type=f32)                # (E, D)
        # per-edge message msgs[e, j] = sum_i src_feats[e, i] * W_e[i, j]
        # slice-accumulate over the flat edge-weight scratch (no 3D relayout)
        msgs = jnp.zeros(src_feats.shape, f32)
        for i in range(D):
            msgs = msgs + src_feats[:, i:i + 1] * ew_scr[:, i * D:(i + 1) * D]
        # scatter-add to destination nodes, Identity residual, bias, ReLU
        agg = jnp.dot(dst_ref[...], msgs, preferred_element_type=f32)  # (V, D)
        m = jnp.maximum(agg + node + conv_b_ref[...], 0.0)
        # packed block-diagonal GRU: [m | h] @ [[Wi,0],[0,Wh]] -> [gi | gh]
        g = (jnp.dot(jnp.concatenate([m, hidden], axis=1), gru_w_ref[...],
                     preferred_element_type=f32) + gru_b_ref[...])     # (V, 6D)
        gi = g[:, :3 * D]
        gh = g[:, 3 * D:]
        r = jax.nn.sigmoid(gi[:, 0:D] + gh[:, 0:D])
        z = jax.nn.sigmoid(gi[:, D:2 * D] + gh[:, D:2 * D])
        n = jnp.tanh(gi[:, 2 * D:3 * D] + r * gh[:, 2 * D:3 * D])
        hidden_new = (1.0 - z) * n + z * hidden
        return hidden_new, hidden_new

    node, _ = lax.fori_loop(0, NUM_MP_STEPS, mp_body, (h0n, h0n))

    # ---------------- readout: radius-0 fold --------------------------------
    # project_edge_feats: Linear(bond, edge_out) -> ReLU   (needed only here)
    edge_emb = jnp.maximum(
        jnp.dot(ef, pew_ref[...], preferred_element_type=f32) + peb_ref[...],
        0.0)                                                           # (E, De)
    src_node = jnp.dot(src_ref[...], node, preferred_element_type=f32) # (E, Dn)
    edge_msg = jnp.concatenate([src_node, edge_emb], axis=1)           # (E, IN_DIM)
    # src_msg_sum[v] = sum_{e: dst(e)=v} [node[src(e)] || edge_emb[e]]
    feat_scr[...] = jnp.dot(dst_ref[...], edge_msg,
                            preferred_element_type=f32)                # (V, IN_DIM)

    # ---------------- Set2Set readout ----------------------------------------
    member_mask = memt_ref[...] > 0.0                                  # (V, B), hoisted

    def lstm_step(x, h, c, w_ref, b_ref):
        # packed single-step LSTM cell: [x | h] @ vstack([Wi, Wh]) + (b_ih+b_hh)
        H = h.shape[1]
        g = (jnp.dot(jnp.concatenate([x, h], axis=1), w_ref[...],
                     preferred_element_type=f32) + b_ref[...])         # (B, 4H)
        i = jax.nn.sigmoid(g[:, 0:H])
        f = jax.nn.sigmoid(g[:, H:2 * H])
        gg = jnp.tanh(g[:, 2 * H:3 * H])
        o = jax.nn.sigmoid(g[:, 3 * H:4 * H])
        c_new = f * c + i * gg
        return o * jnp.tanh(c_new), c_new

    def s2s_body(_, carry):
        h0, c0, h1, c1, q_star = carry
        h0, c0 = lstm_step(q_star, h0, c0, l0_w_ref, l0_b_ref)
        h1, c1 = lstm_step(h0, h1, c1, l1_w_ref, l1_b_ref)
        q = h1                                                         # (B, IN_DIM)
        feat = feat_scr[...]                                           # (V, IN_DIM)
        # per-node attention energy against the owning graph's query
        e_all = lax.dot_general(feat, q, (((1,), (1,)), ((), ())),
                                preferred_element_type=f32)            # (V, B)
        masked = jnp.where(member_mask, e_all, -1e30)
        mmax = jnp.max(masked, axis=0, keepdims=True)                  # (1, B)
        ez = jnp.exp(masked - mmax)                                    # (V, B), non-members -> 0
        zsum = jnp.sum(ez, axis=0, keepdims=True)                      # (1, B)
        alpha_vb = ez * pl.reciprocal(zsum, approx=True)               # (V, B)
        alpha = jnp.sum(alpha_vb, axis=1, keepdims=True)               # (V, 1)
        readout = jnp.dot(mem_ref[...], alpha * feat,
                          preferred_element_type=f32)                  # (B, IN_DIM)
        q_star = jnp.concatenate([q, readout], axis=1)                 # (B, 2*IN_DIM)
        return h0, c0, h1, c1, q_star

    zeros_h = jnp.zeros((B, IN_DIM), f32)
    init = (zeros_h, zeros_h, zeros_h, zeros_h, jnp.zeros((B, 2 * IN_DIM), f32))
    _, _, _, _, q_star = lax.fori_loop(0, NUM_S2S_STEPS, s2s_body, init)

    # ---------------- FFN + classification head ------------------------------
    # TODO(synk): BatchNorm1d between FFN hidden layers (openpom option) omitted.
    x = jnp.maximum(
        jnp.dot(q_star, ffn_w0_ref[...], preferred_element_type=f32)
        + ffn_b0_ref[...], 0.0)
    x = jnp.maximum(
        jnp.dot(x, ffn_w1_ref[...], preferred_element_type=f32)
        + ffn_b1_ref[...], 0.0)                                        # (B, FFN_EMBED)
    out = (jnp.dot(x, ffn_wo_ref[...], preferred_element_type=f32)
           + ffn_bo_ref[...])                                          # (B, OUT_HEAD)
    proba = jax.nn.sigmoid(out)
    pad = jnp.zeros((B, OUT_PACK - FFN_EMBED - 2 * OUT_HEAD), f32)
    # single lane-dense output: [embeddings | logits | proba | 0-pad]
    out_ref[...] = jnp.concatenate([x, out, proba, pad], axis=1)


def mpnn_fused(params, node_feats, edge_feats,
               src_onehot, dst_onehot, member, member_t):
    E = edge_feats.shape[0]
    args = (node_feats, edge_feats, src_onehot, dst_onehot, member, member_t,
            params["proj_node_w"], params["proj_node_b"],
            params["edge_net_w1"], params["edge_net_b1"],
            params["edge_net_w2"], params["edge_net_b2"],
            params["nnconv_bias"], params["proj_edge_w"], params["proj_edge_b"],
            params["gru_w"], params["gru_b"],
            params["lstm0_w"], params["lstm0_b"],
            params["lstm1_w"], params["lstm1_b"],
            params["ffn_w0"], params["ffn_b0"],
            params["ffn_w1"], params["ffn_b1"],
            params["ffn_wo"], params["ffn_bo"])
    out_shape = jax.ShapeDtypeStruct((B, OUT_PACK), jnp.float32)
    return pl.pallas_call(
        mpnn_fused_kernel,
        out_shape=out_shape,
        grid=(1,),
        in_specs=[_full_spec(a.shape) for a in args],
        out_specs=_full_spec((B, OUT_PACK)),
        scratch_shapes=[pltpu.VMEM((E, NODE_OUT * NODE_OUT), jnp.float32),
                        pltpu.VMEM((V, IN_DIM), jnp.float32)],
        compiler_params=pltpu.CompilerParams(dimension_semantics=("arbitrary",)),
    )(*args)


# --------------------------- parameter construction -----------------------
def init_params(key):
    keys = iter(jax.random.split(key, 48))

    def nrm(shape, scale=0.1):
        return scale * jax.random.normal(next(keys), shape, dtype=jnp.float32)

    p = {}
    # CustomMPNNGNN.project_node_feats : Linear(atom_feats, node_out) + ReLU
    p["proj_node_w"] = nrm((NUM_ATOM_FEATS, NODE_OUT))
    p["proj_node_b"] = nrm((1, NODE_OUT))
    # NNConv edge network: Linear(bond, hidden) ReLU Linear(hidden, D*D)
    p["edge_net_w1"] = nrm((NUM_BOND_FEATS, EDGE_HIDDEN))
    p["edge_net_b1"] = nrm((1, EDGE_HIDDEN))
    p["edge_net_w2"] = nrm((EDGE_HIDDEN, NODE_OUT * NODE_OUT))
    p["edge_net_b2"] = nrm((1, NODE_OUT * NODE_OUT))
    p["nnconv_bias"] = nrm((1, NODE_OUT))
    # project_edge_feats : Linear(bond, edge_out) + ReLU
    p["proj_edge_w"] = nrm((NUM_BOND_FEATS, EDGE_OUT))
    p["proj_edge_b"] = nrm((1, EDGE_OUT))
    # GRU(node_out, node_out); gates [r|z|n]; packed BLOCK-DIAGONAL so that
    # [x | h] @ gru_w = [gi | gh] (gi/gh kept separate -> exact GRU semantics)
    gru_wi = nrm((NODE_OUT, 3 * NODE_OUT))
    gru_wh = nrm((NODE_OUT, 3 * NODE_OUT))
    gru_w = jnp.zeros((2 * NODE_OUT, 6 * NODE_OUT), jnp.float32)
    gru_w = gru_w.at[:NODE_OUT, :3 * NODE_OUT].set(gru_wi)
    gru_w = gru_w.at[NODE_OUT:, 3 * NODE_OUT:].set(gru_wh)
    p["gru_w"] = gru_w
    p["gru_b"] = jnp.concatenate(
        [nrm((1, 3 * NODE_OUT)), nrm((1, 3 * NODE_OUT))], axis=1)      # [b_i | b_h]
    # Set2Set LSTM(2*in_dim -> in_dim, 2 layers); gates [i|f|g|o];
    # packed row-stack [Wi; Wh] so [x | h] @ w is one matmul; bias = b_ih+b_hh
    p["lstm0_w"] = jnp.concatenate(
        [nrm((2 * IN_DIM, 4 * IN_DIM)), nrm((IN_DIM, 4 * IN_DIM))], axis=0)
    p["lstm0_b"] = nrm((1, 4 * IN_DIM))
    p["lstm1_w"] = jnp.concatenate(
        [nrm((IN_DIM, 4 * IN_DIM)), nrm((IN_DIM, 4 * IN_DIM))], axis=0)
    p["lstm1_b"] = nrm((1, 4 * IN_DIM))
    # FFN: Linear(2*in, 64) relu, Linear(64, 64) relu, Linear(64, n_tasks*n_classes)
    p["ffn_w0"] = nrm((FFN_INPUT, FFN_HIDDEN))
    p["ffn_b0"] = nrm((1, FFN_HIDDEN))
    p["ffn_w1"] = nrm((FFN_HIDDEN, FFN_EMBED))
    p["ffn_b1"] = nrm((1, FFN_EMBED))
    p["ffn_wo"] = nrm((FFN_EMBED, N_TASKS * N_CLASSES))
    p["ffn_bo"] = nrm((1, N_TASKS * N_CLASSES))
    return p


# ------------------------------- model forward ----------------------------
@jax.jit
def mpnn_pom_forward(params, node_feats, edge_feats,
                     src_onehot, dst_onehot, member, member_t):
    packed = mpnn_fused(params, node_feats, edge_feats,
                        src_onehot, dst_onehot, member, member_t)
    embeddings = packed[:, :FFN_EMBED]
    logits = packed[:, FFN_EMBED:FFN_EMBED + OUT_HEAD].reshape(
        -1, N_TASKS, N_CLASSES)
    proba = packed[:, FFN_EMBED + OUT_HEAD:FFN_EMBED + 2 * OUT_HEAD].reshape(
        -1, N_TASKS, N_CLASSES)
    if N_CLASSES == 1:
        proba = proba.squeeze(-1)
    return proba, logits, embeddings


# --------------------------------- driver ----------------------------------
if __name__ == "__main__":
    key = jax.random.PRNGKey(0)
    k_param, k_node, k_edge = jax.random.split(key, 3)

    params = init_params(k_param)

    # build a small batched graph: 2 graphs, 8 nodes each, bidirectional ring
    src_idx, dst_idx = [], []
    for g in range(B):
        base = g * NODES_PER_GRAPH
        for i in range(NODES_PER_GRAPH):
            j = (i + 1) % NODES_PER_GRAPH
            src_idx += [base + i, base + j]
            dst_idx += [base + j, base + i]
    src_idx = np.array(src_idx, dtype=np.int32)
    dst_idx = np.array(dst_idx, dtype=np.int32)
    E = src_idx.shape[0]

    src_onehot = jax.nn.one_hot(jnp.asarray(src_idx), V, dtype=jnp.float32)      # (E, V)
    dst_onehot = jax.nn.one_hot(jnp.asarray(dst_idx), V, dtype=jnp.float32).T    # (V, E)
    graph_ids = jnp.asarray(np.repeat(np.arange(B), NODES_PER_GRAPH))
    member_t = jax.nn.one_hot(graph_ids, B, dtype=jnp.float32)                   # (V, B)
    member = member_t.T                                                          # (B, V)

    node_feats = jax.random.normal(k_node, (V, NUM_ATOM_FEATS), dtype=jnp.float32)
    edge_feats = jax.random.normal(k_edge, (E, NUM_BOND_FEATS), dtype=jnp.float32)

    proba, logits, embeddings = mpnn_pom_forward(
        params, node_feats, edge_feats, src_onehot, dst_onehot, member, member_t)

    jax.block_until_ready((proba, logits, embeddings))
    assert proba.shape == (B, N_TASKS)
    assert logits.shape == (B, N_TASKS, N_CLASSES)
    assert embeddings.shape == (B, FFN_EMBED)
    assert bool(jnp.all(jnp.isfinite(proba)))
    print("KERNEL_OK")
</pallas_src>

<mosaic_0001>
module attributes {stable_mosaic.version = 11 : i64} {
  func.func @mpnn_fused_kernel(%arg0: i32, %arg1: memref<16x32xf32, #tpu.memory_space<vmem>>, %arg2: memref<32x8xf32, #tpu.memory_space<vmem>>, %arg3: memref<32x16xf32, #tpu.memory_space<vmem>>, %arg4: memref<16x32xf32, #tpu.memory_space<vmem>>, %arg5: memref<2x16xf32, #tpu.memory_space<vmem>>, %arg6: memref<16x2xf32, #tpu.memory_space<vmem>>, %arg7: memref<32x32xf32, #tpu.memory_space<vmem>>, %arg8: memref<1x32xf32, #tpu.memory_space<vmem>>, %arg9: memref<8x64xf32, #tpu.memory_space<vmem>>, %arg10: memref<1x64xf32, #tpu.memory_space<vmem>>, %arg11: memref<64x1024xf32, #tpu.memory_space<vmem>>, %arg12: memref<1x1024xf32, #tpu.memory_space<vmem>>, %arg13: memref<1x32xf32, #tpu.memory_space<vmem>>, %arg14: memref<8x32xf32, #tpu.memory_space<vmem>>, %arg15: memref<1x32xf32, #tpu.memory_space<vmem>>, %arg16: memref<64x192xf32, #tpu.memory_space<vmem>>, %arg17: memref<1x192xf32, #tpu.memory_space<vmem>>, %arg18: memref<192x256xf32, #tpu.memory_space<vmem>>, %arg19: memref<1x256xf32, #tpu.memory_space<vmem>>, %arg20: memref<128x256xf32, #tpu.memory_space<vmem>>, %arg21: memref<1x256xf32, #tpu.memory_space<vmem>>, %arg22: memref<128x64xf32, #tpu.memory_space<vmem>>, %arg23: memref<1x64xf32, #tpu.memory_space<vmem>>, %arg24: memref<64x64xf32, #tpu.memory_space<vmem>>, %arg25: memref<1x64xf32, #tpu.memory_space<vmem>>, %arg26: memref<64x4xf32, #tpu.memory_space<vmem>>, %arg27: memref<1x4xf32, #tpu.memory_space<vmem>>, %arg28: memref<2x128xf32, #tpu.memory_space<vmem>>, %arg29: memref<32x1024xf32, #tpu.memory_space<vmem>>, %arg30: memref<16x64xf32, #tpu.memory_space<vmem>>) attributes {dimension_semantics = [#tpu.dimension_semantics<arbitrary>], iteration_bounds = array<i64: 1>, scalar_prefetch = 0 : i64, scratch_operands = 2 : i64, tpu.core_type = #tpu.core_type<tc>, window_params = [{pipeline_mode = #tpu.pipeline_mode<synchronous>, transform_indices = @transform_0, window_bounds = array<i64: 16, 32>}, {pipeline_mode = #tpu.pipeline_mode<synchronous>, transform_indices = @transform_1, window_bounds = array<i64: 32, 8>}, {pipeline_mode = #tpu.pipeline_mode<synchronous>, transform_indices = @transform_2, window_bounds = array<i64: 32, 16>}, {pipeline_mode = #tpu.pipeline_mode<synchronous>, transform_indices = @transform_3, window_bounds = array<i64: 16, 32>}, {pipeline_mode = #tpu.pipeline_mode<synchronous>, transform_indices = @transform_4, window_bounds = array<i64: 2, 16>}, {pipeline_mode = #tpu.pipeline_mode<synchronous>, transform_indices = @transform_5, window_bounds = array<i64: 16, 2>}, {pipeline_mode = #tpu.pipeline_mode<synchronous>, transform_indices = @transform_6, window_bounds = array<i64: 32, 32>}, {pipeline_mode = #tpu.pipeline_mode<synchronous>, transform_indices = @transform_7, window_bounds = array<i64: 1, 32>}, {pipeline_mode = #tpu.pipeline_mode<synchronous>, transform_indices = @transform_8, window_bounds = array<i64: 8, 64>}, {pipeline_mode = #tpu.pipeline_mode<synchronous>, transform_indices = @transform_9, window_bounds = array<i64: 1, 64>}, {pipeline_mode = #tpu.pipeline_mode<synchronous>, transform_indices = @transform_10, window_bounds = array<i64: 64, 1024>}, {pipeline_mode = #tpu.pipeline_mode<synchronous>, transform_indices = @transform_11, window_bounds = array<i64: 1, 1024>}, {pipeline_mode = #tpu.pipeline_mode<synchronous>, transform_indices = @transform_12, window_bounds = array<i64: 1, 32>}, {pipeline_mode = #tpu.pipeline_mode<synchronous>, transform_indices = @transform_13, window_bounds = array<i64: 8, 32>}, {pipeline_mode = #tpu.pipeline_mode<synchronous>, transform_indices = @transform_14, window_bounds = array<i64: 1, 32>}, {pipeline_mode = #tpu.pipeline_mode<synchronous>, transform_indices = @transform_15, window_bounds = array<i64: 64, 192>}, {pipeline_mode = #tpu.pipeline_mode<synchronous>, transform_indices = @transform_16, window_bounds = array<i64: 1, 192>}, {pipeline_mode = #tpu.pipeline_mode<synchronous>, transform_indices = @transform_17, window_bounds = array<i64: 192, 256>}, {pipeline_mode = #tpu.pipeline_mode<synchronous>, transform_indices = @transform_18, window_bounds = array<i64: 1, 256>}, {pipeline_mode = #tpu.pipeline_mode<synchronous>, transform_indices = @transform_19, window_bounds = array<i64: 128, 256>}, {pipeline_mode = #tpu.pipeline_mode<synchronous>, transform_indices = @transform_20, window_bounds = array<i64: 1, 256>}, {pipeline_mode = #tpu.pipeline_mode<synchronous>, transform_indices = @transform_21, window_bounds = array<i64: 128, 64>}, {pipeline_mode = #tpu.pipeline_mode<synchronous>, transform_indices = @transform_22, window_bounds = array<i64: 1, 64>}, {pipeline_mode = #tpu.pipeline_mode<synchronous>, transform_indices = @transform_23, window_bounds = array<i64: 64, 64>}, {pipeline_mode = #tpu.pipeline_mode<synchronous>, transform_indices = @transform_24, window_bounds = array<i64: 1, 64>}, {pipeline_mode = #tpu.pipeline_mode<synchronous>, transform_indices = @transform_25, window_bounds = array<i64: 64, 4>}, {pipeline_mode = #tpu.pipeline_mode<synchronous>, transform_indices = @transform_26, window_bounds = array<i64: 1, 4>}, {pipeline_mode = #tpu.pipeline_mode<synchronous>, transform_indices = @transform_27, window_bounds = array<i64: 2, 128>}]} {
    %c0 = arith.constant 0 : index
    %c0_0 = arith.constant 0 : index
    %0 = vector.load %arg2[%c0, %c0_0] : memref<32x8xf32, #tpu.memory_space<vmem>>, vector<32x8xf32>
    %c0_1 = arith.constant 0 : index
    %c0_2 = arith.constant 0 : index
    %1 = vector.load %arg9[%c0_1, %c0_2] : memref<8x64xf32, #tpu.memory_space<vmem>>, vector<8x64xf32>
    %cst = arith.constant dense<0.000000e+00> : vector<32x64xf32>
    %2 = tpu.matmul %0, %1, %cst {dimension_numbers = #tpu.dot_dimension_numbers<[1], [0], [0], [1], [0, 0, 1, 1], [], []>} : vector<32x8xf32>, vector<8x64xf32>, vector<32x64xf32> -> vector<32x64xf32>
    %c0_3 = arith.constant 0 : index
    %c0_4 = arith.constant 0 : index
    %3 = vector.load %arg10[%c0_3, %c0_4] : memref<1x64xf32, #tpu.memory_space<vmem>>, vector<1x64xf32>
    %4 = vector.broadcast %3 : vector<1x64xf32> to vector<32x64xf32>
    %5 = arith.addf %2, %4 : vector<32x64xf32>
    %cst_5 = arith.constant 0.000000e+00 : f32
    %6 = vector.broadcast %cst_5 : f32 to vector<32x64xf32>
    %7 = arith.maximumf %5, %6 : vector<32x64xf32>
    %c0_6 = arith.constant 0 : index
    %c0_7 = arith.constant 0 : index
    %8 = vector.load %arg11[%c0_6, %c0_7] : memref<64x1024xf32, #tpu.memory_space<vmem>>, vector<64x1024xf32>
    %cst_8 = arith.constant dense<0.000000e+00> : vector<32x1024xf32>
    %9 = tpu.matmul %7, %8, %cst_8 {dimension_numbers = #tpu.dot_dimension_numbers<[1], [0], [0], [1], [0, 0, 1, 1], [], []>} : vector<32x64xf32>, vector<64x1024xf32>, vector<32x1024xf32> -> vector<32x1024xf32>
    %c0_9 = arith.constant 0 : index
    %c0_10 = arith.constant 0 : index
    %10 = vector.load %arg12[%c0_9, %c0_10] : memref<1x1024xf32, #tpu.memory_space<vmem>>, vector<1x1024xf32>
    %11 = vector.broadcast %10 : vector<1x1024xf32> to vector<32x1024xf32>
    %12 = arith.addf %9, %11 : vector<32x1024xf32>
    %c0_11 = arith.constant 0 : index
    %c0_12 = arith.constant 0 : index
    %13 = vector.load %arg29[%c0_11, %c0_12] : memref<32x1024xf32, #tpu.memory_space<vmem>>, vector<32x1024xf32>
    tpu.vector_store %arg29[%c0_11, %c0_12], %12 {strides = array<i32>} : memref<32x1024xf32, #tpu.memory_space<vmem>>, vector<32x1024xf32>,
    %c0_13 = arith.constant 0 : index
    %c0_14 = arith.constant 0 : index
    %14 = vector.load %arg1[%c0_13, %c0_14] : memref<16x32xf32, #tpu.memory_space<vmem>>, vector<16x32xf32>
    %c0_15 = arith.constant 0 : index
    %c0_16 = arith.constant 0 : index
    %15 = vector.load %arg7[%c0_15, %c0_16] : memref<32x32xf32, #tpu.memory_space<vmem>>, vector<32x32xf32>
    %cst_17 = arith.constant dense<0.000000e+00> : vector<16x32xf32>
    %16 = tpu.matmul %14, %15, %cst_17 {dimension_numbers = #tpu.dot_dimension_numbers<[1], [0], [0], [1], [0, 0, 1, 1], [], []>} : vector<16x32xf32>, vector<32x32xf32>, vector<16x32xf32> -> vector<16x32xf32>
    %c0_18 = arith.constant 0 : index
    %c0_19 = arith.constant 0 : index
    %17 = vector.load %arg8[%c0_18, %c0_19] : memref<1x32xf32, #tpu.memory_space<vmem>>, vector<1x32xf32>
    %18 = vector.broadcast %17 : vector<1x32xf32> to vector<16x32xf32>
    %19 = arith.addf %16, %18 : vector<16x32xf32>
    %cst_20 = arith.constant 0.000000e+00 : f32
    %20 = vector.broadcast %cst_20 : f32 to vector<16x32xf32>
    %21 = arith.maximumf %19, %20 : vector<16x32xf32>
    %c0_i32 = arith.constant 0 : i32
    %c3_i32 = arith.constant 3 : i32
    %22 = arith.addi %c0_i32, %c3_i32 : i32
    %c1_i32 = arith.constant 1 : i32
    %23:2 = scf.for %arg31 = %c0_i32 to %22 step %c1_i32 iter_args(%arg32 = %21, %arg33 = %21) -> (vector<16x32xf32>, vector<16x32xf32>)  : i32 {
      %c0_64 = arith.constant 0 : index
      %c0_65 = arith.constant 0 : index
      %71 = vector.load %arg3[%c0_64, %c0_65] : memref<32x16xf32, #tpu.memory_space<vmem>>, vector<32x16xf32>
      %cst_66 = arith.constant dense<0.000000e+00> : vector<32x32xf32>
      %72 = tpu.matmul %71, %arg32, %cst_66 {dimension_numbers = #tpu.dot_dimension_numbers<[1], [0], [0], [1], [0, 0, 1, 1], [], []>} : vector<32x16xf32>, vector<16x32xf32>, vector<32x32xf32> -> vector<32x32xf32>
      %cst_67 = arith.constant 0.000000e+00 : f32
      %73 = vector.broadcast %cst_67 : f32 to vector<32x32xf32>
      %74 = vector.extract_strided_slice %72 {offsets = [0, 0], sizes = [32, 1], strides = [1, 1]} : vector<32x32xf32> to vector<32x1xf32>
      %c0_68 = arith.constant 0 : index
      %c0_69 = arith.constant 0 : index
      %75 = vector.load %arg29[%c0_68, %c0_69] : memref<32x1024xf32, #tpu.memory_space<vmem>>, vector<32x32xf32>
      %76 = vector.broadcast %74 : vector<32x1xf32> to vector<32x32xf32>
      %77 = arith.mulf %76, %75 : vector<32x32xf32>
      %78 = arith.addf %73, %77 : vector<32x32xf32>
      %79 = vector.extract_strided_slice %72 {offsets = [0, 1], sizes = [32, 1], strides = [1, 1]} : vector<32x32xf32> to vector<32x1xf32>
      %c0_70 = arith.constant 0 : index
      %c32 = arith.constant 32 : index
      %80 = vector.load %arg29[%c0_70, %c32] : memref<32x1024xf32, #tpu.memory_space<vmem>>, vector<32x32xf32>
      %81 = vector.broadcast %79 : vector<32x1xf32> to vector<32x32xf32>
      %82 = arith.mulf %81, %80 : vector<32x32xf32>
      %83 = arith.addf %78, %82 : vector<32x32xf32>
      %84 = vector.extract_strided_slice %72 {offsets = [0, 2], sizes = [32, 1], strides = [1, 1]} : vector<32x32xf32> to vector<32x1xf32>
      %c0_71 = arith.constant 0 : index
      %c64 = arith.constant 64 : index
      %85 = vector.load %arg29[%c0_71, %c64] : memref<32x1024xf32, #tpu.memory_space<vmem>>, vector<32x32xf32>
      %86 = vector.broadcast %84 : vector<32x1xf32> to vector<32x32xf32>
      %87 = arith.mulf %86, %85 : vector<32x32xf32>
      %88 = arith.addf %83, %87 : vector<32x32xf32>
      %89 = vector.extract_strided_slice %72 {offsets = [0, 3], sizes = [32, 1], strides = [1, 1]} : vector<32x32xf32> to vector<32x1xf32>
      %c0_72 = arith.constant 0 : index
      %c96 = arith.constant 96 : index
      %90 = vector.load %arg29[%c0_72, %c96] : memref<32x1024xf32, #tpu.memory_space<vmem>>, vector<32x32xf32>
      %91 = vector.broadcast %89 : vector<32x1xf32> to vector<32x32xf32>
      %92 = arith.mulf %91, %90 : vector<32x32xf32>
      %93 = arith.addf %88, %92 : vector<32x32xf32>
      %94 = vector.extract_strided_slice %72 {offsets = [0, 4], sizes = [32, 1], strides = [1, 1]} : vector<32x32xf32> to vector<32x1xf32>
      %c0_73 = arith.constant 0 : index
      %c128 = arith.constant 128 : index
      %95 = vector.load %arg29[%c0_73, %c128] : memref<32x1024xf32, #tpu.memory_space<vmem>>, vector<32x32xf32>
      %96 = vector.broadcast %94 : vector<32x1xf32> to vector<32x32xf32>
      %97 = arith.mulf %96, %95 : vector<32x32xf32>
      %98 = arith.addf %93, %97 : vector<32x32xf32>
      %99 = vector.extract_strided_slice %72 {offsets = [0, 5], sizes = [32, 1], strides = [1, 1]} : vector<32x32xf32> to vector<32x1xf32>
      %c0_74 = arith.constant 0 : index
      %c160 = arith.constant 160 : index
      %100 = vector.load %arg29[%c0_74, %c160] : memref<32x1024xf32, #tpu.memory_space<vmem>>, vector<32x32xf32>
      %101 = vector.broadcast %99 : vector<32x1xf32> to vector<32x32xf32>
      %102 = arith.mulf %101, %100 : vector<32x32xf32>
      %103 = arith.addf %98, %102 : vector<32x32xf32>
      %104 = vector.extract_strided_slice %72 {offsets = [0, 6], sizes = [32, 1], strides = [1, 1]} : vector<32x32xf32> to vector<32x1xf32>
      %c0_75 = arith.constant 0 : index
      %c192 = arith.constant 192 : index
      %105 = vector.load %arg29[%c0_75, %c192] : memref<32x1024xf32, #tpu.memory_space<vmem>>, vector<32x32xf32>
      %106 = vector.broadcast %104 : vector<32x1xf32> to vector<32x32xf32>
      %107 = arith.mulf %106, %105 : vector<32x32xf32>
      %108 = arith.addf %103, %107 : vector<32x32xf32>
      %109 = vector.extract_strided_slice %72 {offsets = [0, 7], sizes = [32, 1], strides = [1, 1]} : vector<32x32xf32> to vector<32x1xf32>
      %c0_76 = arith.constant 0 : index
      %c224 = arith.constant 224 : index
      %110 = vector.load %arg29[%c0_76, %c224] : memref<32x1024xf32, #tpu.memory_space<vmem>>, vector<32x32xf32>
      %111 = vector.broadcast %109 : vector<32x1xf32> to vector<32x32xf32>
      %112 = arith.mulf %111, %110 : vector<32x32xf32>
      %113 = arith.addf %108, %112 : vector<32x32xf32>
      %114 = vector.extract_strided_slice %72 {offsets = [0, 8], sizes = [32, 1], strides = [1, 1]} : vector<32x32xf32> to vector<32x1xf32>
      %c0_77 = arith.constant 0 : index
      %c256 = arith.constant 256 : index
      %115 = vector.load %arg29[%c0_77, %c256] : memref<32x1024xf32, #tpu.memory_space<vmem>>, vector<32x32xf32>
      %116 = vector.broadcast %114 : vector<32x1xf32> to vector<32x32xf32>
      %117 = arith.mulf %116, %115 : vector<32x32xf32>
      %118 = arith.addf %113, %117 : vector<32x32xf32>
      %119 = vector.extract_strided_slice %72 {offsets = [0, 9], sizes = [32, 1], strides = [1, 1]} : vector<32x32xf32> to vector<32x1xf32>
      %c0_78 = arith.constant 0 : index
      %c288 = arith.constant 288 : index
      %120 = vector.load %arg29[%c0_78, %c288] : memref<32x1024xf32, #tpu.memory_space<vmem>>, vector<32x32xf32>
      %121 = vector.broadcast %119 : vector<32x1xf32> to vector<32x32xf32>
      %122 = arith.mulf %121, %120 : vector<32x32xf32>
      %123 = arith.addf %118, %122 : vector<32x32xf32>
      %124 = vector.extract_strided_slice %72 {offsets = [0, 10], sizes = [32, 1], strides = [1, 1]} : vector<32x32xf32> to vector<32x1xf32>
      %c0_79 = arith.constant 0 : index
      %c320 = arith.constant 320 : index
      %125 = vector.load %arg29[%c0_79, %c320] : memref<32x1024xf32, #tpu.memory_space<vmem>>, vector<32x32xf32>
      %126 = vector.broadcast %124 : vector<32x1xf32> to vector<32x32xf32>
      %127 = arith.mulf %126, %125 : vector<32x32xf32>
      %128 = arith.addf %123, %127 : vector<32x32xf32>
      %129 = vector.extract_strided_slice %72 {offsets = [0, 11], sizes = [32, 1], strides = [1, 1]} : vector<32x32xf32> to vector<32x1xf32>
      %c0_80 = arith.constant 0 : index
      %c352 = arith.constant 352 : index
      %130 = vector.load %arg29[%c0_80, %c352] : memref<32x1024xf32, #tpu.memory_space<vmem>>, vector<32x32xf32>
      %131 = vector.broadcast %129 : vector<32x1xf32> to vector<32x32xf32>
      %132 = arith.mulf %131, %130 : vector<32x32xf32>
      %133 = arith.addf %128, %132 : vector<32x32xf32>
      %134 = vector.extract_strided_slice %72 {offsets = [0, 12], sizes = [32, 1], strides = [1, 1]} : vector<32x32xf32> to vector<32x1xf32>
      %c0_81 = arith.constant 0 : index
      %c384 = arith.constant 384 : index
      %135 = vector.load %arg29[%c0_81, %c384] : memref<32x1024xf32, #tpu.memory_space<vmem>>, vector<32x32xf32>
      %136 = vector.broadcast %134 : vector<32x1xf32> to vector<32x32xf32>
      %137 = arith.mulf %136, %135 : vector<32x32xf32>
      %138 = arith.addf %133, %137 : vector<32x32xf32>
      %139 = vector.extract_strided_slice %72 {offsets = [0, 13], sizes = [32, 1], strides = [1, 1]} : vector<32x32xf32> to vector<32x1xf32>
      %c0_82 = arith.constant 0 : index
      %c416 = arith.constant 416 : index
      %140 = vector.load %arg29[%c0_82, %c416] : memref<32x1024xf32, #tpu.memory_space<vmem>>, vector<32x32xf32>
      %141 = vector.broadcast %139 : vector<32x1xf32> to vector<32x32xf32>
      %142 = arith.mulf %141, %140 : vector<32x32xf32>
      %143 = arith.addf %138, %142 : vector<32x32xf32>
      %144 = vector.extract_strided_slice %72 {offsets = [0, 14], sizes = [32, 1], strides = [1, 1]} : vector<32x32xf32> to vector<32x1xf32>
      %c0_83 = arith.constant 0 : index
      %c448 = arith.constant 448 : index
      %145 = vector.load %arg29[%c0_83, %c448] : memref<32x1024xf32, #tpu.memory_space<vmem>>, vector<32x32xf32>
      %146 = vector.broadcast %144 : vector<32x1xf32> to vector<32x32xf32>
      %147 = arith.mulf %146, %145 : vector<32x32xf32>
      %148 = arith.addf %143, %147 : vector<32x32xf32>
      %149 = vector.extract_strided_slice %72 {offsets = [0, 15], sizes = [32, 1], strides = [1, 1]} : vector<32x32xf32> to vector<32x1xf32>
      %c0_84 = arith.constant 0 : index
      %c480 = arith.constant 480 : index
      %150 = vector.load %arg29[%c0_84, %c480] : memref<32x1024xf32, #tpu.memory_space<vmem>>, vector<32x32xf32>
      %151 = vector.broadcast %149 : vector<32x1xf32> to vector<32x32xf32>
      %152 = arith.mulf %151, %150 : vector<32x32xf32>
      %153 = arith.addf %148, %152 : vector<32x32xf32>
      %154 = vector.extract_strided_slice %72 {offsets = [0, 16], sizes = [32, 1], strides = [1, 1]} : vector<32x32xf32> to vector<32x1xf32>
      %c0_85 = arith.constant 0 : index
      %c512 = arith.constant 512 : index
      %155 = vector.load %arg29[%c0_85, %c512] : memref<32x1024xf32, #tpu.memory_space<vmem>>, vector<32x32xf32>
      %156 = vector.broadcast %154 : vector<32x1xf32> to vector<32x32xf32>
      %157 = arith.mulf %156, %155 : vector<32x32xf32>
      %158 = arith.addf %153, %157 : vector<32x32xf32>
      %159 = vector.extract_strided_slice %72 {offsets = [0, 17], sizes = [32, 1], strides = [1, 1]} : vector<32x32xf32> to vector<32x1xf32>
      %c0_86 = arith.constant 0 : index
      %c544 = arith.constant 544 : index
      %160 = vector.load %arg29[%c0_86, %c544] : memref<32x1024xf32, #tpu.memory_space<vmem>>, vector<32x32xf32>
      %161 = vector.broadcast %159 : vector<32x1xf32> to vector<32x32xf32>
      %162 = arith.mulf %161, %160 : vector<32x32xf32>
      %163 = arith.addf %158, %162 : vector<32x32xf32>
      %164 = vector.extract_strided_slice %72 {offsets = [0, 18], sizes = [32, 1], strides = [1, 1]} : vector<32x32xf32> to vector<32x1xf32>
      %c0_87 = arith.constant 0 : index
      %c576 = arith.constant 576 : index
      %165 = vector.load %arg29[%c0_87, %c576] : memref<32x1024xf32, #tpu.memory_space<vmem>>, vector<32x32xf32>
      %166 = vector.broadcast %164 : vector<32x1xf32> to vector<32x32xf32>
      %167 = arith.mulf %166, %165 : vector<32x32xf32>
      %168 = arith.addf %163, %167 : vector<32x32xf32>
      %169 = vector.extract_strided_slice %72 {offsets = [0, 19], sizes = [32, 1], strides = [1, 1]} : vector<32x32xf32> to vector<32x1xf32>
      %c0_88 = arith.constant 0 : index
      %c608 = arith.constant 608 : index
      %170 = vector.load %arg29[%c0_88, %c608] : memref<32x1024xf32, #tpu.memory_space<vmem>>, vector<32x32xf32>
      %171 = vector.broadcast %169 : vector<32x1xf32> to vector<32x32xf32>
      %172 = arith.mulf %171, %170 : vector<32x32xf32>
      %173 = arith.addf %168, %172 : vector<32x32xf32>
      %174 = vector.extract_strided_slice %72 {offsets = [0, 20], sizes = [32, 1], strides = [1, 1]} : vector<32x32xf32> to vector<32x1xf32>
      %c0_89 = arith.constant 0 : index
      %c640 = arith.constant 640 : index
      %175 = vector.load %arg29[%c0_89, %c640] : memref<32x1024xf32, #tpu.memory_space<vmem>>, vector<32x32xf32>
      %176 = vector.broadcast %174 : vector<32x1xf32> to vector<32x32xf32>
      %177 = arith.mulf %176, %175 : vector<32x32xf32>
      %178 = arith.addf %173, %177 : vector<32x32xf32>
      %179 = vector.extract_strided_slice %72 {offsets = [0, 21], sizes = [32, 1], strides = [1, 1]} : vector<32x32xf32> to vector<32x1xf32>
      %c0_90 = arith.constant 0 : index
      %c672 = arith.constant 672 : index
      %180 = vector.load %arg29[%c0_90, %c672] : memref<32x1024xf32, #tpu.memory_space<vmem>>, vector<32x32xf32>
      %181 = vector.broadcast %179 : vector<32x1xf32> to vector<32x32xf32>
      %182 = arith.mulf %181, %180 : vector<32x32xf32>
      %183 = arith.addf %178, %182 : vector<32x32xf32>
      %184 = vector.extract_strided_slice %72 {offsets = [0, 22], sizes = [32, 1], strides = [1, 1]} : vector<32x32xf32> to vector<32x1xf32>
      %c0_91 = arith.constant 0 : index
      %c704 = arith.constant 704 : index
      %185 = vector.load %arg29[%c0_91, %c704] : memref<32x1024xf32, #tpu.memory_space<vmem>>, vector<32x32xf32>
      %186 = vector.broadcast %184 : vector<32x1xf32> to vector<32x32xf32>
      %187 = arith.mulf %186, %185 : vector<32x32xf32>
      %188 = arith.addf %183, %187 : vector<32x32xf32>
      %189 = vector.extract_strided_slice %72 {offsets = [0, 23], sizes = [32, 1], strides = [1, 1]} : vector<32x32xf32> to vector<32x1xf32>
      %c0_92 = arith.constant 0 : index
      %c736 = arith.constant 736 : index
      %190 = vector.load %arg29[%c0_92, %c736] : memref<32x1024xf32, #tpu.memory_space<vmem>>, vector<32x32xf32>
      %191 = vector.broadcast %189 : vector<32x1xf32> to vector<32x32xf32>
      %192 = arith.mulf %191, %190 : vector<32x32xf32>
      %193 = arith.addf %188, %192 : vector<32x32xf32>
      %194 = vector.extract_strided_slice %72 {offsets = [0, 24], sizes = [32, 1], strides = [1, 1]} : vector<32x32xf32> to vector<32x1xf32>
      %c0_93 = arith.constant 0 : index
      %c768 = arith.constant 768 : index
      %195 = vector.load %arg29[%c0_93, %c768] : memref<32x1024xf32, #tpu.memory_space<vmem>>, vector<32x32xf32>
      %196 = vector.broadcast %194 : vector<32x1xf32> to vector<32x32xf32>
      %197 = arith.mulf %196, %195 : vector<32x32xf32>
      %198 = arith.addf %193, %197 : vector<32x32xf32>
      %199 = vector.extract_strided_slice %72 {offsets = [0, 25], sizes = [32, 1], strides = [1, 1]} : vector<32x32xf32> to vector<32x1xf32>
      %c0_94 = arith.constant 0 : index
      %c800 = arith.constant 800 : index
      %200 = vector.load %arg29[%c0_94, %c800] : memref<32x1024xf32, #tpu.memory_space<vmem>>, vector<32x32xf32>
      %201 = vector.broadcast %199 : vector<32x1xf32> to vector<32x32xf32>
      %202 = arith.mulf %201, %200 : vector<32x32xf32>
      %203 = arith.addf %198, %202 : vector<32x32xf32>
      %204 = vector.extract_strided_slice %72 {offsets = [0, 26], sizes = [32, 1], strides = [1, 1]} : vector<32x32xf32> to vector<32x1xf32>
      %c0_95 = arith.constant 0 : index
      %c832 = arith.constant 832 : index
      %205 = vector.load %arg29[%c0_95, %c832] : memref<32x1024xf32, #tpu.memory_space<vmem>>, vector<32x32xf32>
      %206 = vector.broadcast %204 : vector<32x1xf32> to vector<32x32xf32>
      %207 = arith.mulf %206, %205 : vector<32x32xf32>
      %208 = arith.addf %203, %207 : vector<32x32xf32>
      %209 = vector.extract_strided_slice %72 {offsets = [0, 27], sizes = [32, 1], strides = [1, 1]} : vector<32x32xf32> to vector<32x1xf32>
      %c0_96 = arith.constant 0 : index
      %c864 = arith.constant 864 : index
      %210 = vector.load %arg29[%c0_96, %c864] : memref<32x1024xf32, #tpu.memory_space<vmem>>, vector<32x32xf32>
      %211 = vector.broadcast %209 : vector<32x1xf32> to vector<32x32xf32>
      %212 = arith.mulf %211, %210 : vector<32x32xf32>
      %213 = arith.addf %208, %212 : vector<32x32xf32>
      %214 = vector.extract_strided_slice %72 {offsets = [0, 28], sizes = [32, 1], strides = [1, 1]} : vector<32x32xf32> to vector<32x1xf32>
      %c0_97 = arith.constant 0 : index
      %c896 = arith.constant 896 : index
      %215 = vector.load %arg29[%c0_97, %c896] : memref<32x1024xf32, #tpu.memory_space<vmem>>, vector<32x32xf32>
      %216 = vector.broadcast %214 : vector<32x1xf32> to vector<32x32xf32>
      %217 = arith.mulf %216, %215 : vector<32x32xf32>
      %218 = arith.addf %213, %217 : vector<32x32xf32>
      %219 = vector.extract_strided_slice %72 {offsets = [0, 29], sizes = [32, 1], strides = [1, 1]} : vector<32x32xf32> to vector<32x1xf32>
      %c0_98 = arith.constant 0 : index
      %c928 = arith.constant 928 : index
      %220 = vector.load %arg29[%c0_98, %c928] : memref<32x1024xf32, #tpu.memory_space<vmem>>, vector<32x32xf32>
      %221 = vector.broadcast %219 : vector<32x1xf32> to vector<32x32xf32>
      %222 = arith.mulf %221, %220 : vector<32x32xf32>
      %223 = arith.addf %218, %222 : vector<32x32xf32>
      %224 = vector.extract_strided_slice %72 {offsets = [0, 30], sizes = [32, 1], strides = [1, 1]} : vector<32x32xf32> to vector<32x1xf32>
      %c0_99 = arith.constant 0 : index
      %c960 = arith.constant 960 : index
      %225 = vector.load %arg29[%c0_99, %c960] : memref<32x1024xf32, #tpu.memory_space<vmem>>, vector<32x32xf32>
      %226 = vector.broadcast %224 : vector<32x1xf32> to vector<32x32xf32>
      %227 = arith.mulf %226, %225 : vector<32x32xf32>
      %228 = arith.addf %223, %227 : vector<32x32xf32>
      %229 = vector.extract_strided_slice %72 {offsets = [0, 31], sizes = [32, 1], strides = [1, 1]} : vector<32x32xf32> to vector<32x1xf32>
      %c0_100 = arith.constant 0 : index
      %c992 = arith.constant 992 : index
      %230 = vector.load %arg29[%c0_100, %c992] : memref<32x1024xf32, #tpu.memory_space<vmem>>, vector<32x32xf32>
      %231 = vector.broadcast %229 : vector<32x1xf32> to vector<32x32xf32>
      %232 = arith.mulf %231, %230 : vector<32x32xf32>
      %233 = arith.addf %228, %232 : vector<32x32xf32>
      %c0_101 = arith.constant 0 : index
      %c0_102 = arith.constant 0 : index
      %234 = vector.load %arg4[%c0_101, %c0_102] : memref<16x32xf32, #tpu.memory_space<vmem>>, vector<16x32xf32>
      %cst_103 = arith.constant dense<0.000000e+00> : vector<16x32xf32>
      %235 = tpu.matmul %234, %233, %cst_103 {dimension_numbers = #tpu.dot_dimension_numbers<[1], [0], [0], [1], [0, 0, 1, 1], [], []>} : vector<16x32xf32>, vector<32x32xf32>, vector<16x32xf32> -> vector<16x32xf32>
      %236 = arith.addf %235, %arg32 : vector<16x32xf32>
      %c0_104 = arith.constant 0 : index
      %c0_105 = arith.constant 0 : index
      %237 = vector.load %arg13[%c0_104, %c0_105] : memref<1x32xf32, #tpu.memory_space<vmem>>, vector<1x32xf32>
      %238 = vector.broadcast %237 : vector<1x32xf32> to vector<16x32xf32>
      %239 = arith.addf %236, %238 : vector<16x32xf32>
      %cst_106 = arith.constant 0.000000e+00 : f32
      %240 = vector.broadcast %cst_106 : f32 to vector<16x32xf32>
      %241 = arith.maximumf %239, %240 : vector<16x32xf32>
      %242 = tpu.concatenate %241, %arg33 in 1 : vector<16x32xf32>, vector<16x32xf32> -> vector<16x64xf32>
      %c0_107 = arith.constant 0 : index
      %c0_108 = arith.constant 0 : index
      %243 = vector.load %arg16[%c0_107, %c0_108] : memref<64x192xf32, #tpu.memory_space<vmem>>, vector<64x192xf32>
      %cst_109 = arith.constant dense<0.000000e+00> : vector<16x192xf32>
      %244 = tpu.matmul %242, %243, %cst_109 {dimension_numbers = #tpu.dot_dimension_numbers<[1], [0], [0], [1], [0, 0, 1, 1], [], []>} : vector<16x64xf32>, vector<64x192xf32>, vector<16x192xf32> -> vector<16x192xf32>
      %c0_110 = arith.constant 0 : index
      %c0_111 = arith.constant 0 : index
      %245 = vector.load %arg17[%c0_110, %c0_111] : memref<1x192xf32, #tpu.memory_space<vmem>>, vector<1x192xf32>
      %246 = vector.broadcast %245 : vector<1x192xf32> to vector<16x192xf32>
      %247 = arith.addf %244, %246 : vector<16x192xf32>
      %248 = vector.extract_strided_slice %247 {offsets = [0, 0], sizes = [16, 96], strides = [1, 1]} : vector<16x192xf32> to vector<16x96xf32>
      %249 = vector.extract_strided_slice %247 {offsets = [0, 96], sizes = [16, 96], strides = [1, 1]} : vector<16x192xf32> to vector<16x96xf32>
      %250 = vector.extract_strided_slice %248 {offsets = [0, 0], sizes = [16, 32], strides = [1, 1]} : vector<16x96xf32> to vector<16x32xf32>
      %251 = vector.extract_strided_slice %249 {offsets = [0, 0], sizes = [16, 32], strides = [1, 1]} : vector<16x96xf32> to vector<16x32xf32>
      %252 = arith.addf %250, %251 : vector<16x32xf32>
      %253 = arith.negf %252 : vector<16x32xf32>
      %254 = math.exp %253 : vector<16x32xf32>
      %cst_112 = arith.constant 1.000000e+00 : f32
      %255 = vector.broadcast %cst_112 : f32 to vector<16x32xf32>
      %256 = arith.addf %255, %254 : vector<16x32xf32>
      %257 = arith.divf %255, %256 : vector<16x32xf32>
      %258 = vector.extract_strided_slice %248 {offsets = [0, 32], sizes = [16, 32], strides = [1, 1]} : vector<16x96xf32> to vector<16x32xf32>
      %259 = vector.extract_strided_slice %249 {offsets = [0, 32], sizes = [16, 32], strides = [1, 1]} : vector<16x96xf32> to vector<16x32xf32>
      %260 = arith.addf %258, %259 : vector<16x32xf32>
      %261 = arith.negf %260 : vector<16x32xf32>
      %262 = math.exp %261 : vector<16x32xf32>
      %cst_113 = arith.constant 1.000000e+00 : f32
      %263 = vector.broadcast %cst_113 : f32 to vector<16x32xf32>
      %264 = arith.addf %263, %262 : vector<16x32xf32>
      %265 = arith.divf %263, %264 : vector<16x32xf32>
      %266 = vector.extract_strided_slice %248 {offsets = [0, 64], sizes = [16, 32], strides = [1, 1]} : vector<16x96xf32> to vector<16x32xf32>
      %267 = vector.extract_strided_slice %249 {offsets = [0, 64], sizes = [16, 32], strides = [1, 1]} : vector<16x96xf32> to vector<16x32xf32>
      %268 = arith.mulf %257, %267 : vector<16x32xf32>
      %269 = arith.addf %266, %268 : vector<16x32xf32>
      %270 = math.tanh %269 : vector<16x32xf32>
      %cst_114 = arith.constant 1.000000e+00 : f32
      %271 = vector.broadcast %cst_114 : f32 to vector<16x32xf32>
      %272 = arith.subf %271, %265 : vector<16x32xf32>
      %273 = arith.mulf %272, %270 : vector<16x32xf32>
      %274 = arith.mulf %265, %arg33 : vector<16x32xf32>
      %275 = arith.addf %273, %274 : vector<16x32xf32>
      scf.yield %275, %275 : vector<16x32xf32>, vector<16x32xf32>
    }
    %c0_21 = arith.constant 0 : index
    %c0_22 = arith.constant 0 : index
    %24 = vector.load %arg14[%c0_21, %c0_22] : memref<8x32xf32, #tpu.memory_space<vmem>>, vector<8x32xf32>
    %cst_23 = arith.constant dense<0.000000e+00> : vector<32x32xf32>
    %25 = tpu.matmul %0, %24, %cst_23 {dimension_numbers = #tpu.dot_dimension_numbers<[1], [0], [0], [1], [0, 0, 1, 1], [], []>} : vector<32x8xf32>, vector<8x32xf32>, vector<32x32xf32> -> vector<32x32xf32>
    %c0_24 = arith.constant 0 : index
    %c0_25 = arith.constant 0 : index
    %26 = vector.load %arg15[%c0_24, %c0_25] : memref<1x32xf32, #tpu.memory_space<vmem>>, vector<1x32xf32>
    %27 = vector.broadcast %26 : vector<1x32xf32> to vector<32x32xf32>
    %28 = arith.addf %25, %27 : vector<32x32xf32>
    %cst_26 = arith.constant 0.000000e+00 : f32
    %29 = vector.broadcast %cst_26 : f32 to vector<32x32xf32>
    %30 = arith.maximumf %28, %29 : vector<32x32xf32>
    %c0_27 = arith.constant 0 : index
    %c0_28 = arith.constant 0 : index
    %31 = vector.load %arg3[%c0_27, %c0_28] : memref<32x16xf32, #tpu.memory_space<vmem>>, vector<32x16xf32>
    %cst_29 = arith.constant dense<0.000000e+00> : vector<32x32xf32>
    %32 = tpu.matmul %31, %23#0, %cst_29 {dimension_numbers = #tpu.dot_dimension_numbers<[1], [0], [0], [1], [0, 0, 1, 1], [], []>} : vector<32x16xf32>, vector<16x32xf32>, vector<32x32xf32> -> vector<32x32xf32>
    %33 = tpu.concatenate %32, %30 in 1 : vector<32x32xf32>, vector<32x32xf32> -> vector<32x64xf32>
    %c0_30 = arith.constant 0 : index
    %c0_31 = arith.constant 0 : index
    %34 = vector.load %arg4[%c0_30, %c0_31] : memref<16x32xf32, #tpu.memory_space<vmem>>, vector<16x32xf32>
    %cst_32 = arith.constant dense<0.000000e+00> : vector<16x64xf32>
    %35 = tpu.matmul %34, %33, %cst_32 {dimension_numbers = #tpu.dot_dimension_numbers<[1], [0], [0], [1], [0, 0, 1, 1], [], []>} : vector<16x32xf32>, vector<32x64xf32>, vector<16x64xf32> -> vector<16x64xf32>
    %c0_33 = arith.constant 0 : index
    %c0_34 = arith.constant 0 : index
    %36 = vector.load %arg30[%c0_33, %c0_34] : memref<16x64xf32, #tpu.memory_space<vmem>>, vector<16x64xf32>
    tpu.vector_store %arg30[%c0_33, %c0_34], %35 {strides = array<i32>} : memref<16x64xf32, #tpu.memory_space<vmem>>, vector<16x64xf32>,
    %c0_35 = arith.constant 0 : index
    %c0_36 = arith.constant 0 : index
    %37 = vector.load %arg6[%c0_35, %c0_36] : memref<16x2xf32, #tpu.memory_space<vmem>>, vector<16x2xf32>
    %cst_37 = arith.constant 0.000000e+00 : f32
    %38 = vector.broadcast %cst_37 : f32 to vector<16x2xf32>
    %39 = arith.cmpf ogt, %37, %38 : vector<16x2xf32>
    %cst_38 = arith.constant 0.000000e+00 : f32
    %40 = vector.broadcast %cst_38 : f32 to vector<2x64xf32>
    %cst_39 = arith.constant 0.000000e+00 : f32
    %41 = vector.broadcast %cst_39 : f32 to vector<2x128xf32>
    %c0_i32_40 = arith.constant 0 : i32
    %c3_i32_41 = arith.constant 3 : i32
    %42 = arith.addi %c0_i32_40, %c3_i32_41 : i32
    %c1_i32_42 = arith.constant 1 : i32
    %43:5 = scf.for %arg31 = %c0_i32_40 to %42 step %c1_i32_42 iter_args(%arg32 = %40, %arg33 = %40, %arg34 = %40, %arg35 = %40, %arg36 = %41) -> (vector<2x64xf32>, vector<2x64xf32>, vector<2x64xf32>, vector<2x64xf32>, vector<2x128xf32>)  : i32 {
      %71 = tpu.concatenate %arg36, %arg32 in 1 : vector<2x128xf32>, vector<2x64xf32> -> vector<2x192xf32>
      %c0_64 = arith.constant 0 : index
      %c0_65 = arith.constant 0 : index
      %72 = vector.load %arg18[%c0_64, %c0_65] : memref<192x256xf32, #tpu.memory_space<vmem>>, vector<192x256xf32>
      %cst_66 = arith.constant dense<0.000000e+00> : vector<2x256xf32>
      %73 = tpu.matmul %71, %72, %cst_66 {dimension_numbers = #tpu.dot_dimension_numbers<[1], [0], [0], [1], [0, 0, 1, 1], [], []>} : vector<2x192xf32>, vector<192x256xf32>, vector<2x256xf32> -> vector<2x256xf32>
      %c0_67 = arith.constant 0 : index
      %c0_68 = arith.constant 0 : index
      %74 = vector.load %arg19[%c0_67, %c0_68] : memref<1x256xf32, #tpu.memory_space<vmem>>, vector<1x256xf32>
      %75 = vector.broadcast %74 : vector<1x256xf32> to vector<2x256xf32>
      %76 = arith.addf %73, %75 : vector<2x256xf32>
      %77 = vector.extract_strided_slice %76 {offsets = [0, 0], sizes = [2, 64], strides = [1, 1]} : vector<2x256xf32> to vector<2x64xf32>
      %78 = arith.negf %77 : vector<2x64xf32>
      %79 = math.exp %78 : vector<2x64xf32>
      %cst_69 = arith.constant 1.000000e+00 : f32
      %80 = vector.broadcast %cst_69 : f32 to vector<2x64xf32>
      %81 = arith.addf %80, %79 : vector<2x64xf32>
      %82 = arith.divf %80, %81 : vector<2x64xf32>
      %83 = vector.extract_strided_slice %76 {offsets = [0, 64], sizes = [2, 64], strides = [1, 1]} : vector<2x256xf32> to vector<2x64xf32>
      %84 = arith.negf %83 : vector<2x64xf32>
      %85 = math.exp %84 : vector<2x64xf32>
      %cst_70 = arith.constant 1.000000e+00 : f32
      %86 = vector.broadcast %cst_70 : f32 to vector<2x64xf32>
      %87 = arith.addf %86, %85 : vector<2x64xf32>
      %88 = arith.divf %86, %87 : vector<2x64xf32>
      %89 = vector.extract_strided_slice %76 {offsets = [0, 128], sizes = [2, 64], strides = [1, 1]} : vector<2x256xf32> to vector<2x64xf32>
      %90 = math.tanh %89 : vector<2x64xf32>
      %91 = vector.extract_strided_slice %76 {offsets = [0, 192], sizes = [2, 64], strides = [1, 1]} : vector<2x256xf32> to vector<2x64xf32>
      %92 = arith.negf %91 : vector<2x64xf32>
      %93 = math.exp %92 : vector<2x64xf32>
      %cst_71 = arith.constant 1.000000e+00 : f32
      %94 = vector.broadcast %cst_71 : f32 to vector<2x64xf32>
      %95 = arith.addf %94, %93 : vector<2x64xf32>
      %96 = arith.divf %94, %95 : vector<2x64xf32>
      %97 = arith.mulf %88, %arg33 : vector<2x64xf32>
      %98 = arith.mulf %82, %90 : vector<2x64xf32>
      %99 = arith.addf %97, %98 : vector<2x64xf32>
      %100 = math.tanh %99 : vector<2x64xf32>
      %101 = arith.mulf %96, %100 : vector<2x64xf32>
      %102 = tpu.concatenate %101, %arg34 in 1 : vector<2x64xf32>, vector<2x64xf32> -> vector<2x128xf32>
      %c0_72 = arith.constant 0 : index
      %c0_73 = arith.constant 0 : index
      %103 = vector.load %arg20[%c0_72, %c0_73] : memref<128x256xf32, #tpu.memory_space<vmem>>, vector<128x256xf32>
      %cst_74 = arith.constant dense<0.000000e+00> : vector<2x256xf32>
      %104 = tpu.matmul %102, %103, %cst_74 {dimension_numbers = #tpu.dot_dimension_numbers<[1], [0], [0], [1], [0, 0, 1, 1], [], []>} : vector<2x128xf32>, vector<128x256xf32>, vector<2x256xf32> -> vector<2x256xf32>
      %c0_75 = arith.constant 0 : index
      %c0_76 = arith.constant 0 : index
      %105 = vector.load %arg21[%c0_75, %c0_76] : memref<1x256xf32, #tpu.memory_space<vmem>>, vector<1x256xf32>
      %106 = vector.broadcast %105 : vector<1x256xf32> to vector<2x256xf32>
      %107 = arith.addf %104, %106 : vector<2x256xf32>
      %108 = vector.extract_strided_slice %107 {offsets = [0, 0], sizes = [2, 64], strides = [1, 1]} : vector<2x256xf32> to vector<2x64xf32>
      %109 = arith.negf %108 : vector<2x64xf32>
      %110 = math.exp %109 : vector<2x64xf32>
      %cst_77 = arith.constant 1.000000e+00 : f32
      %111 = vector.broadcast %cst_77 : f32 to vector<2x64xf32>
      %112 = arith.addf %111, %110 : vector<2x64xf32>
      %113 = arith.divf %111, %112 : vector<2x64xf32>
      %114 = vector.extract_strided_slice %107 {offsets = [0, 64], sizes = [2, 64], strides = [1, 1]} : vector<2x256xf32> to vector<2x64xf32>
      %115 = arith.negf %114 : vector<2x64xf32>
      %116 = math.exp %115 : vector<2x64xf32>
      %cst_78 = arith.constant 1.000000e+00 : f32
      %117 = vector.broadcast %cst_78 : f32 to vector<2x64xf32>
      %118 = arith.addf %117, %116 : vector<2x64xf32>
      %119 = arith.divf %117, %118 : vector<2x64xf32>
      %120 = vector.extract_strided_slice %107 {offsets = [0, 128], sizes = [2, 64], strides = [1, 1]} : vector<2x256xf32> to vector<2x64xf32>
      %121 = math.tanh %120 : vector<2x64xf32>
      %122 = vector.extract_strided_slice %107 {offsets = [0, 192], sizes = [2, 64], strides = [1, 1]} : vector<2x256xf32> to vector<2x64xf32>
      %123 = arith.negf %122 : vector<2x64xf32>
      %124 = math.exp %123 : vector<2x64xf32>
      %cst_79 = arith.constant 1.000000e+00 : f32
      %125 = vector.broadcast %cst_79 : f32 to vector<2x64xf32>
      %126 = arith.addf %125, %124 : vector<2x64xf32>
      %127 = arith.divf %125, %126 : vector<2x64xf32>
      %128 = arith.mulf %119, %arg35 : vector<2x64xf32>
      %129 = arith.mulf %113, %121 : vector<2x64xf32>
      %130 = arith.addf %128, %129 : vector<2x64xf32>
      %131 = math.tanh %130 : vector<2x64xf32>
      %132 = arith.mulf %127, %131 : vector<2x64xf32>
      %c0_80 = arith.constant 0 : index
      %c0_81 = arith.constant 0 : index
      %133 = vector.load %arg30[%c0_80, %c0_81] : memref<16x64xf32, #tpu.memory_space<vmem>>, vector<16x64xf32>
      %cst_82 = arith.constant dense<0.000000e+00> : vector<16x2xf32>
      %134 = tpu.matmul %133, %132, %cst_82 {dimension_numbers = #tpu.dot_dimension_numbers<[1], [1], [0], [0], [0, 0, 1, 0], [], []>} : vector<16x64xf32>, vector<2x64xf32>, vector<16x2xf32> -> vector<16x2xf32>
      %cst_83 = arith.constant -1.000000e+30 : f32
      %135 = vector.broadcast %cst_83 : f32 to vector<16x2xf32>
      %136 = arith.select %39, %134, %135 : vector<16x2xi1>, vector<16x2xf32>
      %cst_84 = arith.constant dense<0xFF800000> : vector<2xf32>
      %137 = vector.multi_reduction <maximumf>, %136, %cst_84 [0] : vector<16x2xf32> to vector<2xf32>
      %138 = vector.shape_cast %137 : vector<2xf32> to vector<1x2xf32>
      %139 = vector.broadcast %138 : vector<1x2xf32> to vector<16x2xf32>
      %140 = arith.subf %136, %139 : vector<16x2xf32>
      %141 = math.exp %140 : vector<16x2xf32>
      %cst_85 = arith.constant dense<0.000000e+00> : vector<2xf32>
      %142 = vector.multi_reduction <add>, %141, %cst_85 [0] : vector<16x2xf32> to vector<2xf32>
      %143 = vector.shape_cast %142 : vector<2xf32> to vector<1x2xf32>
      %144 = tpu.reciprocal %143 {approx = true} : vector<1x2xf32> -> vector<1x2xf32>
      %145 = vector.broadcast %144 : vector<1x2xf32> to vector<16x2xf32>
      %146 = arith.mulf %141, %145 : vector<16x2xf32>
      %cst_86 = arith.constant dense<0.000000e+00> : vector<16xf32>
      %147 = vector.multi_reduction <add>, %146, %cst_86 [1] : vector<16x2xf32> to vector<16xf32>
      %148 = vector.shape_cast %147 : vector<16xf32> to vector<16x1xf32>
      %c0_87 = arith.constant 0 : index
      %c0_88 = arith.constant 0 : index
      %149 = vector.load %arg5[%c0_87, %c0_88] : memref<2x16xf32, #tpu.memory_space<vmem>>, vector<2x16xf32>
      %150 = vector.broadcast %148 : vector<16x1xf32> to vector<16x64xf32>
      %151 = arith.mulf %150, %133 : vector<16x64xf32>
      %cst_89 = arith.constant dense<0.000000e+00> : vector<2x64xf32>
      %152 = tpu.matmul %149, %151, %cst_89 {dimension_numbers = #tpu.dot_dimension_numbers<[1], [0], [0], [1], [0, 0, 1, 1], [], []>} : vector<2x16xf32>, vector<16x64xf32>, vector<2x64xf32> -> vector<2x64xf32>
      %153 = tpu.concatenate %132, %152 in 1 : vector<2x64xf32>, vector<2x64xf32> -> vector<2x128xf32>
      scf.yield %101, %99, %132, %130, %153 : vector<2x64xf32>, vector<2x64xf32>, vector<2x64xf32>, vector<2x64xf32>, vector<2x128xf32>
    }
    %c0_43 = arith.constant 0 : index
    %c0_44 = arith.constant 0 : index
    %44 = vector.load %arg22[%c0_43, %c0_44] : memref<128x64xf32, #tpu.memory_space<vmem>>, vector<128x64xf32>
    %cst_45 = arith.constant dense<0.000000e+00> : vector<2x64xf32>
    %45 = tpu.matmul %43#4, %44, %cst_45 {dimension_numbers = #tpu.dot_dimension_numbers<[1], [0], [0], [1], [0, 0, 1, 1], [], []>} : vector<2x128xf32>, vector<128x64xf32>, vector<2x64xf32> -> vector<2x64xf32>
    %c0_46 = arith.constant 0 : index
    %c0_47 = arith.constant 0 : index
    %46 = vector.load %arg23[%c0_46, %c0_47] : memref<1x64xf32, #tpu.memory_space<vmem>>, vector<1x64xf32>
    %47 = vector.broadcast %46 : vector<1x64xf32> to vector<2x64xf32>
    %48 = arith.addf %45, %47 : vector<2x64xf32>
    %cst_48 = arith.constant 0.000000e+00 : f32
    %49 = vector.broadcast %cst_48 : f32 to vector<2x64xf32>
    %50 = arith.maximumf %48, %49 : vector<2x64xf32>
    %c0_49 = arith.constant 0 : index
    %c0_50 = arith.constant 0 : index
    %51 = vector.load %arg24[%c0_49, %c0_50] : memref<64x64xf32, #tpu.memory_space<vmem>>, vector<64x64xf32>
    %cst_51 = arith.constant dense<0.000000e+00> : vector<2x64xf32>
    %52 = tpu.matmul %50, %51, %cst_51 {dimension_numbers = #tpu.dot_dimension_numbers<[1], [0], [0], [1], [0, 0, 1, 1], [], []>} : vector<2x64xf32>, vector<64x64xf32>, vector<2x64xf32> -> vector<2x64xf32>
    %c0_52 = arith.constant 0 : index
    %c0_53 = arith.constant 0 : index
    %53 = vector.load %arg25[%c0_52, %c0_53] : memref<1x64xf32, #tpu.memory_space<vmem>>, vector<1x64xf32>
    %54 = vector.broadcast %53 : vector<1x64xf32> to vector<2x64xf32>
    %55 = arith.addf %52, %54 : vector<2x64xf32>
    %cst_54 = arith.constant 0.000000e+00 : f32
    %56 = vector.broadcast %cst_54 : f32 to vector<2x64xf32>
    %57 = arith.maximumf %55, %56 : vector<2x64xf32>
    %c0_55 = arith.constant 0 : index
    %c0_56 = arith.constant 0 : index
    %58 = vector.load %arg26[%c0_55, %c0_56] : memref<64x4xf32, #tpu.memory_space<vmem>>, vector<64x4xf32>
    %cst_57 = arith.constant dense<0.000000e+00> : vector<2x4xf32>
    %59 = tpu.matmul %57, %58, %cst_57 {dimension_numbers = #tpu.dot_dimension_numbers<[1], [0], [0], [1], [0, 0, 1, 1], [], []>} : vector<2x64xf32>, vector<64x4xf32>, vector<2x4xf32> -> vector<2x4xf32>
    %c0_58 = arith.constant 0 : index
    %c0_59 = arith.constant 0 : index
    %60 = vector.load %arg27[%c0_58, %c0_59] : memref<1x4xf32, #tpu.memory_space<vmem>>, vector<1x4xf32>
    %61 = vector.broadcast %60 : vector<1x4xf32> to vector<2x4xf32>
    %62 = arith.addf %59, %61 : vector<2x4xf32>
    %63 = arith.negf %62 : vector<2x4xf32>
    %64 = math.exp %63 : vector<2x4xf32>
    %cst_60 = arith.constant 1.000000e+00 : f32
    %65 = vector.broadcast %cst_60 : f32 to vector<2x4xf32>
    %66 = arith.addf %65, %64 : vector<2x4xf32>
    %67 = arith.divf %65, %66 : vector<2x4xf32>
    %cst_61 = arith.constant 0.000000e+00 : f32
    %68 = vector.broadcast %cst_61 : f32 to vector<2x56xf32>
    %69 = tpu.concatenate %57, %62, %67, %68 in 1 : vector<2x64xf32>, vector<2x4xf32>, vector<2x4xf32>, vector<2x56xf32> -> vector<2x128xf32>
    %c0_62 = arith.constant 0 : index
    %c0_63 = arith.constant 0 : index
    %70 = vector.load %arg28[%c0_62, %c0_63] : memref<2x128xf32, #tpu.memory_space<vmem>>, vector<2x128xf32>
    tpu.vector_store %arg28[%c0_62, %c0_63], %69 {strides = array<i32>} : memref<2x128xf32, #tpu.memory_space<vmem>>, vector<2x128xf32>,
    return
  }
  func.func @transform_0(%arg0: i32) -> (i32, i32) {
    %c0_i32 = arith.constant 0 : i32
    %c0_i32_0 = arith.constant 0 : i32
    %c0_i32_1 = arith.constant 0 : i32
    return %c0_i32, %c0_i32_0 : i32, i32
  }
  func.func @transform_1(%arg0: i32) -> (i32, i32) {
    %c0_i32 = arith.constant 0 : i32
    %c0_i32_0 = arith.constant 0 : i32
    %c0_i32_1 = arith.constant 0 : i32
    return %c0_i32, %c0_i32_0 : i32, i32
  }
  func.func @transform_2(%arg0: i32) -> (i32, i32) {
    %c0_i32 = arith.constant 0 : i32
    %c0_i32_0 = arith.constant 0 : i32
    %c0_i32_1 = arith.constant 0 : i32
    return %c0_i32, %c0_i32_0 : i32, i32
  }
  func.func @transform_3(%arg0: i32) -> (i32, i32) {
    %c0_i32 = arith.constant 0 : i32
    %c0_i32_0 = arith.constant 0 : i32
    %c0_i32_1 = arith.constant 0 : i32
    return %c0_i32, %c0_i32_0 : i32, i32
  }
  func.func @transform_4(%arg0: i32) -> (i32, i32) {
    %c0_i32 = arith.constant 0 : i32
    %c0_i32_0 = arith.constant 0 : i32
    %c0_i32_1 = arith.constant 0 : i32
    return %c0_i32, %c0_i32_0 : i32, i32
  }
  func.func @transform_5(%arg0: i32) -> (i32, i32) {
    %c0_i32 = arith.constant 0 : i32
    %c0_i32_0 = arith.constant 0 : i32
    %c0_i32_1 = arith.constant 0 : i32
    return %c0_i32, %c0_i32_0 : i32, i32
  }
  func.func @transform_6(%arg0: i32) -> (i32, i32) {
    %c0_i32 = arith.constant 0 : i32
    %c0_i32_0 = arith.constant 0 : i32
    %c0_i32_1 = arith.constant 0 : i32
    return %c0_i32, %c0_i32_0 : i32, i32
  }
  func.func @transform_7(%arg0: i32) -> (i32, i32) {
    %c0_i32 = arith.constant 0 : i32
    %c0_i32_0 = arith.constant 0 : i32
    %c0_i32_1 = arith.constant 0 : i32
    return %c0_i32, %c0_i32_0 : i32, i32
  }
  func.func @transform_8(%arg0: i32) -> (i32, i32) {
    %c0_i32 = arith.constant 0 : i32
    %c0_i32_0 = arith.constant 0 : i32
    %c0_i32_1 = arith.constant 0 : i32
    return %c0_i32, %c0_i32_0 : i32, i32
  }
  func.func @transform_9(%arg0: i32) -> (i32, i32) {
    %c0_i32 = arith.constant 0 : i32
    %c0_i32_0 = arith.constant 0 : i32
    %c0_i32_1 = arith.constant 0 : i32
    return %c0_i32, %c0_i32_0 : i32, i32
  }
  func.func @transform_10(%arg0: i32) -> (i32, i32) {
    %c0_i32 = arith.constant 0 : i32
    %c0_i32_0 = arith.constant 0 : i32
    %c0_i32_1 = arith.constant 0 : i32
    return %c0_i32, %c0_i32_0 : i32, i32
  }
  func.func @transform_11(%arg0: i32) -> (i32, i32) {
    %c0_i32 = arith.constant 0 : i32
    %c0_i32_0 = arith.constant 0 : i32
    %c0_i32_1 = arith.constant 0 : i32
    return %c0_i32, %c0_i32_0 : i32, i32
  }
  func.func @transform_12(%arg0: i32) -> (i32, i32) {
    %c0_i32 = arith.constant 0 : i32
    %c0_i32_0 = arith.constant 0 : i32
    %c0_i32_1 = arith.constant 0 : i32
    return %c0_i32, %c0_i32_0 : i32, i32
  }
  func.func @transform_13(%arg0: i32) -> (i32, i32) {
    %c0_i32 = arith.constant 0 : i32
    %c0_i32_0 = arith.constant 0 : i32
    %c0_i32_1 = arith.constant 0 : i32
    return %c0_i32, %c0_i32_0 : i32, i32
  }
  func.func @transform_14(%arg0: i32) -> (i32, i32) {
    %c0_i32 = arith.constant 0 : i32
    %c0_i32_0 = arith.constant 0 : i32
    %c0_i32_1 = arith.constant 0 : i32
    return %c0_i32, %c0_i32_0 : i32, i32
  }
  func.func @transform_15(%arg0: i32) -> (i32, i32) {
    %c0_i32 = arith.constant 0 : i32
    %c0_i32_0 = arith.constant 0 : i32
    %c0_i32_1 = arith.constant 0 : i32
    return %c0_i32, %c0_i32_0 : i32, i32
  }
  func.func @transform_16(%arg0: i32) -> (i32, i32) {
    %c0_i32 = arith.constant 0 : i32
    %c0_i32_0 = arith.constant 0 : i32
    %c0_i32_1 = arith.constant 0 : i32
    return %c0_i32, %c0_i32_0 : i32, i32
  }
  func.func @transform_17(%arg0: i32) -> (i32, i32) {
    %c0_i32 = arith.constant 0 : i32
    %c0_i32_0 = arith.constant 0 : i32
    %c0_i32_1 = arith.constant 0 : i32
    return %c0_i32, %c0_i32_0 : i32, i32
  }
  func.func @transform_18(%arg0: i32) -> (i32, i32) {
    %c0_i32 = arith.constant 0 : i32
    %c0_i32_0 = arith.constant 0 : i32
    %c0_i32_1 = arith.constant 0 : i32
    return %c0_i32, %c0_i32_0 : i32, i32
  }
  func.func @transform_19(%arg0: i32) -> (i32, i32) {
    %c0_i32 = arith.constant 0 : i32
    %c0_i32_0 = arith.constant 0 : i32
    %c0_i32_1 = arith.constant 0 : i32
    return %c0_i32, %c0_i32_0 : i32, i32
  }
  func.func @transform_20(%arg0: i32) -> (i32, i32) {
    %c0_i32 = arith.constant 0 : i32
    %c0_i32_0 = arith.constant 0 : i32
    %c0_i32_1 = arith.constant 0 : i32
    return %c0_i32, %c0_i32_0 : i32, i32
  }
  func.func @transform_21(%arg0: i32) -> (i32, i32) {
    %c0_i32 = arith.constant 0 : i32
    %c0_i32_0 = arith.constant 0 : i32
    %c0_i32_1 = arith.constant 0 : i32
    return %c0_i32, %c0_i32_0 : i32, i32
  }
  func.func @transform_22(%arg0: i32) -> (i32, i32) {
    %c0_i32 = arith.constant 0 : i32
    %c0_i32_0 = arith.constant 0 : i32
    %c0_i32_1 = arith.constant 0 : i32
    return %c0_i32, %c0_i32_0 : i32, i32
  }
  func.func @transform_23(%arg0: i32) -> (i32, i32) {
    %c0_i32 = arith.constant 0 : i32
    %c0_i32_0 = arith.constant 0 : i32
    %c0_i32_1 = arith.constant 0 : i32
    return %c0_i32, %c0_i32_0 : i32, i32
  }
  func.func @transform_24(%arg0: i32) -> (i32, i32) {
    %c0_i32 = arith.constant 0 : i32
    %c0_i32_0 = arith.constant 0 : i32
    %c0_i32_1 = arith.constant 0 : i32
    return %c0_i32, %c0_i32_0 : i32, i32
  }
  func.func @transform_25(%arg0: i32) -> (i32, i32) {
    %c0_i32 = arith.constant 0 : i32
    %c0_i32_0 = arith.constant 0 : i32
    %c0_i32_1 = arith.constant 0 : i32
    return %c0_i32, %c0_i32_0 : i32, i32
  }
  func.func @transform_26(%arg0: i32) -> (i32, i32) {
    %c0_i32 = arith.constant 0 : i32
    %c0_i32_0 = arith.constant 0 : i32
    %c0_i32_1 = arith.constant 0 : i32
    return %c0_i32, %c0_i32_0 : i32, i32
  }
  func.func @transform_27(%arg0: i32) -> (i32, i32) {
    %c0_i32 = arith.constant 0 : i32
    %c0_i32_0 = arith.constant 0 : i32
    %c0_i32_1 = arith.constant 0 : i32
    return %c0_i32, %c0_i32_0 : i32, i32
  }
}

</mosaic_0001>

<bundles_post_ra>
// kernel: mpnn_pom_forward.1
= control target key start
LH: loop header
LB: loop body
LE: loop exit
PB: predicated region body
PF: predicated region fallthrough
CT: control target
= control target key end

     0   :  { %s6974_s0 = inlined_call_operand.vmem [shape: f32[16,32], index: 0, kind: input, shape index: {}]   ;;  %s6975_s1 = inlined_call_operand.vmem [shape: f32[32,8], index: 1, kind: input, shape index: {}]   ;;  %s6976_s2 = inlined_call_operand.vmem [shape: f32[32,16], index: 2, kind: input, shape index: {}]   ;;  %s6977_s3 = inlined_call_operand.vmem [shape: f32[16,32], index: 3, kind: input, shape index: {}]   ;;  %s6978_s4 = inlined_call_operand.vmem [shape: f32[2,16], index: 4, kind: input, shape index: {}]   ;;  %s6979_s5 = inlined_call_operand.vmem [shape: f32[16,2], index: 5, kind: input, shape index: {}]   ;;  %s6980_s6 = inlined_call_operand.vmem [shape: f32[32,32], index: 6, kind: input, shape index: {}]   ;;  %s6981_s7 = inlined_call_operand.vmem [shape: f32[1,32], index: 7, kind: input, shape index: {}]   ;;  %s6982_s8 = inlined_call_operand.hbm [shape: f32[8,64], index: 8, kind: input, shape index: {}]   ;;  %s6983_s9 = inlined_call_operand.hbm [shape: f32[1,64], index: 9, kind: input, shape index: {}]   ;;  %s6984_s10 = inlined_call_operand.hbm [shape: f32[64,1024], index: 10, kind: input, shape index: {}]   ;;  %s6985_s11 = inlined_call_operand.hbm [shape: f32[1,1024], index: 11, kind: input, shape index: {}]   ;;  %s6986_s12 = inlined_call_operand.hbm [shape: f32[1,32], index: 12, kind: input, shape index: {}]   ;;  %s6987_s13 = inlined_call_operand.hbm [shape: f32[8,32], index: 13, kind: input, shape index: {}]   ;;  %s6988_s14 = inlined_call_operand.hbm [shape: f32[1,32], index: 14, kind: input, shape index: {}]   ;;  %s6989_s15 = inlined_call_operand.hbm [shape: f32[64,192], index: 15, kind: input, shape index: {}]   ;;  %s6990_s16 = inlined_call_operand.hbm [shape: f32[1,192], index: 16, kind: input, shape index: {}]   ;;  %s6991_s17 = inlined_call_operand.vmem [shape: f32[192,256], index: 17, kind: input, shape index: {}]   ;;  %s6992_s18 = inlined_call_operand.hbm [shape: f32[1,256], index: 18, kind: input, shape index: {}]   ;;  %s6993_s19 = inlined_call_operand.hbm [shape: f32[128,256], index: 19, kind: input, shape index: {}]   ;;  %s6994_s20 = inlined_call_operand.hbm [shape: f32[1,256], index: 20, kind: input, shape index: {}]   ;;  %s6995_s21 = inlined_call_operand.vmem [shape: f32[128,64], index: 21, kind: input, shape index: {}]   ;;  %s6996_s22 = inlined_call_operand.hbm [shape: f32[1,64], index: 22, kind: input, shape index: {}]   ;;  %s6997_s23 = inlined_call_operand.hbm [shape: f32[64,64], index: 23, kind: input, shape index: {}]   ;;  %s6998_s24 = inlined_call_operand.hbm [shape: f32[1,64], index: 24, kind: input, shape index: {}]   ;;  %s6999_s25 = inlined_call_operand.vmem [shape: f32[64,4], index: 25, kind: input, shape index: {}]   ;;  %s7000_s26 = inlined_call_operand.hbm [shape: f32[1,4], index: 26, kind: input, shape index: {}]   ;;  %s7001_s27 = inlined_call_operand.vmem [shape: f32[2,128], index: 27, kind: output, shape index: {}]  }
   0x1   :  { %7056 = sst [smem:[#allocation87_spill]] %s6974_s0 }
   0x2   :  { %7057 = sst [smem:[#allocation88_spill]] %s6975_s1 }
   0x3   :  { %7058 = sst [smem:[#allocation89_spill]] %s6976_s2 }
   0x4   :  { %7059 = sst [smem:[#allocation90_spill]] %s6977_s3 }
   0x5   :  { %7060 = sst [smem:[#allocation91_spill]] %s6978_s4 }
   0x6   :  { %7061 = sst [smem:[#allocation92_spill]] %s6979_s5 }
   0x7   :  { %7062 = sst [smem:[#allocation93_spill]] %s6980_s6 }
   0x8   :  { %7063 = sst [smem:[#allocation94_spill]] %s6981_s7 }
   0x9   :  { %7064 = sst [smem:[#allocation95_spill]] %s6982_s8 }
   0xa   :  { %7065 = sst [smem:[#allocation96_spill]] %s6983_s9 }
   0xb   :  { %7066 = sst [smem:[#allocation97_spill]] %s6984_s10 }
   0xc   :  { %7067 = sst [smem:[#allocation98_spill]] %s6985_s11 }
   0xd   :  { %32 = vsyncpa [#allocation5], 0 }
   0xe   :  { %33 = vsyncpa [#allocation7], 0 }
   0xf   :  { %34 = vsyncpa [#allocation10], 0 }
  0x10   :  { %35 = vsyncpa [#allocation13], 0 }
  0x11   :  { %36 = vsyncpa [#allocation16], 0 }
  0x12   :  { %37 = vsyncpa [#allocation19], 0 }
  0x13   :  { %38 = vsyncpa [#allocation22], 0 }
  0x14   :  { %39 = vsyncpa [#allocation25], 0 }
  0x15   :  { %40 = vsyncpa [#allocation28], 0  ;;  %s5056_s7 = smov [#allocation6]   ;;  %s5057_s8 = smov [#allocation9]  }
  0x16   :  { %s73_s4 = sshll.u32 %s5056_s7, 4  ;;  %s95_s30 = sshll.u32 %s5057_s8, 4  ;;  %s74_s4 = int_to_ptr.vmem [resolvable:$true] %s73_s4  ;;  %s96_s30 = int_to_ptr.vmem [resolvable:$true] %s95_s30 }
  0x17   :  { %s7068_s28 = sld [smem:[#allocation96_spill]] }
  0x1d   :  { %s4614_s0 = scalar_lea.hbm %s7068_s28, 16 }
  0x1e   :  { %p4615_p0 = scmp.ne.s32.totalorder %s7068_s28, %s4614_s0  ;;  %p4618_p1 = scmp.lt.u32.totalorder %s4614_s0, %s7068_s28 }
  0x20   :  { %p4620_p2 = pnand %p4618_p1, %p4615_p0 }
  0x22   :  { %4623 = shalt.err (!%p4620_p2)
}
  0x23   :  { %s4624_s11 = scalar_lea.vmem %s74_s4, 16  ;;  %s4628_s2 = scalar_lea.vmem %s74_s4, 32 }
  0x24   :  { %p4625_p3 = scmp.ne.s32.totalorder %s74_s4, %s4624_s11  ;;  %p4629_p4 = scmp.lt.s32.totalorder %s74_s4, %s74_s4 }
  0x25   :  { %p4630_p5 = scmp.lt.s32.totalorder %s4628_s2, %s4624_s11 }
  0x27   :  { %p4631_p6 = por %p4630_p5, %p4629_p4 }
  0x29   :  { %p4632_p7 = pnand %p4631_p6, %p4625_p3 }
  0x2b   :  { %4635 = shalt.err (!%p4632_p7)
}
  0x2c   :  { %76 = dma.hbm_to_vmem [thread:$0]  %s7068_s28, 16, %s74_s4, [#allocation7]  }
  0x2d   :  { %s7069_s5 = sld [smem:[#allocation98_spill]] }
  0x33   :  { %s4636_s10 = scalar_lea.hbm %s7069_s5, 128 }
  0x34   :  { %p4637_p8 = scmp.ne.s32.totalorder %s7069_s5, %s4636_s10  ;;  %p4640_p9 = scmp.lt.u32.totalorder %s4636_s10, %s7069_s5 }
  0x36   :  { %p4642_p10 = pnand %p4640_p9, %p4637_p8 }
  0x38   :  { %4645 = shalt.err (!%p4642_p10)
}
  0x39   :  { %s4646_s11 = scalar_lea.vmem %s96_s30, 128  ;;  %p4651_p12 = scmp.lt.s32.totalorder %s96_s30, %s96_s30 }
  0x3a   :  { %p4647_p11 = scmp.ne.s32.totalorder %s96_s30, %s4646_s11  ;;  %p4652_p13 = scmp.lt.s32.totalorder %s4646_s11, %s4646_s11 }
  0x3c   :  { %p4653_p0 = por %p4652_p13, %p4651_p12 }
  0x3e   :  { %p4654_p1 = pnand %p4653_p0, %p4647_p11 }
  0x40   :  { %4657 = shalt.err (!%p4654_p1)
}
  0x41   :  { %98 = dma.hbm_to_vmem [thread:$0]  %s7069_s5, 128, %s96_s30, [#allocation10]  }
  0x42   :  { %s5058_s2 = smov [#allocation12]   ;;  %s5059_s7 = smov [#allocation15]  }
  0x43   :  { %s115_s3 = sshll.u32 %s5058_s2, 4  ;;  %s134_s8 = sshll.u32 %s5059_s7, 4  ;;  %s116_s3 = int_to_ptr.vmem [resolvable:$true] %s115_s3  ;;  %s5287_s8 = int_to_ptr.vmem [resolvable:$true] %s134_s8 }
  0x44   :  { %s4658_s29 = scalar_lea.hbm %s6987_s13, 128 }
  0x45   :  { %p4659_p2 = scmp.ne.s32.totalorder %s6987_s13, %s4658_s29  ;;  %p4662_p3 = scmp.lt.u32.totalorder %s4658_s29, %s6987_s13 }
  0x47   :  { %p4664_p4 = pnand %p4662_p3, %p4659_p2 }
  0x49   :  { %4667 = shalt.err (!%p4664_p4)
}
  0x4a   :  { %s4668_s30 = scalar_lea.vmem %s116_s3, 128  ;;  %p4673_p6 = scmp.lt.s32.totalorder %s116_s3, %s116_s3 }
  0x4b   :  { %p4669_p5 = scmp.ne.s32.totalorder %s116_s3, %s4668_s30  ;;  %p4674_p7 = scmp.lt.s32.totalorder %s4668_s30, %s4668_s30 }
  0x4d   :  { %p4675_p8 = por %p4674_p7, %p4673_p6 }
  0x4f   :  { %p4676_p9 = pnand %p4675_p8, %p4669_p5 }
  0x51   :  { %4679 = shalt.err (!%p4676_p9)
}
  0x52   :  { %118 = dma.hbm_to_vmem [thread:$0]  %s6987_s13, 128, %s116_s3, [#allocation13]  }
  0x53   :  { %s4680_s7 = scalar_lea.hbm %s6989_s15, 2048 }
  0x54   :  { %p4681_p10 = scmp.ne.s32.totalorder %s6989_s15, %s4680_s7  ;;  %p4684_p11 = scmp.lt.u32.totalorder %s4680_s7, %s6989_s15 }
  0x56   :  { %p4686_p12 = pnand %p4684_p11, %p4681_p10 }
  0x58   :  { %4689 = shalt.err (!%p4686_p12)
}
  0x59   :  { %s4690_s1 = scalar_lea.vmem %s5287_s8, 2048  ;;  %p4695_p0 = scmp.lt.s32.totalorder %s5287_s8, %s5287_s8 }
  0x5a   :  { %p4691_p13 = scmp.ne.s32.totalorder %s5287_s8, %s4690_s1  ;;  %p4696_p1 = scmp.lt.s32.totalorder %s4690_s1, %s4690_s1 }
  0x5c   :  { %p4697_p2 = por %p4696_p1, %p4695_p0 }
  0x5e   :  { %p4698_p3 = pnand %p4697_p2, %p4691_p13 }
  0x60   :  { %4701 = shalt.err (!%p4698_p3)
}
  0x61   :  { %s5060_s13 = smov 256   ;;  %s5061_s3 = smov 16  }
  0x62   :  { %140 = dma.hbm_to_vmem [thread:$0]  %s6989_s15, 2048, %s5287_s8, [#allocation16], %s5060_s13, %s5060_s13, %s5061_s3  }
  0x63   :  { %s5062_s30 = smov [#allocation18]   ;;  %s5063_s4 = smov [#allocation21]  }
  0x64   :  { %s159_s5 = sshll.u32 %s5062_s30, 4  ;;  %s181_s28 = sshll.u32 %s5063_s4, 4  ;;  %s160_s5 = int_to_ptr.vmem [resolvable:$true] %s159_s5  ;;  %s182_s28 = int_to_ptr.vmem [resolvable:$true] %s181_s28 }
  0x65   :  { %s4702_s9 = scalar_lea.hbm %s6992_s18, 32 }
  0x66   :  { %p4703_p4 = scmp.ne.s32.totalorder %s6992_s18, %s4702_s9  ;;  %p4706_p5 = scmp.lt.u32.totalorder %s4702_s9, %s6992_s18 }
  0x68   :  { %p4708_p6 = pnand %p4706_p5, %p4703_p4 }
  0x6a   :  { %4711 = shalt.err (!%p4708_p6)
}
  0x6b   :  { %s4712_s15 = scalar_lea.vmem %s160_s5, 32  ;;  %p4717_p8 = scmp.lt.s32.totalorder %s160_s5, %s160_s5 }
  0x6c   :  { %p4713_p7 = scmp.ne.s32.totalorder %s160_s5, %s4712_s15  ;;  %p4718_p9 = scmp.lt.s32.totalorder %s4712_s15, %s4712_s15 }
  0x6e   :  { %p4719_p10 = por %p4718_p9, %p4717_p8 }
  0x70   :  { %p4720_p11 = pnand %p4719_p10, %p4713_p7 }
  0x72   :  { %4723 = shalt.err (!%p4720_p11)
}
  0x73   :  { %162 = dma.hbm_to_vmem [thread:$0]  %s6992_s18, 32, %s160_s5, [#allocation19]  }
  0x74   :  { %s4724_s4 = scalar_lea.hbm %s6994_s20, 32 }
  0x75   :  { %p4725_p12 = scmp.ne.s32.totalorder %s6994_s20, %s4724_s4  ;;  %p4728_p13 = scmp.lt.u32.totalorder %s4724_s4, %s6994_s20 }
  0x77   :  { %p4730_p0 = pnand %p4728_p13, %p4725_p12 }
  0x79   :  { %4733 = shalt.err (!%p4730_p0)
}
  0x7a   :  { %s4734_s29 = scalar_lea.vmem %s182_s28, 32  ;;  %p4739_p2 = scmp.lt.s32.totalorder %s182_s28, %s182_s28 }
  0x7b   :  { %p4735_p1 = scmp.ne.s32.totalorder %s182_s28, %s4734_s29  ;;  %p4740_p3 = scmp.lt.s32.totalorder %s4734_s29, %s4734_s29 }
  0x7d   :  { %p4741_p4 = por %p4740_p3, %p4739_p2 }
  0x7f   :  { %p4742_p5 = pnand %p4741_p4, %p4735_p1 }
  0x81   :  { %4745 = shalt.err (!%p4742_p5)
}
  0x82   :  { %184 = dma.hbm_to_vmem [thread:$0]  %s6994_s20, 32, %s182_s28, [#allocation22]  }
  0x83   :  { %s5064_s0 = smov [#allocation24]   ;;  %s4746_s6 = scalar_lea.hbm %s6997_s23, 1024 }
  0x84   :  { %s202_s1 = sshll.u32 %s5064_s0, 4  ;;  %p4747_p6 = scmp.ne.s32.totalorder %s6997_s23, %s4746_s6  ;;  %s203_s1 = int_to_ptr.vmem [resolvable:$true] %s202_s1 }
  0x85   :  { %p4750_p7 = scmp.lt.u32.totalorder %s4746_s6, %s6997_s23 }
  0x87   :  { %p4752_p8 = pnand %p4750_p7, %p4747_p6 }
  0x89   :  { %4755 = shalt.err (!%p4752_p8)
}
  0x8a   :  { %s4756_s7 = scalar_lea.vmem %s203_s1, 1024  ;;  %p4761_p10 = scmp.lt.s32.totalorder %s203_s1, %s203_s1 }
  0x8b   :  { %p4757_p9 = scmp.ne.s32.totalorder %s203_s1, %s4756_s7  ;;  %p4762_p11 = scmp.lt.s32.totalorder %s4756_s7, %s4756_s7 }
  0x8d   :  { %p4763_p12 = por %p4762_p11, %p4761_p10 }
  0x8f   :  { %p4764_p13 = pnand %p4763_p12, %p4757_p9 }
  0x91   :  { %4767 = shalt.err (!%p4764_p13)
}
  0x92   :  { %s5065_s20 = smov 128   ;;  %s5066_s28 = smov 8  }
  0x93   :  { %208 = dma.hbm_to_vmem [thread:$0]  %s6997_s23, 1024, %s203_s1, [#allocation25], %s5065_s20, %s5065_s20, %s5066_s28  }
  0x94   :  { %s5067_s29 = smov [#allocation4]   ;;  %s5068_s5 = smov [#allocation8]  }
  0x95   :  { %s63_s18 = sshll.u32 %s5067_s29, 4  ;;  %s82_s0 = sshll.u32 %s5068_s5, 4  ;;  %s64_s18 = int_to_ptr.vmem [resolvable:$true] %s63_s18  ;;  %s83_s0 = int_to_ptr.vmem [resolvable:$true] %s82_s0 }
  0x96   :  { %s7070_s6 = sld [smem:[#allocation95_spill]] }
  0x9c   :  { %s4768_s11 = scalar_lea.hbm %s7070_s6, 128 }
  0x9d   :  { %p4769_p0 = scmp.ne.s32.totalorder %s7070_s6, %s4768_s11  ;;  %p4772_p1 = scmp.lt.u32.totalorder %s4768_s11, %s7070_s6 }
  0x9f   :  { %p4774_p2 = pnand %p4772_p1, %p4769_p0 }
  0xa1   :  { %4777 = shalt.err (!%p4774_p2)
}
  0xa2   :  { %s4778_s23 = scalar_lea.vmem %s64_s18, 128  ;;  %p4783_p4 = scmp.lt.s32.totalorder %s64_s18, %s64_s18 }
  0xa3   :  { %p4779_p3 = scmp.ne.s32.totalorder %s64_s18, %s4778_s23  ;;  %p4784_p5 = scmp.lt.s32.totalorder %s4778_s23, %s4778_s23 }
  0xa5   :  { %p4785_p6 = por %p4784_p5, %p4783_p4 }
  0xa7   :  { %p4786_p7 = pnand %p4785_p6, %p4779_p3 }
  0xa9   :  { %4789 = shalt.err (!%p4786_p7)
}
  0xaa   :  { %66 = dma.hbm_to_vmem [thread:$0]  %s7070_s6, 128, %s64_s18, [#allocation5]  }
  0xab   :  { %s7071_s10 = sld [smem:[#allocation97_spill]] }
  0xb1   :  { %s4790_s29 = scalar_lea.hbm %s7071_s10, 8192 }
  0xb2   :  { %p4791_p8 = scmp.ne.s32.totalorder %s7071_s10, %s4790_s29  ;;  %p4794_p9 = scmp.lt.u32.totalorder %s4790_s29, %s7071_s10 }
  0xb4   :  { %p4796_p10 = pnand %p4794_p9, %p4791_p8 }
  0xb6   :  { %4799 = shalt.err (!%p4796_p10)
}
  0xb7   :  { %s4800_s30 = scalar_lea.vmem %s83_s0, 8192  ;;  %p4805_p12 = scmp.lt.s32.totalorder %s83_s0, %s83_s0 }
  0xb8   :  { %p4801_p11 = scmp.ne.s32.totalorder %s83_s0, %s4800_s30  ;;  %p4806_p13 = scmp.lt.s32.totalorder %s4800_s30, %s4800_s30 }
  0xba   :  { %p4807_p0 = por %p4806_p13, %p4805_p12 }
  0xbc   :  { %p4808_p1 = pnand %p4807_p0, %p4801_p11 }
  0xbe   :  { %4811 = shalt.err (!%p4808_p1)
}
  0xbf   :  { %s5069_s18 = smov 1024   ;;  %s5070_s6 = smov 64  }
  0xc0   :  { %88 = dma.hbm_to_vmem [thread:$0]  %s7071_s10, 8192, %s83_s0, [#allocation7], %s5069_s18, %s5069_s18, %s5070_s6  }
  0xc1   :  { %s5071_s7 = smov [#allocation11]   ;;  %s5072_s1 = smov [#allocation14]  }
  0xc2   :  { %s105_s23 = sshll.u32 %s5071_s7, 4  ;;  %s125_s20 = sshll.u32 %s5072_s1, 4  ;;  %s106_s23 = int_to_ptr.vmem [resolvable:$true] %s105_s23  ;;  %s126_s20 = int_to_ptr.vmem [resolvable:$true] %s125_s20 }
  0xc3   :  { %s4812_s29 = scalar_lea.hbm %s6986_s12, 16 }
  0xc4   :  { %p4813_p2 = scmp.ne.s32.totalorder %s6986_s12, %s4812_s29  ;;  %p4816_p3 = scmp.lt.u32.totalorder %s4812_s29, %s6986_s12 }
  0xc6   :  { %p4818_p4 = pnand %p4816_p3, %p4813_p2 }
  0xc8   :  { %4821 = shalt.err (!%p4818_p4)
}
  0xc9   :  { %s4822_s0 = scalar_lea.vmem %s106_s23, 16  ;;  %s4826_s10 = scalar_lea.vmem %s106_s23, 32 }
  0xca   :  { %p4823_p5 = scmp.ne.s32.totalorder %s106_s23, %s4822_s0  ;;  %p4827_p6 = scmp.lt.s32.totalorder %s106_s23, %s106_s23 }
  0xcb   :  { %p4828_p7 = scmp.lt.s32.totalorder %s4826_s10, %s4822_s0 }
  0xcd   :  { %p4829_p8 = por %p4828_p7, %p4827_p6 }
  0xcf   :  { %p4830_p9 = pnand %p4829_p8, %p4823_p5 }
  0xd1   :  { %4833 = shalt.err (!%p4830_p9)
}
  0xd2   :  { %108 = dma.hbm_to_vmem [thread:$0]  %s6986_s12, 16, %s106_s23, [#allocation10]  }
  0xd3   :  { %s4834_s7 = scalar_lea.hbm %s6988_s14, 16 }
  0xd4   :  { %p4835_p10 = scmp.ne.s32.totalorder %s6988_s14, %s4834_s7  ;;  %p4838_p11 = scmp.lt.u32.totalorder %s4834_s7, %s6988_s14 }
  0xd6   :  { %p4840_p12 = pnand %p4838_p11, %p4835_p10 }
  0xd8   :  { %4843 = shalt.err (!%p4840_p12)
}
  0xd9   :  { %s4844_s5 = scalar_lea.vmem %s126_s20, 16  ;;  %s4848_s15 = scalar_lea.vmem %s126_s20, 32 }
  0xda   :  { %p4845_p13 = scmp.ne.s32.totalorder %s126_s20, %s4844_s5  ;;  %p4849_p0 = scmp.lt.s32.totalorder %s126_s20, %s126_s20 }
  0xdb   :  { %p4850_p1 = scmp.lt.s32.totalorder %s4848_s15, %s4844_s5 }
  0xdd   :  { %p4851_p2 = por %p4850_p1, %p4849_p0 }
  0xdf   :  { %p4852_p3 = pnand %p4851_p2, %p4845_p13 }
  0xe1   :  { %4855 = shalt.err (!%p4852_p3)
}
  0xe2   :  { %128 = dma.hbm_to_vmem [thread:$0]  %s6988_s14, 16, %s126_s20, [#allocation13]  }
  0xe3   :  { %s5073_s8 = smov [#allocation17]   ;;  %s5074_s0 = smov [#allocation20]  }
  0xe4   :  { %s147_s11 = sshll.u32 %s5073_s8, 4  ;;  %s168_s10 = sshll.u32 %s5074_s0, 4  ;;  %s148_s11 = int_to_ptr.vmem [resolvable:$true] %s147_s11  ;;  %s169_s10 = int_to_ptr.vmem [resolvable:$true] %s168_s10 }
  0xe5   :  { %s4856_s4 = scalar_lea.hbm %s6990_s16, 32 }
  0xe6   :  { %p4857_p4 = scmp.ne.s32.totalorder %s6990_s16, %s4856_s4  ;;  %p4860_p5 = scmp.lt.u32.totalorder %s4856_s4, %s6990_s16 }
  0xe8   :  { %p4862_p6 = pnand %p4860_p5, %p4857_p4 }
  0xea   :  { %4865 = shalt.err (!%p4862_p6)
}
  0xeb   :  { %s4866_s14 = scalar_lea.vmem %s148_s11, 32  ;;  %p4871_p8 = scmp.lt.s32.totalorder %s148_s11, %s148_s11 }
  0xec   :  { %p4867_p7 = scmp.ne.s32.totalorder %s148_s11, %s4866_s14  ;;  %p4872_p9 = scmp.lt.s32.totalorder %s4866_s14, %s4866_s14 }
  0xee   :  { %p4873_p10 = por %p4872_p9, %p4871_p8 }
  0xf0   :  { %p4874_p11 = pnand %p4873_p10, %p4867_p7 }
  0xf2   :  { %4877 = shalt.err (!%p4874_p11)
}
  0xf3   :  { %150 = dma.hbm_to_vmem [thread:$0]  %s6990_s16, 32, %s148_s11, [#allocation16]  }
  0xf4   :  { %s4878_s15 = scalar_lea.hbm %s6993_s19, 4096 }
  0xf5   :  { %p4879_p12 = scmp.ne.s32.totalorder %s6993_s19, %s4878_s15  ;;  %p4882_p13 = scmp.lt.u32.totalorder %s4878_s15, %s6993_s19 }
  0xf7   :  { %p4884_p0 = pnand %p4882_p13, %p4879_p12 }
  0xf9   :  { %4887 = shalt.err (!%p4884_p0)
}
  0xfa   :  { %s4888_s30 = scalar_lea.vmem %s169_s10, 4096  ;;  %p4893_p2 = scmp.lt.s32.totalorder %s169_s10, %s169_s10 }
  0xfb   :  { %p4889_p1 = scmp.ne.s32.totalorder %s169_s10, %s4888_s30  ;;  %p4894_p3 = scmp.lt.s32.totalorder %s4888_s30, %s4888_s30 }
  0xfd   :  { %p4895_p4 = por %p4894_p3, %p4893_p2 }
  0xff   :  { %p4896_p5 = pnand %p4895_p4, %p4889_p1 }
 0x101   :  { %4899 = shalt.err (!%p4896_p5)
}
 0x102   :  { %174 = dma.hbm_to_vmem [thread:$0]  %s6993_s19, 4096, %s169_s10, [#allocation19], %s5060_s13, %s5060_s13, %s5061_s3  }
 0x103   :  { %s5075_s18 = smov [#allocation23]   ;;  %s5076_s2 = smov [#allocation26]  }
 0x104   :  { %s193_s4 = sshll.u32 %s5075_s18, 4  ;;  %s215_s7 = sshll.u32 %s5076_s2, 4  ;;  %s194_s4 = int_to_ptr.vmem [resolvable:$true] %s193_s4  ;;  %s216_s7 = int_to_ptr.vmem [resolvable:$true] %s215_s7 }
 0x105   :  { %s4900_s14 = scalar_lea.hbm %s6996_s22, 16 }
 0x106   :  { %p4901_p6 = scmp.ne.s32.totalorder %s6996_s22, %s4900_s14  ;;  %p4904_p7 = scmp.lt.u32.totalorder %s4900_s14, %s6996_s22 }
 0x108   :  { %p4906_p8 = pnand %p4904_p7, %p4901_p6 }
 0x10a   :  { %4909 = shalt.err (!%p4906_p8)
}
 0x10b   :  { %s4910_s19 = scalar_lea.vmem %s194_s4, 16  ;;  %s4914_s13 = scalar_lea.vmem %s194_s4, 32 }
 0x10c   :  { %p4911_p9 = scmp.ne.s32.totalorder %s194_s4, %s4910_s19  ;;  %p4915_p10 = scmp.lt.s32.totalorder %s194_s4, %s194_s4 }
 0x10d   :  { %p4916_p11 = scmp.lt.s32.totalorder %s4914_s13, %s4910_s19 }
 0x10f   :  { %p4917_p12 = por %p4916_p11, %p4915_p10 }
 0x111   :  { %p4918_p13 = pnand %p4917_p12, %p4911_p9 }
 0x113   :  { %4921 = shalt.err (!%p4918_p13)
}
 0x114   :  { %196 = dma.hbm_to_vmem [thread:$0]  %s6996_s22, 16, %s194_s4, [#allocation22]  }
 0x115   :  { %s4922_s23 = scalar_lea.hbm %s6998_s24, 16 }
 0x116   :  { %p4923_p0 = scmp.ne.s32.totalorder %s6998_s24, %s4922_s23  ;;  %p4926_p1 = scmp.lt.u32.totalorder %s4922_s23, %s6998_s24 }
 0x118   :  { %p4928_p2 = pnand %p4926_p1, %p4923_p0 }
 0x11a   :  { %4931 = shalt.err (!%p4928_p2)
}
 0x11b   :  { %s4932_s11 = scalar_lea.vmem %s216_s7, 16  ;;  %s4936_s18 = scalar_lea.vmem %s216_s7, 32 }
 0x11c   :  { %p4933_p3 = scmp.ne.s32.totalorder %s216_s7, %s4932_s11  ;;  %p4937_p4 = scmp.lt.s32.totalorder %s216_s7, %s216_s7 }
 0x11d   :  { %p4938_p5 = scmp.lt.s32.totalorder %s4936_s18, %s4932_s11 }
 0x11f   :  { %p4939_p6 = por %p4938_p5, %p4937_p4 }
 0x121   :  { %p4940_p7 = pnand %p4939_p6, %p4933_p3 }
 0x123   :  { %4943 = shalt.err (!%p4940_p7)
}
 0x124   :  { %218 = dma.hbm_to_vmem [thread:$0]  %s6998_s24, 16, %s216_s7, [#allocation25]  }
 0x125   :  { %s5077_s2 = smov [#allocation27]   ;;  %s4944_s20 = scalar_lea.hbm %s7000_s26, 16 }
 0x126   :  { %s227_s1 = sshll.u32 %s5077_s2, 4  ;;  %p4945_p8 = scmp.ne.s32.totalorder %s7000_s26, %s4944_s20  ;;  %s228_s1 = int_to_ptr.vmem [resolvable:$true] %s227_s1 }
 0x127   :  { %p4948_p9 = scmp.lt.u32.totalorder %s4944_s20, %s7000_s26 }
 0x129   :  { %p4950_p10 = pnand %p4948_p9, %p4945_p8 }
 0x12b   :  { %4953 = shalt.err (!%p4950_p10)
}
 0x12c   :  { %s4954_s13 = scalar_lea.vmem %s228_s1, 16  ;;  %s4958_s24 = scalar_lea.vmem %s228_s1, 32 }
 0x12d   :  { %p4955_p11 = scmp.ne.s32.totalorder %s228_s1, %s4954_s13  ;;  %p4959_p12 = scmp.lt.s32.totalorder %s228_s1, %s228_s1 }
 0x12e   :  { %p4960_p13 = scmp.lt.s32.totalorder %s4958_s24, %s4954_s13 }
 0x130   :  { %p4961_p0 = por %p4960_p13, %p4959_p12 }
 0x132   :  { %p4962_p1 = pnand %p4961_p0, %p4955_p11 }
 0x134   :  { %4965 = shalt.err (!%p4962_p1)
}
 0x135   :  { %230 = dma.hbm_to_vmem [thread:$0]  %s7000_s26, 16, %s228_s1, [#allocation28]  }
 0x136   :  { %5002 = dma.done.wait [#allocation5], 128  }
 0x137   :  { %5003 = vsyncadd [#allocation5], 4294967168 }
 0x138   :  { %5004 = dma.done.wait [#allocation7], 8208  }
 0x139   :  { %5005 = vsyncadd [#allocation7], 4294959088 }
 0x13a   :  { %5006 = dma.done.wait [#allocation10], 144  }
 0x13b   :  { %5007 = vsyncadd [#allocation10], 4294967152 }
 0x13c   :  { %5008 = dma.done.wait [#allocation13], 144  }
 0x13d   :  { %5009 = vsyncadd [#allocation13], 4294967152 }
 0x13e   :  { %5010 = dma.done.wait [#allocation16], 2080  }
 0x13f   :  { %5011 = vsyncadd [#allocation16], 4294965216 }
 0x140   :  { %5012 = dma.done.wait [#allocation19], 4128  }
 0x141   :  { %5013 = vsyncadd [#allocation19], 4294963168 }
 0x142   :  { %5014 = dma.done.wait [#allocation22], 48  }
 0x143   :  { %5015 = vsyncadd [#allocation22], 4294967248 }
 0x144   :  { %5016 = dma.done.wait [#allocation25], 1040  }
 0x145   :  { %5017 = vsyncadd [#allocation25], 4294966256 }
 0x146   :  { %5018 = dma.done.wait [#allocation28], 16  }
 0x147   :  { %5019 = vsyncadd [#allocation28], 4294967280  ;;  %vm291_vm0 = vcmask 64512   ;;  %v283_v0 = vld [vmem:[#allocation4] sm:$0xff]  ;;  %s7072_s15 = sld [smem:[#allocation88_spill]]  ;;  %v394_v4 = vld [vmem:[#allocation8 + $0x8] sm:$0xff] }
 0x148   :  { %3902 = vmatprep.subr.mxu0 %v283_v0  ;;  %v402_v6 = vld [vmem:[#allocation8 + $0x48] sm:$0xff]  ;;  %v393_v7 = vld [vmem:[#allocation8] sm:$0xff]  ;;  %v396_v11 = vld [vmem:[#allocation8 + $0x18] sm:$0xff]  ;;  %v7014_v58 = vmov 0.0   ;;  %vm499_vm1 = vcmask 523264   ;;  %s7077_s22 = sld [smem:[#allocation93_spill]] }
 0x149   :  { %3903 = vmatpush3.msra.mxu0 %v283_v0  ;;  %v401_v8 = vld [vmem:[#allocation8 + $0x40] sm:$0xff]  ;;  %v4056_v9 = vpack.c.bf16 %v402_v6, %v394_v4  ;;  %v404_v12 = vld [vmem:[#allocation8 + $0x58] sm:$0xff]  ;;  %v395_v13 = vld [vmem:[#allocation8 + $0x10] sm:$0xff]  ;;  %576 = vmatprep.mubr.f32.mxu1 %v7014_v58  ;;  %s7078_s5 = sld [smem:[#allocation87_spill]]  ;;  %vm913_vm2 = vcmask 261120   ;;  %s7081_s3 = sld [smem:[#allocation94_spill]] }
 0x14a   :  { %v4058_v10 = vpack.c.bf16 %v401_v8, %v393_v7  ;;  %v4072_v14 = vpack.c.bf16 %v404_v12, %v396_v11  ;;  %v403_v15 = vld [vmem:[#allocation8 + $0x50] sm:$0xff]  ;;  %v410_v16 = vld [vmem:[#allocation8 + $0x88] sm:$0xff]  ;;  %v409_v20 = vld [vmem:[#allocation8 + $0x80] sm:$0xff]  ;;  %s5574_s26 = smov 0  }
 0x14b   :  { %v418_v17 = vld [vmem:[#allocation8 + $0xc8] sm:$0xff]  ;;  %4057 = vmatprep.subr.bf16.mxu1 %v4056_v9  ;;  %v4074_v18 = vpack.c.bf16 %v403_v15, %v395_v13  ;;  %v417_v21 = vld [vmem:[#allocation8 + $0xc0] sm:$0xff]  ;;  %v412_v22 = vld [vmem:[#allocation8 + $0x98] sm:$0xff] }
 0x14c   :  { %v4060_v19 = vpack.c.bf16 %v418_v17, %v410_v16  ;;  %4059 = vmatpush1.bf16.msra.mxu1 %v4058_v10  ;;  %4073 = vmatprep.subr.bf16.mxu0 %v4072_v14  ;;  %v4062_v23 = vpack.c.bf16 %v417_v21, %v409_v20  ;;  %v420_v24 = vld [vmem:[#allocation8 + $0xd8] sm:$0xff]  ;;  %v411_v25 = vld [vmem:[#allocation8 + $0x90] sm:$0xff]  ;;  %v426_v28 = vld [vmem:[#allocation8 + $0x108] sm:$0xff] }
 0x14d   :  { %v5472_v1 = vld [vmem:[%s7072_s15] sm:$0xff]  ;;  %v5477_v2 = vld [vmem:[%s7072_s15 + $0x8] sm:$0xff]  ;;  %v5484_v3 = vld [vmem:[%s7072_s15 + $0x10] sm:$0xff]  ;;  %v4076_v27 = vpack.c.bf16 %v420_v24, %v412_v22 }
 0x14e   :  { %7073 = vst [vmem:[#allocation38_spill] sm:$0xff] %v5472_v1  ;;  %7074 = vst [vmem:[#allocation39_spill] sm:$0xff] %v5477_v2  ;;  %3904 = vmatprep.mubr.msk.f32.mxu0 %vm291_vm0, %v5472_v1  ;;  %v5489_v5 = vld [vmem:[%s7072_s15 + $0x18] sm:$0xff]  ;;  %v419_v26 = vld [vmem:[#allocation8 + $0xd0] sm:$0xff]  ;;  %4061 = vmatprep.subr.bf16.mxu1 %v4060_v19 }
 0x14f   :  { %7075 = vst [vmem:[#allocation40_spill] sm:$0xff] %v5484_v3  ;;  %7076 = vst [vmem:[#allocation41_spill] sm:$0xff] %v5489_v5  ;;  %3905 = vmatmul.mubr.msk.f32.vlgmr.msra.gmra.mrb[0].mxu0 %vm291_vm0, %v5477_v2  ;;  %v434_v29 = vld [vmem:[#allocation8 + $0x148] sm:$0xff]  ;;  %v425_v30 = vld [vmem:[#allocation8 + $0x100] sm:$0xff]  ;;  %v4078_v31 = vpack.c.bf16 %v419_v26, %v411_v25 }
 0x150   :  { %3907 = vmatprep.mubr.msk.f32.mxu0 %vm291_vm0, %v5484_v3  ;;  %4075 = vmatpush1.bf16.msra.mxu0 %v4074_v18  ;;  %v4064_v32 = vpack.c.bf16 %v434_v29, %v426_v28  ;;  %v433_v33 = vld [vmem:[#allocation8 + $0x140] sm:$0xff]  ;;  %v428_v34 = vld [vmem:[#allocation8 + $0x118] sm:$0xff]  ;;  %v427_v37 = vld [vmem:[#allocation8 + $0x110] sm:$0xff] }
 0x151   :  { %v436_v35 = vld [vmem:[#allocation8 + $0x158] sm:$0xff]  ;;  %4077 = vmatprep.subr.bf16.mxu0 %v4076_v27  ;;  %v435_v38 = vld [vmem:[#allocation8 + $0x150] sm:$0xff]  ;;  %4063 = vmatpush1.bf16.msra.mxu1 %v4062_v23  ;;  %v4066_v39 = vpack.c.bf16 %v433_v33, %v425_v30  ;;  %v442_v41 = vld [vmem:[#allocation8 + $0x188] sm:$0xff] }
 0x152   :  { %v4080_v36 = vpack.c.bf16 %v436_v35, %v428_v34  ;;  %4065 = vmatprep.subr.bf16.mxu1 %v4064_v32  ;;  %v4082_v40 = vpack.c.bf16 %v435_v38, %v427_v37  ;;  %v450_v42 = vld [vmem:[#allocation8 + $0x1c8] sm:$0xff]  ;;  %v444_v43 = vld [vmem:[#allocation8 + $0x198] sm:$0xff]  ;;  %v441_v45 = vld [vmem:[#allocation8 + $0x180] sm:$0xff] }
 0x153   :  { %3908 = vmatmul.mubr.msk.f32.gmra.mrb[2].mxu0 %vm291_vm0, %v5489_v5  ;;  %v4068_v44 = vpack.c.bf16 %v450_v42, %v442_v41  ;;  %v449_v46 = vld [vmem:[#allocation8 + $0x1c0] sm:$0xff]  ;;  %v452_v48 = vld [vmem:[#allocation8 + $0x1d8] sm:$0xff]  ;;  %v443_v49 = vld [vmem:[#allocation8 + $0x190] sm:$0xff] }
 0x154   :  { %4079 = vmatpush1.bf16.msra.mxu0 %v4078_v31  ;;  %v4070_v47 = vpack.c.bf16 %v449_v46, %v441_v45  ;;  %v451_v50 = vld [vmem:[#allocation8 + $0x1d0] sm:$0xff]  ;;  %v4084_v51 = vpack.c.bf16 %v452_v48, %v444_v43  ;;  %v398_v53 = vld [vmem:[#allocation8 + $0x28] sm:$0xff]  ;;  %v400_v55 = vld [vmem:[#allocation8 + $0x38] sm:$0xff]  ;;  %665 = vmatprep.mubr.f32.mxu0 %v7014_v58 }
 0x155   :  { %4081 = vmatprep.subr.bf16.mxu0 %v4080_v36  ;;  %4067 = vmatpush1.bf16.msra.mxu1 %v4066_v39  ;;  %v4086_v52 = vpack.c.bf16 %v451_v50, %v443_v49  ;;  %v406_v54 = vld [vmem:[#allocation8 + $0x68] sm:$0xff]  ;;  %v408_v57 = vld [vmem:[#allocation8 + $0x78] sm:$0xff]  ;;  %v397_v61 = vld [vmem:[#allocation8 + $0x20] sm:$0xff] }
 0x156   :  { %4069 = vmatprep.subr.bf16.mxu1 %v4068_v44  ;;  %v4088_v56 = vpack.c.bf16 %v406_v54, %v398_v53  ;;  %v4104_v59 = vpack.c.bf16 %v408_v57, %v400_v55  ;;  %v3758_v60 = vld [vmem:[#allocation6] ss:$0 sm:$0xff]  ;;  %v405_v63 = vld [vmem:[#allocation8 + $0x60] sm:$0xff]  ;;  %v399_v0 = vld [vmem:[#allocation8 + $0x30] sm:$0xff] }
 0x157   :  { %v407_v4 = vld [vmem:[#allocation8 + $0x70] sm:$0xff]  ;;  %v414_v7 = vld [vmem:[#allocation8 + $0xa8] sm:$0xff]  ;;  %v416_v10 = vld [vmem:[#allocation8 + $0xb8] sm:$0xff]  ;;  %v4090_v12 = vpack.c.bf16 %v405_v63, %v397_v61 }
 0x158   :  { %4083 = vmatpush1.bf16.msra.mxu0 %v4082_v40  ;;  %v422_v9 = vld [vmem:[#allocation8 + $0xe8] sm:$0xff]  ;;  %v424_v11 = vld [vmem:[#allocation8 + $0xf8] sm:$0xff]  ;;  %v4106_v13 = vpack.c.bf16 %v407_v4, %v399_v0  ;;  %v413_v14 = vld [vmem:[#allocation8 + $0xa0] sm:$0xff]  ;;  %v459_v0 = vlaneseq }
 0x159   :  { %4071 = vmatpush1.bf16.msra.mxu1 %v4070_v47  ;;  %4085 = vmatprep.subr.bf16.mxu0 %v4084_v51  ;;  %v421_v18 = vld [vmem:[#allocation8 + $0xe0] sm:$0xff]  ;;  %v415_v19 = vld [vmem:[#allocation8 + $0xb0] sm:$0xff]  ;;  %v4092_v22 = vpack.c.bf16 %v422_v9, %v414_v7  ;;  %v4108_v23 = vpack.c.bf16 %v424_v11, %v416_v10  ;;  %v430_v24 = vld [vmem:[#allocation8 + $0x128] sm:$0xff] }
 0x15a   :  { %4089 = vmatprep.subr.bf16.mxu1 %v4088_v56  ;;  %v423_v20 = vld [vmem:[#allocation8 + $0xf0] sm:$0xff]  ;;  %v438_v26 = vld [vmem:[#allocation8 + $0x168] sm:$0xff]  ;;  %v432_v27 = vld [vmem:[#allocation8 + $0x138] sm:$0xff]  ;;  %v4094_v29 = vpack.c.bf16 %v421_v18, %v413_v14  ;;  %v460_v4 = vshrl.u32 %v459_v0, 7 }
 0x15b   :  { %v440_v28 = vld [vmem:[#allocation8 + $0x178] sm:$0xff]  ;;  %v4110_v30 = vpack.c.bf16 %v423_v20, %v415_v19  ;;  %v429_v31 = vld [vmem:[#allocation8 + $0x120] sm:$0xff]  ;;  %v431_v34 = vld [vmem:[#allocation8 + $0x130] sm:$0xff]  ;;  %v4096_v36 = vpack.c.bf16 %v438_v26, %v430_v24 }
 0x15c   :  { %4087 = vmatpush1.bf16.msra.mxu0 %v4086_v52  ;;  %v437_v33 = vld [vmem:[#allocation8 + $0x160] sm:$0xff]  ;;  %v439_v35 = vld [vmem:[#allocation8 + $0x170] sm:$0xff]  ;;  %v4112_v37 = vpack.c.bf16 %v440_v28, %v432_v27  ;;  %v446_v38 = vld [vmem:[#allocation8 + $0x1a8] sm:$0xff]  ;;  %v469_v7 = vsub.s32 2, %v460_v4  ;;  %v5563_v9 = vsub.s32 1, %v460_v4  ;;  %v473_v10 = vsub.s32 3, %v460_v4 }
 0x15d   :  { %4105 = vmatprep.subr.bf16.mxu0 %v4104_v59  ;;  %v454_v40 = vld [vmem:[#allocation8 + $0x1e8] sm:$0xff]  ;;  %v448_v41 = vld [vmem:[#allocation8 + $0x1b8] sm:$0xff]  ;;  %v4098_v43 = vpack.c.bf16 %v437_v33, %v429_v31  ;;  %v4114_v44 = vpack.c.bf16 %v439_v35, %v431_v34  ;;  %v445_v45 = vld [vmem:[#allocation8 + $0x1a0] sm:$0xff] }
 0x15e   :  { %v456_v42 = vld [vmem:[#allocation8 + $0x1f8] sm:$0xff]  ;;  %v453_v47 = vld [vmem:[#allocation8 + $0x1e0] sm:$0xff]  ;;  %v447_v48 = vld [vmem:[#allocation8 + $0x1b0] sm:$0xff]  ;;  %v4100_v50 = vpack.c.bf16 %v454_v40, %v446_v38  ;;  %7080 = vst [vmem:[#allocation43_spill] sm:$0xff] %v5563_v9  ;;  %v485_v38 = vsub.s32 6, %v460_v4 }
 0x15f   :  { %v455_v49 = vld [vmem:[#allocation8 + $0x1f0] sm:$0xff]  ;;  %v4116_v51 = vpack.c.bf16 %v456_v42, %v448_v41  ;;  %v902_v52 = vld [vmem:[%s7077_s22] sm:$0xff]  ;;  %v4102_v54 = vpack.c.bf16 %v453_v47, %v445_v45  ;;  %v481_v41 = vsub.s32 5, %v460_v4  ;;  %v489_v42 = vsub.s32 7, %v460_v4 }
 0x160   :  { %v903_v53 = vld [vmem:[%s7077_s22 + $0x8] sm:$0xff]  ;;  %v4118_v55 = vpack.c.bf16 %v455_v49, %v447_v48  ;;  %v904_v59 = vld [vmem:[%s7077_s22 + $0x10] sm:$0xff] }
 0x161   :  { %v4120_v57 = vpack.c.bf16 %v903_v53, %v902_v52  ;;  %v901_v63 = vld [vmem:[%s7078_s5 + $0x8] sm:$0xff] }
 0x222   :  { %v3906_v62 = vpop.f32.mrb[0].mxu0 }
 0x223   :  { %v370_v6 = vpop.f32.mrb[1].mxu0  ;;  %v376_v15 = vadd.f32 %v3906_v62, %v3758_v60  ;;  %v900_v62 = vld [vmem:[%s7078_s5] sm:$0xff] }
 0x224   :  { %v371_v8 = vadd.f32 %v3758_v60, %v370_v6  ;;  %v5561_v6 = vsub.s32 0, %v460_v4 }
 0x225   :  { %v5505_v32 = vmax.f32 %v376_v15, 0.0 }
 0x226   :  { %v5499_v16 = vmax.f32 %v371_v8, 0.0  ;;  %v3909_v17 = vpop.f32.mrb[2].mxu0  ;;  %7079 = vst [vmem:[#allocation42_spill] sm:$0xff] %v5561_v6  ;;  %v457_v8 = vld [vmem:[#allocation9] sm:$0xff] }
 0x227   :  { %v380_v21 = vpop.f32.mrb[3].mxu0  ;;  %v386_v46 = vadd.f32 %v3909_v17, %v3758_v60  ;;  %v462_v11 = vrot.slane %v457_v8, %v5561_v6  ;;  %v474_v14 = vrot.slane %v457_v8, %v473_v10  ;;  %v482_v53 = vrot.slane %v457_v8, %v481_v41 }
 0x228   :  { %3763 = vmatmul.mubr.msk.f32.vlgmr.msra.gmra.mrb[0].mxu1 %vm499_vm1, %v5499_v16  ;;  %3767 = vmatmul.mubr.msk.f32.vlgmr.msra.gmra.mrb[4].mxu0 %vm499_vm1, %v5499_v16  ;;  %v381_v25 = vadd.f32 %v3758_v60, %v380_v21  ;;  %v905_v60 = vld [vmem:[%s7077_s22 + $0x18] sm:$0xff] }
 0x229   :  { %4091 = vmatpush1.bf16.msra.mxu1 %v4090_v12  ;;  %4107 = vmatpush1.bf16.msra.mxu0 %v4106_v13  ;;  %v392_v56 = vmax.f32 %v386_v46, 0.0  ;;  %v4124_v61 = vpack.c.bf16 %v905_v60, %v904_v59  ;;  %v470_v12 = vrot.slane %v457_v8, %v469_v7  ;;  %v466_v13 = vrot.slane %v457_v8, %v5563_v9 }
 0x22a   :  { %582 = vmatprep.mubr.f32.mxu1 %v7014_v58  ;;  %671 = vmatprep.mubr.f32.mxu0 %v7014_v58  ;;  %v391_v39 = vmax.f32 %v381_v25, 0.0 }
 0x22b   :  { %4093 = vmatprep.subr.bf16.mxu1 %v4092_v22  ;;  %4109 = vmatprep.subr.bf16.mxu0 %v4108_v23 }
 0x22c   :  { %3764 = vmatmul.mubr.msk.f32.gmra.mrb[2].mxu1 %vm499_vm1, %v5505_v32  ;;  %3768 = vmatmul.mubr.msk.f32.gmra.mrb[6].mxu0 %vm499_vm1, %v5505_v32 }
 0x22d   :  { %4095 = vmatpush1.bf16.msra.mxu1 %v4094_v29  ;;  %4111 = vmatpush1.bf16.msra.mxu0 %v4110_v30 }
 0x22e   :  { %588 = vmatprep.mubr.f32.mxu1 %v7014_v58  ;;  %677 = vmatprep.mubr.f32.mxu0 %v7014_v58 }
 0x22f   :  { %4097 = vmatprep.subr.bf16.mxu1 %v4096_v36  ;;  %4113 = vmatprep.subr.bf16.mxu0 %v4112_v37  ;;  %v477_v37 = vsub.s32 4, %v460_v4 }
 0x230   :  { %3765 = vmatmul.mubr.msk.f32.gmra.mrb[4].mxu1 %vm499_vm1, %v391_v39  ;;  %3769 = vmatmul.mubr.msk.f32.gmra.mrb[8].mxu0 %vm499_vm1, %v391_v39 }
 0x231   :  { %4099 = vmatpush1.bf16.msra.mxu1 %v4098_v43  ;;  %4115 = vmatpush1.bf16.msra.mxu0 %v4114_v44  ;;  %v478_v49 = vrot.slane %v457_v8, %v477_v37 }
 0x232   :  { %594 = vmatprep.mubr.f32.mxu1 %v7014_v58  ;;  %683 = vmatprep.mubr.f32.mxu0 %v7014_v58 }
 0x233   :  { %4101 = vmatprep.subr.bf16.mxu1 %v4100_v50  ;;  %4117 = vmatprep.subr.bf16.mxu0 %v4116_v51  ;;  %v486_v50 = vrot.slane %v457_v8, %v485_v38 }
 0x234   :  { %3766 = vmatmul.mubr.msk.f32.gmra.mrb[6].mxu1 %vm499_vm1, %v392_v56  ;;  %3770 = vmatmul.mubr.msk.f32.gmra.mrb[10].mxu0 %vm499_vm1, %v392_v56 }
 0x235   :  { %4103 = vmatpush1.bf16.msra.mxu1 %v4102_v54  ;;  %4119 = vmatpush1.bf16.msra.mxu0 %v4118_v55  ;;  %v490_v54 = vrot.slane %v457_v8, %v489_v42 }
 0x236   :  { %754 = vmatprep.mubr.f32.mxu1 %v7014_v58  ;;  %843 = vmatprep.mubr.f32.mxu0 %v7014_v58 }
 0x237   :  { %4121 = vmatprep.subr.bf16.mxu1 %v4120_v57 }
 0x238   :  { %3771 = vmatmul.mubr.msk.f32.vlgmr.msra.gmra.mrb[8].mxu1 %vm499_vm1, %v5499_v16  ;;  %3775 = vmatmul.mubr.msk.f32.vlgmr.msra.gmra.mrb[12].mxu0 %vm499_vm1, %v5499_v16 }
 0x239   :  { %4123 = vmatpush3.bf16.msra.mxu1 %v4120_v57  ;;  %760 = vmatprep.mubr.f32.mxu1 %v7014_v58 }
 0x23a   :  { %849 = vmatprep.mubr.f32.mxu0 %v7014_v58  ;;  %4125 = vmatprep.subr.bf16.mxu1 %v4124_v61 }
 0x23c   :  { %3772 = vmatmul.mubr.msk.f32.gmra.mrb[10].mxu1 %vm499_vm1, %v5505_v32  ;;  %3776 = vmatmul.mubr.msk.f32.gmra.mrb[14].mxu0 %vm499_vm1, %v5505_v32 }
 0x23d   :  { %766 = vmatprep.mubr.f32.mxu1 %v7014_v58  ;;  %855 = vmatprep.mubr.f32.mxu0 %v7014_v58 }
 0x23e   :  { %4127 = vmatpush3.bf16.msra.mxu1 %v4124_v61 }
 0x240   :  { %3773 = vmatmul.mubr.msk.f32.gmra.mrb[12].mxu1 %vm499_vm1, %v391_v39  ;;  %3777 = vmatmul.mubr.msk.f32.gmra.mrb[16].mxu0 %vm499_vm1, %v391_v39 }
 0x241   :  { %772 = vmatprep.mubr.f32.mxu1 %v7014_v58  ;;  %861 = vmatprep.mubr.f32.mxu0 %v7014_v58 }
 0x244   :  { %3774 = vmatmul.mubr.msk.f32.gmra.mrb[14].mxu1 %vm499_vm1, %v392_v56  ;;  %3778 = vmatmul.mubr.msk.f32.gmra.mrb[18].mxu0 %vm499_vm1, %v392_v56 }
 0x245   :  { %3918 = vmatprep.mubr.msk.f32.mxu1 %vm913_vm2, %v900_v62 }
 0x248   :  { %3919 = vmatmul.mubr.msk.f32.vlgmr.msra.gmra.mrb[16].mxu1 %vm913_vm2, %v901_v63 }
 0x2fb   :  { %v578_v15 = vpop.f32.mrb[0].mxu1  ;;  %v667_v16 = vpop.f32.mrb[4].mxu0 }
 0x2fc   :  { %v579_v17 = vadd.f32 %v578_v15, %v462_v11  ;;  %v668_v18 = vadd.f32 %v667_v16, %v470_v12  ;;  %v580_v19 = vpop.f32.mrb[1].mxu1  ;;  %v669_v20 = vpop.f32.mrb[5].mxu0 }
 0x2fd   :  { %v581_v21 = vadd.f32 %v580_v19, %v466_v13  ;;  %v670_v22 = vadd.f32 %v669_v20, %v474_v14 }
 0x2fe   :  { %868 = vst [vmem:[#allocation2] sm:$0xff] %v579_v17  ;;  %870 = vst [vmem:[#allocation2 + $0x10] sm:$0xff] %v668_v18 }
 0x2ff   :  { %869 = vst [vmem:[#allocation2 + $0x8] sm:$0xff] %v581_v21  ;;  %871 = vst [vmem:[#allocation2 + $0x18] sm:$0xff] %v670_v22  ;;  %v584_v23 = vpop.f32.mrb[2].mxu1  ;;  %v673_v24 = vpop.f32.mrb[6].mxu0 }
 0x300   :  { %v585_v25 = vadd.f32 %v584_v23, %v462_v11  ;;  %v674_v26 = vadd.f32 %v673_v24, %v470_v12  ;;  %v586_v27 = vpop.f32.mrb[3].mxu1  ;;  %v675_v28 = vpop.f32.mrb[7].mxu0 }
 0x301   :  { %v587_v29 = vadd.f32 %v586_v27, %v466_v13  ;;  %v676_v30 = vadd.f32 %v675_v28, %v474_v14 }
 0x302   :  { %876 = vst [vmem:[#allocation2 + $0x40] sm:$0xff] %v585_v25  ;;  %878 = vst [vmem:[#allocation2 + $0x50] sm:$0xff] %v674_v26 }
 0x303   :  { %877 = vst [vmem:[#allocation2 + $0x48] sm:$0xff] %v587_v29  ;;  %879 = vst [vmem:[#allocation2 + $0x58] sm:$0xff] %v676_v30  ;;  %v590_v31 = vpop.f32.mrb[4].mxu1  ;;  %v679_v32 = vpop.f32.mrb[8].mxu0  ;;  %v3779_v30 = vld [vmem:[%s7081_s3] ss:$0 sm:$0xff] }
 0x304   :  { %v591_v33 = vadd.f32 %v590_v31, %v462_v11  ;;  %v680_v34 = vadd.f32 %v679_v32, %v470_v12  ;;  %v592_v35 = vpop.f32.mrb[5].mxu1  ;;  %v681_v36 = vpop.f32.mrb[9].mxu0 }
 0x305   :  { %v593_v39 = vadd.f32 %v592_v35, %v466_v13  ;;  %v682_v40 = vadd.f32 %v681_v36, %v474_v14 }
 0x306   :  { %884 = vst [vmem:[#allocation2 + $0x80] sm:$0xff] %v591_v33  ;;  %886 = vst [vmem:[#allocation2 + $0x90] sm:$0xff] %v680_v34 }
 0x307   :  { %885 = vst [vmem:[#allocation2 + $0x88] sm:$0xff] %v593_v39  ;;  %887 = vst [vmem:[#allocation2 + $0x98] sm:$0xff] %v682_v40  ;;  %v596_v43 = vpop.f32.mrb[6].mxu1  ;;  %v685_v44 = vpop.f32.mrb[10].mxu0 }
 0x308   :  { %v597_v45 = vadd.f32 %v596_v43, %v462_v11  ;;  %v686_v46 = vadd.f32 %v685_v44, %v470_v12  ;;  %v598_v47 = vpop.f32.mrb[7].mxu1  ;;  %v687_v48 = vpop.f32.mrb[11].mxu0 }
 0x309   :  { %v599_v51 = vadd.f32 %v598_v47, %v466_v13  ;;  %v688_v52 = vadd.f32 %v687_v48, %v474_v14 }
 0x30a   :  { %892 = vst [vmem:[#allocation2 + $0xc0] sm:$0xff] %v597_v45  ;;  %894 = vst [vmem:[#allocation2 + $0xd0] sm:$0xff] %v686_v46 }
 0x30b   :  { %893 = vst [vmem:[#allocation2 + $0xc8] sm:$0xff] %v599_v51  ;;  %895 = vst [vmem:[#allocation2 + $0xd8] sm:$0xff] %v688_v52  ;;  %v756_v55 = vpop.f32.mrb[8].mxu1  ;;  %v845_v56 = vpop.f32.mrb[12].mxu0 }
 0x30c   :  { %v757_v57 = vadd.f32 %v756_v55, %v478_v49  ;;  %v846_v59 = vadd.f32 %v845_v56, %v486_v50  ;;  %v758_v60 = vpop.f32.mrb[9].mxu1  ;;  %v847_v61 = vpop.f32.mrb[13].mxu0 }
 0x30d   :  { %v759_v62 = vadd.f32 %v758_v60, %v482_v53  ;;  %v848_v63 = vadd.f32 %v847_v61, %v490_v54 }
 0x30e   :  { %872 = vst [vmem:[#allocation2 + $0x20] sm:$0xff] %v757_v57  ;;  %874 = vst [vmem:[#allocation2 + $0x30] sm:$0xff] %v846_v59 }
 0x30f   :  { %873 = vst [vmem:[#allocation2 + $0x28] sm:$0xff] %v759_v62  ;;  %875 = vst [vmem:[#allocation2 + $0x38] sm:$0xff] %v848_v63  ;;  %v762_v0 = vpop.f32.mrb[10].mxu1  ;;  %v851_v4 = vpop.f32.mrb[14].mxu0 }
 0x310   :  { %v763_v7 = vadd.f32 %v762_v0, %v478_v49  ;;  %v852_v8 = vadd.f32 %v851_v4, %v486_v50  ;;  %v764_v10 = vpop.f32.mrb[11].mxu1  ;;  %v853_v11 = vpop.f32.mrb[15].mxu0 }
 0x311   :  { %v765_v12 = vadd.f32 %v764_v10, %v482_v53  ;;  %v854_v13 = vadd.f32 %v853_v11, %v490_v54 }
 0x312   :  { %880 = vst [vmem:[#allocation2 + $0x60] sm:$0xff] %v763_v7  ;;  %882 = vst [vmem:[#allocation2 + $0x70] sm:$0xff] %v852_v8 }
 0x313   :  { %881 = vst [vmem:[#allocation2 + $0x68] sm:$0xff] %v765_v12  ;;  %883 = vst [vmem:[#allocation2 + $0x78] sm:$0xff] %v854_v13  ;;  %v768_v14 = vpop.f32.mrb[12].mxu1  ;;  %v857_v15 = vpop.f32.mrb[16].mxu0 }
 0x314   :  { %v769_v16 = vadd.f32 %v768_v14, %v478_v49  ;;  %v858_v17 = vadd.f32 %v857_v15, %v486_v50  ;;  %v770_v18 = vpop.f32.mrb[13].mxu1  ;;  %v859_v19 = vpop.f32.mrb[17].mxu0 }
 0x315   :  { %v771_v20 = vadd.f32 %v770_v18, %v482_v53  ;;  %v860_v21 = vadd.f32 %v859_v19, %v490_v54 }
 0x316   :  { %888 = vst [vmem:[#allocation2 + $0xa0] sm:$0xff] %v769_v16  ;;  %890 = vst [vmem:[#allocation2 + $0xb0] sm:$0xff] %v858_v17 }
 0x317   :  { %889 = vst [vmem:[#allocation2 + $0xa8] sm:$0xff] %v771_v20  ;;  %891 = vst [vmem:[#allocation2 + $0xb8] sm:$0xff] %v860_v21  ;;  %v774_v22 = vpop.f32.mrb[14].mxu1  ;;  %v863_v23 = vpop.f32.mrb[18].mxu0 }
 0x318   :  { %v775_v24 = vadd.f32 %v774_v22, %v478_v49  ;;  %v864_v25 = vadd.f32 %v863_v23, %v486_v50  ;;  %v776_v26 = vpop.f32.mrb[15].mxu1  ;;  %v865_v27 = vpop.f32.mrb[19].mxu0 }
 0x319   :  { %v777_v28 = vadd.f32 %v776_v26, %v482_v53  ;;  %v866_v29 = vadd.f32 %v865_v27, %v490_v54 }
 0x31a   :  { %896 = vst [vmem:[#allocation2 + $0xe0] sm:$0xff] %v775_v24  ;;  %898 = vst [vmem:[#allocation2 + $0xf0] sm:$0xff] %v864_v25 }
 0x31b   :  { %897 = vst [vmem:[#allocation2 + $0xe8] sm:$0xff] %v777_v28  ;;  %899 = vst [vmem:[#allocation2 + $0xf8] sm:$0xff] %v866_v29  ;;  %v3920_v31 = vpop.f32.mrb[16].mxu1 }
 0x31c   :  { %v992_v32 = vadd.f32 %v3920_v31, %v3779_v30  ;;  %v986_v33 = vpop.f32.mrb[17].mxu1 }
 0x31d   :  { %v987_v34 = vadd.f32 %v3779_v30, %v986_v33 }
 0x31e   :  { %v996_v35 = vmax.f32 %v992_v32, 0.0  }
 0x31f   :  { %v995_v36 = vmax.f32 %v987_v34, 0.0  }
 0x320 LB: > { %7082 = vst [vmem:[#allocation44_spill] sm:$0xff] %v5022_v35  ;;  %7083 = vst [vmem:[#allocation45_spill] sm:$0xff] %v5026_v36  ;;  %s7084_s12 = sld [smem:[#allocation89_spill]]  ;;  %vm1009_vm3 = vcmask 130048   ;;  %v5079_v38 = vmov 2   ;;  %v4128_v39 = vpack.c.bf16 %v5022_v35, %v5026_v36  ;;  %v5080_v40 = vmov 1   ;;  %s5030_s26 = sphi %s5574_s26, %s1002_s26   ;;  %v5026_v36 = vphi %v995_v36, %v7188_v36   ;;  %v5022_v35 = vphi %v996_v35, %v7187_v35  }
 0x321   : > { %4439 = vset.pattern.permute.xlu1 %v5079_v38  ;;  %4438 = vset.pattern.permute.xlu0 %v5080_v40  ;;  %v5081_v47 = vmov 3   ;;  %v5082_v48 = vmov 6   ;;  %v5083_v50 = vmov 5   ;;  %v5084_v51 = vmov 10   ;;  %s5107_s18 = smov 96   ;;  %s5108_s22 = smov 64  }
 0x322   : > { %4129 = vmatprep.subr.bf16.mxu1 %v4128_v39  ;;  %v5085_v52 = vmov 7   ;;  %v5086_v53 = vmov 14   ;;  %v5087_v54 = vmov 9   ;;  %v5088_v55 = vmov 18   ;;  %s5109_s4 = smov 32   ;;  %v5933_v2 = vld [vmem:[#allocation2 + $0x80] sm:$0xff] }
 0x323   : > { %4131 = vmatpush3.bf16.msra.mxu1 %v4128_v39  ;;  %v5089_v56 = vmov 11   ;;  %v5090_v57 = vmov 22   ;;  %v5091_v59 = vmov 13   ;;  %v7028_v60 = vmov 26   ;;  %s7179_s28 = sld [smem:[#allocation90_spill]]  ;;  %s1002_s26 = sadd.s32 1, %s5030_s26  }
 0x324   : > { %v5093_v61 = vmov 15   ;;  %v7019_v62 = vmov 0   ;;  %v5095_v63 = vmov 17   ;;  %v5096_v0 = vmov 19   ;;  %p999_p2 = scmp.ge.s32.totalorder %s1002_s26, 3  }
 0x325   : > { %v5097_v4 = vmov 21   ;;  %v7030_v7 = vmov 23   ;;  %v7029_v8 = vmov 25   ;;  %v7026_v10 = vmov 27   ;;  %s7190_s5 = sld [smem:[#allocation89_spill]] (%p999_p2)  ;;  %s5115_s23 = smov (%p999_p2), 32  }
 0x326   : > { %v1005_v37 = vld [vmem:[%s7084_s12] sm:$0xff]  ;;  %v1006_v41 = vld [vmem:[%s7084_s12 + $0x8] sm:$0xff]  ;;  %v1007_v42 = vld [vmem:[%s7084_s12 + $0x10] sm:$0xff]  ;;  %v7023_v11 = vmov 29   ;;  %v7020_v26 = vmov 31   ;;  %v7024_v29 = vmov 30  }
 0x327   : > { %3925 = vmatprep.mubr.msk.f32.mxu1 %vm1009_vm3, %v1005_v37  ;;  %v1008_v43 = vld [vmem:[%s7084_s12 + $0x18] sm:$0xff]  ;;  %v7017_v32 = vmov 4   ;;  %v7099_v3 = vmov 23   ;;  %v7102_v6 = vmov 26   ;;  %v7103_v35 = vmov 27   ;;  %s7194_s12 = sld [smem:[#allocation90_spill]] (%p999_p2) }
 0x328   : > { %3926 = vmatmul.mubr.msk.f32.vlgmr.msra.gmra.mrb[0].mxu1 %vm1009_vm3, %v1006_v41  ;;  %s7195_s11 = sld [smem:[#allocation92_spill]] (%p999_p2) }
 0x329   : > { %3928 = vmatprep.mubr.msk.f32.mxu1 %vm1009_vm3, %v1007_v42 }
 0x32c   : > { %3929 = vmatmul.mubr.msk.f32.gmra.mrb[2].mxu1 %vm1009_vm3, %v1008_v43  ;;  %v7022_v43 = vmov 12  }
 0x3fb   : > { %v5605_v44 = vpop.f32.mrb[0].mxu1 }
 0x3fc   : > { %1184 = vperm.xlu1 %4439, %v5605_v44   ;;  %1144 = vperm.xlu0 %4438, %v5605_v44   ;;  %v5609_v45 = vpop.f32.mrb[1].mxu1 }
 0x3ff   : > { %v5611_v46 = vpop.f32.mrb[2].mxu1 }
 0x400   : > { %4440 = vset.pattern.permute.xlu1 %v5081_v47  ;;  %4442 = vset.pattern.permute.xlu0 %v5082_v48  ;;  %v5615_v49 = vpop.f32.mrb[3].mxu1 }
 0x401   : > { %1224 = vperm.xlu1 %4440, %v5605_v44   ;;  %1332 = vperm.xlu0 %4442, %v5605_v44  }
 0x405   : > { %4441 = vset.pattern.permute.xlu1 %v5083_v50  ;;  %4445 = vset.pattern.permute.xlu0 %v5084_v51 }
 0x406   : > { %1292 = vperm.xlu1 %4441, %v5605_v44   ;;  %1480 = vperm.xlu0 %4445, %v5605_v44  }
 0x40a   : > { %4443 = vset.pattern.permute.xlu1 %v5085_v52  ;;  %4448 = vset.pattern.permute.xlu0 %v5086_v53 }
 0x40b   : > { %1372 = vperm.xlu1 %4443, %v5605_v44   ;;  %1628 = vperm.xlu0 %4448, %v5605_v44  }
 0x40f   : > { %4444 = vset.pattern.permute.xlu1 %v5087_v54  ;;  %4451 = vset.pattern.permute.xlu0 %v5088_v55 }
 0x410   : > { %1440 = vperm.xlu1 %4444, %v5605_v44   ;;  %1776 = vperm.xlu0 %4451, %v5605_v44  }
 0x414   : > { %4446 = vset.pattern.permute.xlu1 %v5089_v56  ;;  %4454 = vset.pattern.permute.xlu0 %v5090_v57 }
 0x415   : > { %1520 = vperm.xlu1 %4446, %v5605_v44   ;;  %1924 = vperm.xlu0 %4454, %v5605_v44  }
 0x419   : > { %4447 = vset.pattern.permute.xlu1 %v5091_v59  ;;  %4457 = vset.pattern.permute.xlu0 %v7028_v60 }
 0x41a   : > { %1588 = vperm.xlu1 %4447, %v5605_v44   ;;  %2072 = vperm.xlu0 %4457, %v5605_v44  }
 0x41e   : > { %4449 = vset.pattern.permute.xlu1 %v5093_v61  ;;  %4460 = vset.pattern.permute.xlu0 %v7019_v62 }
 0x41f   : > { %1668 = vperm.xlu1 %4449, %v5605_v44   ;;  %1118 = vperm.xlu0 %4460, %v5605_v44  }
 0x423   : > { %4450 = vset.pattern.permute.xlu1 %v5095_v63  ;;  %4461 = vset.pattern.permute.xlu0 %v5080_v40 }
 0x424   : > { %1736 = vperm.xlu1 %4450, %v5605_v44   ;;  %1140 = vperm.xlu0 %4461, %v5609_v45  }
 0x428   : > { %4452 = vset.pattern.permute.xlu1 %v5096_v0  ;;  %4463 = vset.pattern.permute.xlu0 %v5081_v47 }
 0x429   : > { %1816 = vperm.xlu1 %4452, %v5605_v44   ;;  %1220 = vperm.xlu0 %4463, %v5609_v45  }
 0x42d   : > { %4453 = vset.pattern.permute.xlu1 %v5097_v4  ;;  %4464 = vset.pattern.permute.xlu0 %v5083_v50 }
 0x42e   : > { %1884 = vperm.xlu1 %4453, %v5605_v44   ;;  %1288 = vperm.xlu0 %4464, %v5609_v45  }
 0x432   : > { %4455 = vset.pattern.permute.xlu1 %v7030_v7  ;;  %4466 = vset.pattern.permute.xlu0 %v5085_v52 }
 0x433   : > { %1964 = vperm.xlu1 %4455, %v5605_v44   ;;  %1368 = vperm.xlu0 %4466, %v5609_v45  }
 0x437   : > { %4456 = vset.pattern.permute.xlu1 %v7029_v8  ;;  %4467 = vset.pattern.permute.xlu0 %v5087_v54 }
 0x438   : > { %2032 = vperm.xlu1 %4456, %v5605_v44   ;;  %1436 = vperm.xlu0 %4467, %v5609_v45  }
 0x43c   : > { %4458 = vset.pattern.permute.xlu1 %v7026_v10  ;;  %4469 = vset.pattern.permute.xlu0 %v5089_v56 }
 0x43d   : > { %2112 = vperm.xlu1 %4458, %v5605_v44   ;;  %1516 = vperm.xlu0 %4469, %v5609_v45  }
 0x441   : > { %4459 = vset.pattern.permute.xlu1 %v7023_v11  ;;  %4470 = vset.pattern.permute.xlu0 %v5091_v59 }
 0x442   : > { %2180 = vperm.xlu1 %4459, %v5605_v44   ;;  %1584 = vperm.xlu0 %4470, %v5609_v45  }
 0x446   : > { %4462 = vset.pattern.permute.xlu1 %v5079_v38  ;;  %4472 = vset.pattern.permute.xlu0 %v5093_v61 }
 0x447   : > { %1180 = vperm.xlu1 %4462, %v5609_v45   ;;  %1664 = vperm.xlu0 %4472, %v5609_v45  }
 0x44b   : > { %4465 = vset.pattern.permute.xlu1 %v5082_v48  ;;  %4473 = vset.pattern.permute.xlu0 %v5095_v63 }
 0x44c   : > { %1328 = vperm.xlu1 %4465, %v5609_v45   ;;  %1732 = vperm.xlu0 %4473, %v5609_v45  }
 0x450   : > { %4468 = vset.pattern.permute.xlu1 %v5084_v51  ;;  %4475 = vset.pattern.permute.xlu0 %v5096_v0 }
 0x451   : > { %1476 = vperm.xlu1 %4468, %v5609_v45   ;;  %1812 = vperm.xlu0 %4475, %v5609_v45  }
 0x455   : > { %4471 = vset.pattern.permute.xlu1 %v5086_v53  ;;  %4476 = vset.pattern.permute.xlu0 %v5097_v4 }
 0x456   : > { %1624 = vperm.xlu1 %4471, %v5609_v45   ;;  %1880 = vperm.xlu0 %4476, %v5609_v45  }
 0x45a   : > { %4474 = vset.pattern.permute.xlu1 %v5088_v55  ;;  %4478 = vset.pattern.permute.xlu0 %v7030_v7 }
 0x45b   : > { %1772 = vperm.xlu1 %4474, %v5609_v45   ;;  %1960 = vperm.xlu0 %4478, %v5609_v45  }
 0x45f   : > { %4477 = vset.pattern.permute.xlu1 %v5090_v57  ;;  %4479 = vset.pattern.permute.xlu0 %v7029_v8 }
 0x460   : > { %1920 = vperm.xlu1 %4477, %v5609_v45   ;;  %2028 = vperm.xlu0 %4479, %v5609_v45  }
 0x464   : > { %4480 = vset.pattern.permute.xlu1 %v7028_v60  ;;  %4481 = vset.pattern.permute.xlu0 %v7026_v10 }
 0x465   : > { %2068 = vperm.xlu1 %4480, %v5609_v45   ;;  %2108 = vperm.xlu0 %4481, %v5609_v45  }
 0x469   : > { %4482 = vset.pattern.permute.xlu1 %v7019_v62  ;;  %4484 = vset.pattern.permute.xlu0 %v5079_v38 }
 0x46a   : > { %1113 = vperm.xlu1 %4482, %v5609_v45   ;;  %1192 = vperm.xlu0 %4484, %v5611_v46  }
 0x46e   : > { %4483 = vset.pattern.permute.xlu1 %v5080_v40  ;;  %4487 = vset.pattern.permute.xlu0 %v5082_v48 }
 0x46f   : > { %1340 = vperm.xlu0 %4487, %v5611_v46   ;;  %1152 = vperm.xlu1 %4483, %v5611_v46  }
 0x473   : > { %4490 = vset.pattern.permute.xlu0 %v5084_v51  ;;  %4485 = vset.pattern.permute.xlu1 %v5081_v47 }
 0x474   : > { %1488 = vperm.xlu0 %4490, %v5611_v46   ;;  %1232 = vperm.xlu1 %4485, %v5611_v46  }
 0x478   : > { %4493 = vset.pattern.permute.xlu0 %v5086_v53  ;;  %4486 = vset.pattern.permute.xlu1 %v5083_v50 }
 0x479   : > { %1636 = vperm.xlu0 %4493, %v5611_v46   ;;  %1300 = vperm.xlu1 %4486, %v5611_v46  }
 0x47b   : > { %v5715_v12 = vpop.permute.xlu1 %1184  ;;  %v5717_v13 = vpop.permute.xlu0 %1144 }
 0x47d   : > { %4496 = vset.pattern.permute.xlu0 %v5088_v55  ;;  %4488 = vset.pattern.permute.xlu1 %v5085_v52 }
 0x47e   : > { %1784 = vperm.xlu0 %4496, %v5611_v46   ;;  %1380 = vperm.xlu1 %4488, %v5611_v46  }
 0x480   : > { %v5723_v14 = vpop.permute.xlu1 %1224  ;;  %v5725_v15 = vpop.permute.xlu0 %1332 }
 0x482   : > { %4499 = vset.pattern.permute.xlu0 %v5090_v57  ;;  %4489 = vset.pattern.permute.xlu1 %v5087_v54 }
 0x483   : > { %1932 = vperm.xlu0 %4499, %v5611_v46   ;;  %1448 = vperm.xlu1 %4489, %v5611_v46  }
 0x485   : > { %v5731_v16 = vpop.permute.xlu1 %1292  ;;  %v5733_v17 = vpop.permute.xlu0 %1480 }
 0x487   : > { %4502 = vset.pattern.permute.xlu0 %v7028_v60  ;;  %4491 = vset.pattern.permute.xlu1 %v5089_v56 }
 0x488   : > { %2080 = vperm.xlu0 %4502, %v5611_v46   ;;  %1528 = vperm.xlu1 %4491, %v5611_v46  }
 0x48a   : > { %v5739_v18 = vpop.permute.xlu1 %1372  ;;  %v5741_v19 = vpop.permute.xlu0 %1628 }
 0x48c   : > { %4504 = vset.pattern.permute.xlu0 %v5080_v40  ;;  %4492 = vset.pattern.permute.xlu1 %v5091_v59  ;;  %v7016_v40 = vmov 8  }
 0x48d   : > { %1596 = vperm.xlu1 %4492, %v5611_v46   ;;  %1148 = vperm.xlu0 %4504, %v5615_v49  }
 0x48f   : > { %v5747_v20 = vpop.permute.xlu1 %1440  ;;  %v5749_v21 = vpop.permute.xlu0 %1776 }
 0x491   : > { %4494 = vset.pattern.permute.xlu1 %v5093_v61  ;;  %4505 = vset.pattern.permute.xlu0 %v7023_v11 }
 0x492   : > { %1676 = vperm.xlu1 %4494, %v5611_v46   ;;  %2176 = vperm.xlu0 %4505, %v5609_v45  }
 0x494   : > { %v5755_v22 = vpop.permute.xlu1 %1520  ;;  %v5757_v23 = vpop.permute.xlu0 %1924 }
 0x496   : > { %4495 = vset.pattern.permute.xlu1 %v5095_v63  ;;  %2184 = vperm.xlu0 %4505, %v5615_v49  }
 0x497   : > { %1744 = vperm.xlu1 %4495, %v5611_v46  }
 0x499   : > { %v5762_v24 = vpop.permute.xlu1 %1588  ;;  %v5764_v25 = vpop.permute.xlu0 %2072 }
 0x49a   : > { %7085 = vst [vmem:[#allocation46_spill] sm:$0xff] %v5764_v25  ;;  %4529 = vset.pattern.permute.xlu0 %v7020_v26 }
 0x49b   : > { %4497 = vset.pattern.permute.xlu1 %v5096_v0  ;;  %2260 = vperm.xlu0 %4529, %v5605_v44  }
 0x49c   : > { %1824 = vperm.xlu1 %4497, %v5611_v46  }
 0x49e   : > { %v5770_v27 = vpop.permute.xlu1 %1668  ;;  %v5772_v28 = vpop.permute.xlu0 %1118 }
 0x49f   : > { %7086 = vst [vmem:[#allocation47_spill] sm:$0xff] %v5772_v28  ;;  %4531 = vset.pattern.permute.xlu0 %v7024_v29 }
 0x4a0   : > { %4498 = vset.pattern.permute.xlu1 %v5097_v4  ;;  %2224 = vperm.xlu0 %4531, %v5615_v49  }
 0x4a1   : > { %1892 = vperm.xlu1 %4498, %v5611_v46  }
 0x4a3   : > { %v5778_v30 = vpop.permute.xlu1 %1736  ;;  %v1141_v31 = vpop.permute.xlu0 %1140 }
 0x4a4   : > { %4534 = vset.pattern.permute.xlu0 %v7017_v32  ;;  %v5811_v32 = vld [vmem:[#allocation2 + $0x48] sm:$0xff] }
 0x4a5   : > { %4500 = vset.pattern.permute.xlu1 %v7030_v7  ;;  %1268 = vperm.xlu0 %4534, %v5605_v44   ;;  %7089 = vst [vmem:[#allocation50_spill] sm:$0xff] %v5811_v32  ;;  %v1304_v26 = vmul.f32 %v5731_v16, %v5811_v32  ;;  %v5831_v16 = vld [vmem:[#allocation2] sm:$0xff] }
 0x4a6   : > { %1972 = vperm.xlu1 %4500, %v5611_v46   ;;  %7092 = vst [vmem:[#allocation53_spill] sm:$0xff] %v5831_v16 }
 0x4a8   : > { %v5784_v33 = vpop.permute.xlu1 %1816  ;;  %v1221_v34 = vpop.permute.xlu0 %1220 }
 0x4a9   : > { %7087 = vst [vmem:[#allocation48_spill] sm:$0xff] %v5784_v33  ;;  %1272 = vperm.xlu0 %4534, %v5615_v49  }
 0x4aa   : > { %4501 = vset.pattern.permute.xlu1 %v7029_v8 }
 0x4ab   : > { %2040 = vperm.xlu1 %4501, %v5611_v46  }
 0x4ad   : > { %v5789_v37 = vpop.permute.xlu1 %1884  ;;  %v5791_v39 = vpop.permute.xlu0 %1288  ;;  %4537 = vset.pattern.permute.xlu0 %v7016_v40 }
 0x4ae   : > { %1412 = vperm.xlu0 %4537, %v5609_v45  }
 0x4af   : > { %4503 = vset.pattern.permute.xlu1 %v7026_v10  ;;  %v5851_v10 = vld [vmem:[#allocation2 + $0x10] sm:$0xff] }
 0x4b0   : > { %2120 = vperm.xlu1 %4503, %v5611_v46   ;;  %7093 = vst [vmem:[#allocation54_spill] sm:$0xff] %v5851_v10 }
 0x4b2   : > { %v5797_v41 = vpop.permute.xlu1 %1964  ;;  %v5799_v42 = vpop.permute.xlu0 %1368  ;;  %1424 = vperm.xlu0 %4537, %v5611_v46  }
 0x4b4   : > { %4506 = vset.pattern.permute.xlu1 %v5079_v38 }
 0x4b5   : > { %1188 = vperm.xlu1 %4506, %v5615_v49  }
 0x4b6   : > { %4540 = vset.pattern.permute.xlu0 %v7022_v43 }
 0x4b7   : > { %v5805_v58 = vpop.permute.xlu1 %2032  ;;  %v1437_v40 = vpop.permute.xlu0 %1436  ;;  %1564 = vperm.xlu0 %4540, %v5605_v44  }
 0x4b8   : > { %7088 = vst [vmem:[#allocation49_spill] sm:$0xff] %v5805_v58  ;;  %v7112_v58 = vmov 4  }
 0x4b9   : > { %4507 = vset.pattern.permute.xlu1 %v5081_v47  ;;  %v1344_v47 = vmul.f32 %v5725_v15, %v5811_v32 }
 0x4ba   : > { %1228 = vperm.xlu1 %4507, %v5615_v49  }
 0x4bb   : > { %1568 = vperm.xlu0 %4540, %v5615_v49  }
 0x4bc   : > { %v5813_v62 = vpop.permute.xlu1 %2112  ;;  %v1517_v38 = vpop.permute.xlu0 %1516 }
 0x4bd   : > { %7090 = vst [vmem:[#allocation51_spill] sm:$0xff] %v5813_v62 }
 0x4be   : > { %4508 = vset.pattern.permute.xlu1 %v5083_v50  ;;  %v1384_v50 = vmul.f32 %v5739_v18, %v5811_v32 }
 0x4bf   : > { %1296 = vperm.xlu1 %4508, %v5615_v49   ;;  %1313 = vrot.lane.b32.xlu0 %v1304_v26, %s5107_s18 }
 0x4c1   : > { %v5822_v43 = vpop.permute.xlu1 %2180  ;;  %v5824_v11 = vpop.permute.xlu0 %1584 }
 0x4c2   : > { %7091 = vst [vmem:[#allocation52_spill] sm:$0xff] %v5822_v43  ;;  %v7105_v43 = vmov 30  }
 0x4c3   : > { %4509 = vset.pattern.permute.xlu1 %v5082_v48  ;;  %1353 = vrot.lane.b32.xlu0 %v1344_v47, %s5108_s22  ;;  %v1155_v48 = vmul.f32 %v1141_v31, %v5831_v16  ;;  %v1235_v31 = vmul.f32 %v1221_v34, %v5831_v16 }
 0x4c4   : > { %1336 = vperm.xlu1 %4509, %v5615_v49  }
 0x4c6   : > { %v1181_v26 = vpop.permute.xlu1 %1180  ;;  %v5833_v29 = vpop.permute.xlu0 %1664 }
 0x4c7   : > { %1393 = vrot.lane.b32.xlu0 %v1384_v50, %s5109_s4  ;;  %v1195_v18 = vmul.f32 %v1181_v26, %v5831_v16  ;;  %v7027_v26 = vmov 16  }
 0x4c8   : > { %4510 = vset.pattern.permute.xlu1 %v5085_v52  ;;  %4541 = vset.pattern.permute.xlu0 %v7027_v26 }
 0x4c9   : > { %1376 = vperm.xlu1 %4510, %v5615_v49  }
 0x4cb   : > { %v5839_v15 = vpop.permute.xlu1 %1328  ;;  %v5841_v47 = vpop.permute.xlu0 %1732  ;;  %1163 = vrot.lane.b32.xlu0 %v1155_v48, %s5107_s18 }
 0x4cd   : > { %4511 = vset.pattern.permute.xlu1 %v5087_v54  ;;  %v1451_v54 = vmul.f32 %v1437_v40, %v5851_v10  ;;  %v1531_v40 = vmul.f32 %v1517_v38, %v5851_v10 }
 0x4ce   : > { %1444 = vperm.xlu1 %4511, %v5615_v49  }
 0x4cf   : > { %1203 = vrot.lane.b32.xlu0 %v1195_v18, %s5108_s22 }
 0x4d0   : > { %v1477_v50 = vpop.permute.xlu1 %1476  ;;  %v5848_v52 = vpop.permute.xlu0 %1812 }
 0x4d2   : > { %4512 = vset.pattern.permute.xlu1 %v5084_v51  ;;  %v1491_v51 = vmul.f32 %v1477_v50, %v5851_v10  ;;  %v7110_v10 = vmov 0  }
 0x4d3   : > { %1484 = vperm.xlu1 %4512, %v5615_v49   ;;  %1243 = vrot.lane.b32.xlu0 %v1235_v31, %s5109_s4 }
 0x4d5   : > { %v5858_v48 = vpop.permute.xlu1 %1624  ;;  %v5860_v18 = vpop.permute.xlu0 %1880 }
 0x4d6   : > { %7094 = vst [vmem:[#allocation55_spill] sm:$0xff] %v5860_v18 }
 0x4d7   : > { %4513 = vset.pattern.permute.xlu1 %v5089_v56  ;;  %1459 = vrot.lane.b32.xlu0 %v1451_v54, %s5107_s18 }
 0x4d8   : > { %1524 = vperm.xlu1 %4513, %v5615_v49  }
 0x4da   : > { %v5866_v34 = vpop.permute.xlu1 %1772  ;;  %v5868_v31 = vpop.permute.xlu0 %1960 }
 0x4db   : > { %7095 = vst [vmem:[#allocation56_spill] sm:$0xff] %v5868_v31  ;;  %1499 = vrot.lane.b32.xlu0 %v1491_v51, %s5108_s22  ;;  %v5992_v31 = vld [vmem:[#allocation2 + $0x90] sm:$0xff] }
 0x4dc   : > { %4514 = vset.pattern.permute.xlu1 %v5091_v59  ;;  %v5887_v59 = vld [vmem:[#allocation2 + $0xc0] sm:$0xff] }
 0x4dd   : > { %1592 = vperm.xlu1 %4514, %v5615_v49  }
 0x4df   : > { %v5874_v26 = vpop.permute.xlu1 %1920  ;;  %v5876_v56 = vpop.permute.xlu0 %2028  ;;  %1539 = vrot.lane.b32.xlu0 %v1531_v40, %s5109_s4 }
 0x4e0   : > { %7096 = vst [vmem:[#allocation57_spill] sm:$0xff] %v5874_v26  ;;  %v7113_v26 = vmov 8  }
 0x4e1   : > { %4515 = vset.pattern.permute.xlu1 %v5086_v53 }
 0x4e2   : > { %1632 = vperm.xlu1 %4515, %v5615_v49  }
 0x4e4   : > { %v5881_v50 = vpop.permute.xlu1 %2068  ;;  %v5883_v54 = vpop.permute.xlu0 %2108 }
 0x4e6   : > { %4516 = vset.pattern.permute.xlu1 %v5093_v61 }
 0x4e7   : > { %1672 = vperm.xlu1 %4516, %v5615_v49  }
 0x4e9   : > { %v5889_v38 = vpop.permute.xlu1 %1113  ;;  %v1193_v51 = vpop.permute.xlu0 %1192 }
 0x4ea   : > { %7097 = vst [vmem:[#allocation58_spill] sm:$0xff] %v5889_v38  ;;  %v1198_v60 = vmul.f32 %v1193_v51, %v5887_v59 }
 0x4eb   : > { %4517 = vset.pattern.permute.xlu1 %v5095_v63 }
 0x4ec   : > { %1740 = vperm.xlu1 %4517, %v5615_v49   ;;  %1209 = vrot.lane.b32.xlu0 %v1198_v60, %s5108_s22  ;;  %v5907_v60 = vld [vmem:[#allocation2 + $0xc8] sm:$0xff] }
 0x4ee   : > { %v5895_v53 = vpop.permute.xlu0 %1340  ;;  %v5897_v40 = vpop.permute.xlu1 %1152 }
 0x4f0   : > { %4518 = vset.pattern.permute.xlu1 %v5088_v55 }
 0x4f1   : > { %1780 = vperm.xlu1 %4518, %v5615_v49  }
 0x4f3   : > { %v5901_v61 = vpop.permute.xlu0 %1488  ;;  %v1233_v8 = vpop.permute.xlu1 %1232 }
 0x4f4   : > { %v1238_v7 = vmul.f32 %v1233_v8, %v5887_v59 }
 0x4f5   : > { %4519 = vset.pattern.permute.xlu1 %v5096_v0 }
 0x4f6   : > { %1820 = vperm.xlu1 %4519, %v5615_v49   ;;  %1249 = vrot.lane.b32.xlu0 %v1238_v7, %s5109_s4 }
 0x4f8   : > { %v5909_v63 = vpop.permute.xlu0 %1636  ;;  %v1301_v51 = vpop.permute.xlu1 %1300 }
 0x4f9   : > { %v1306_v55 = vmul.f32 %v1301_v51, %v5907_v60 }
 0x4fa   : > { %4520 = vset.pattern.permute.xlu1 %v5097_v4 }
 0x4fb   : > { %1888 = vperm.xlu1 %4520, %v5615_v49   ;;  %1317 = vrot.lane.b32.xlu0 %v1306_v55, %s5107_s18  ;;  %v7101_v55 = vmov 25  }
 0x4fd   : > { %v5915_v8 = vpop.permute.xlu0 %1784  ;;  %v5917_v0 = vpop.permute.xlu1 %1380 }
 0x4ff   : > { %4521 = vset.pattern.permute.xlu1 %v5090_v57 }
 0x500   : > { %1928 = vperm.xlu1 %4521, %v5615_v49  }
 0x502   : > { %v5921_v7 = vpop.permute.xlu0 %1932  ;;  %v5923_v5 = vpop.permute.xlu1 %1448 }
 0x503   : > { %7098 = vst [vmem:[#allocation59_spill] sm:$0xff] %v5921_v7 }
 0x504   : > { %4522 = vset.pattern.permute.xlu1 %v7099_v3 }
 0x505   : > { %1968 = vperm.xlu1 %4522, %v5615_v49  }
 0x507   : > { %v5927_v4 = vpop.permute.xlu0 %2080  ;;  %v5929_v51 = vpop.permute.xlu1 %1528 }
 0x508   : > { %7100 = vst [vmem:[#allocation60_spill] sm:$0xff] %v5927_v4 }
 0x509   : > { %4523 = vset.pattern.permute.xlu1 %v7101_v55 }
 0x50a   : > { %2036 = vperm.xlu1 %4523, %v5615_v49  }
 0x50c   : > { %v5935_v57 = vpop.permute.xlu1 %1596  ;;  %v1149_v1 = vpop.permute.xlu0 %1148 }
 0x50d   : > { %v1157_v9 = vmul.f32 %v1149_v1, %v5933_v2 }
 0x50e   : > { %4524 = vset.pattern.permute.xlu1 %v7102_v6  ;;  %v7106_v6 = vmov 29  }
 0x50f   : > { %2076 = vperm.xlu1 %4524, %v5615_v49   ;;  %1167 = vrot.lane.b32.xlu0 %v1157_v9, %s5107_s18 }
 0x511   : > { %v5941_v3 = vpop.permute.xlu1 %1676 }
 0x513   : > { %4525 = vset.pattern.permute.xlu1 %v7103_v35  ;;  %v7108_v35 = vmov 31  }
 0x514   : > { %2116 = vperm.xlu1 %4525, %v5615_v49  }
 0x516   : > { %v5945_v55 = vpop.permute.xlu1 %1744 }
 0x517   : > { %7104 = vst [vmem:[#allocation61_spill] sm:$0xff] %v5945_v55  ;;  %v7118_v55 = vmov 16  }
 0x518   : > { %4526 = vset.pattern.permute.xlu1 %v7105_v43 }
 0x519   : > { %2216 = vperm.xlu1 %4526, %v5609_v45  }
 0x51b   : > { %v5949_v4 = vpop.permute.xlu1 %1824 }
 0x51d   : > { %2220 = vperm.xlu1 %4526, %v5605_v44  }
 0x520   : > { %v5952_v1 = vpop.permute.xlu1 %1892 }
 0x521   : > { %4527 = vset.pattern.permute.xlu1 %v7106_v6 }
 0x522   : > { %2188 = vperm.xlu1 %4527, %v5611_v46  }
 0x525   : > { %v5956_v9 = vpop.permute.xlu1 %1972 }
 0x526   : > { %7107 = vst [vmem:[#allocation62_spill] sm:$0xff] %v5956_v9  ;;  %4528 = vset.pattern.permute.xlu1 %v7108_v35 }
 0x527   : > { %2256 = vperm.xlu1 %4528, %v5609_v45  }
 0x52a   : > { %v5960_v62 = vpop.permute.xlu1 %2040 }
 0x52b   : > { %7109 = vst [vmem:[#allocation63_spill] sm:$0xff] %v5960_v62  ;;  %4530 = vset.pattern.permute.xlu1 %v7110_v10  ;;  %v5985_v62 = vld [vmem:[#allocation2 + $0x88] sm:$0xff] }
 0x52c   : > { %1123 = vperm.xlu1 %4530, %v5615_v49  }
 0x52f   : > { %v5964_v25 = vpop.permute.xlu1 %2120 }
 0x530   : > { %7111 = vst [vmem:[#allocation64_spill] sm:$0xff] %v5964_v25  ;;  %1128 = vperm.xlu1 %4530, %v5611_v46   ;;  %v5979_v25 = vpop.permute.xlu0 %2176 }
 0x534   : > { %4532 = vset.pattern.permute.xlu1 %v7105_v43  ;;  %v5968_v6 = vpop.permute.xlu1 %1188  ;;  %v5988_v16 = vpop.permute.xlu0 %2184 }
 0x535   : > { %2228 = vperm.xlu1 %4532, %v5611_v46  }
 0x538   : > { %v5997_v36 = vpop.permute.xlu0 %2260 }
 0x539   : > { %4533 = vset.pattern.permute.xlu1 %v7112_v58  ;;  %v5972_v9 = vpop.permute.xlu1 %1228  ;;  %7114 = vst [vmem:[#allocation65_spill] sm:$0xff] %v5997_v36 }
 0x53a   : > { %1264 = vperm.xlu1 %4533, %v5609_v45  }
 0x53e   : > { %4535 = vset.pattern.permute.xlu1 %v7108_v35  ;;  %v5976_v10 = vpop.permute.xlu1 %1296 }
 0x53f   : > { %2264 = vperm.xlu1 %4535, %v5615_v49  }
 0x543   : > { %2268 = vperm.xlu1 %4535, %v5611_v46   ;;  %v5982_v43 = vpop.permute.xlu1 %1336 }
 0x547   : > { %4536 = vset.pattern.permute.xlu1 %v7112_v58 }
 0x548   : > { %1276 = vperm.xlu1 %4536, %v5611_v46   ;;  %v1377_v38 = vpop.permute.xlu1 %1376 }
 0x549   : > { %v1385_v7 = vmul.f32 %v1377_v38, %v5985_v62  ;;  %v6003_v38 = vld [vmem:[#allocation2 + $0xd0] sm:$0xff] }
 0x54a   : > { %v1494_v33 = vmul.f32 %v5901_v61, %v6003_v38  ;;  %v1534_v36 = vmul.f32 %v5929_v51, %v6003_v38  ;;  %v6027_v61 = vld [vmem:[#allocation2 + $0x58] sm:$0xff] }
 0x54b   : > { %1395 = vrot.lane.b32.xlu0 %v1385_v7, %s5109_s4  ;;  %v6006_v7 = vpop.permute.xlu0 %2224 }
 0x54c   : > { %4538 = vset.pattern.permute.xlu1 %v7113_v26  ;;  %7115 = vst [vmem:[#allocation66_spill] sm:$0xff] %v6006_v7  ;;  %v7116_v26 = vmov 12  }
 0x54d   : > { %1416 = vperm.xlu1 %4538, %v5605_v44   ;;  %v1445_v18 = vpop.permute.xlu1 %1444 }
 0x54e   : > { %v1453_v58 = vmul.f32 %v1445_v18, %v5992_v31 }
 0x54f   : > { %v6020_v28 = vpop.permute.xlu0 %1268 }
 0x550   : > { %1463 = vrot.lane.b32.xlu0 %v1453_v58, %s5107_s18  ;;  %v6015_v58 = vld [vmem:[#allocation2 + $0x40] sm:$0xff]  ;;  %7117 = vst [vmem:[#allocation67_spill] sm:$0xff] %v6020_v28 }
 0x551   : > { %1420 = vperm.xlu1 %4538, %v5615_v49   ;;  %v1196_v51 = vmul.f32 %v5715_v12, %v6015_v58  ;;  %v6047_v12 = vld [vmem:[#allocation2 + $0x50] sm:$0xff] }
 0x552   : > { %v6001_v32 = vpop.permute.xlu1 %1484 }
 0x553   : > { %v6036_v28 = vpop.permute.xlu0 %1272 }
 0x554   : > { %1708 = vperm.xlu0 %4541, %v5609_v45   ;;  %7119 = vst [vmem:[#allocation68_spill] sm:$0xff] %v6036_v28  ;;  %v1492_v28 = vmul.f32 %v5733_v17, %v6047_v12 }
 0x555   : > { %4539 = vset.pattern.permute.xlu1 %v7116_v26  ;;  %v1156_v26 = vmul.f32 %v5717_v13, %v6015_v58 }
 0x556   : > { %1560 = vperm.xlu1 %4539, %v5609_v45  }
 0x557   : > { %v6012_v18 = vpop.permute.xlu1 %1524 }
 0x558   : > { %1505 = vrot.lane.b32.xlu0 %v1494_v33, %s5108_s22  ;;  %v1600_v33 = vmul.f32 %v5762_v24, %v6027_v61  ;;  %v1640_v24 = vmul.f32 %v5741_v19, %v6027_v61 }
 0x55a   : > { %1572 = vperm.xlu1 %4539, %v5611_v46  }
 0x55c   : > { %v6024_v7 = vpop.permute.xlu1 %1592  ;;  %1545 = vrot.lane.b32.xlu0 %v1534_v36, %s5109_s4  ;;  %v1236_v36 = vmul.f32 %v5723_v14, %v6015_v58  ;;  %v7046_v14 = vmov 20  }
 0x55e   : > { %1165 = vrot.lane.b32.xlu1 %v1156_v26, %s5107_s18  ;;  %v6049_v26 = vpop.permute.xlu0 %1412 }
 0x55f   : > { %4542 = vset.pattern.permute.xlu1 %v7118_v55  ;;  %7120 = vst [vmem:[#allocation69_spill] sm:$0xff] %v6049_v26 }
 0x560   : > { %1609 = vrot.lane.b32.xlu0 %v1600_v33, %s5107_s18  ;;  %v1452_v33 = vmul.f32 %v5747_v20, %v6047_v12  ;;  %v1680_v20 = vmul.f32 %v5770_v27, %v6027_v61  ;;  %v6081_v27 = vld [vmem:[#allocation2 + $0x98] sm:$0xff] }
 0x561   : > { %v6038_v13 = vpop.permute.xlu1 %1632 }
 0x562   : > { %1205 = vrot.lane.b32.xlu1 %v1196_v51, %s5108_s22  ;;  %v6054_v51 = vld [vmem:[#allocation2 + $0xd8] sm:$0xff]  ;;  %v6063_v26 = vpop.permute.xlu0 %1424 }
 0x563   : > { %v1602_v19 = vmul.f32 %v5935_v57, %v6054_v51  ;;  %7121 = vst [vmem:[#allocation70_spill] sm:$0xff] %v6063_v26  ;;  %v6073_v57 = vld [vmem:[#allocation2 + $0x8] sm:$0xff] }
 0x564   : > { %1720 = vperm.xlu0 %4541, %v5611_v46  }
 0x566   : > { %1245 = vrot.lane.b32.xlu1 %v1236_v36, %s5109_s4  ;;  %v1673_v55 = vpop.permute.xlu1 %1672  ;;  %v6076_v17 = vpop.permute.xlu0 %1564 }
 0x568   : > { %1649 = vrot.lane.b32.xlu0 %v1640_v24, %s5108_s22  ;;  %v1532_v24 = vmul.f32 %v5755_v22, %v6047_v12  ;;  %v1681_v22 = vmul.f32 %v1673_v55, %v6081_v27  ;;  %v1383_v55 = vmul.f32 %v5799_v42, %v6073_v57  ;;  %v1346_v42 = vmul.f32 %v5895_v53, %v5907_v60 }
 0x569   : > { %4544 = vset.pattern.permute.xlu0 %v7046_v14 }
 0x56a   : > { %1461 = vrot.lane.b32.xlu1 %v1452_v33, %s5107_s18  ;;  %v1303_v33 = vmul.f32 %v5791_v39, %v6073_v57 }
 0x56b   : > { %v1741_v36 = vpop.permute.xlu1 %1740 }
 0x56c   : > { %1613 = vrot.lane.b32.xlu0 %v1602_v19, %s5107_s18  ;;  %v6087_v19 = vld [vmem:[#allocation2 + $0x20] sm:$0xff] }
 0x56d   : > { %7122 = vst [vmem:[#allocation71_spill] sm:$0xff] %v6087_v19  ;;  %v1747_v39 = vmul.f32 %v5841_v47, %v6087_v19  ;;  %v1787_v47 = vmul.f32 %v5866_v34, %v6087_v19  ;;  %v1386_v34 = vmul.f32 %v5917_v0, %v5907_v60  ;;  %v1827_v53 = vmul.f32 %v5848_v52, %v6087_v19  ;;  %v6141_v0 = vld [vmem:[#allocation2 + $0xe0] sm:$0xff] }
 0x56e   : > { %1501 = vrot.lane.b32.xlu1 %v1492_v28, %s5108_s22  ;;  %7124 = vst [vmem:[#allocation73_spill] sm:$0xff] %v6141_v0  ;;  %v1533_v19 = vmul.f32 %v6012_v18, %v5992_v31 }
 0x570   : > { %v6070_v14 = vpop.permute.xlu1 %1780  ;;  %1689 = vrot.lane.b32.xlu0 %v1680_v20, %s5109_s4  ;;  %v1343_v20 = vmul.f32 %v5839_v15, %v6073_v57 }
 0x572   : > { %1541 = vrot.lane.b32.xlu1 %v1532_v24, %s5109_s4  ;;  %v6092_v24 = vpop.permute.xlu0 %1568 }
 0x573   : > { %7123 = vst [vmem:[#allocation72_spill] sm:$0xff] %v6092_v24  ;;  %v7047_v24 = vmov 24  }
 0x574   : > { %1860 = vperm.xlu0 %4544, %v5605_v44  }
 0x575   : > { %v6083_v28 = vpop.permute.xlu1 %1820 }
 0x576   : > { %1311 = vrot.lane.b32.xlu1 %v1303_v33, %s5107_s18  ;;  %v6103_v33 = vpop.permute.xlu0 %1313 }
 0x578   : > { %1691 = vrot.lane.b32.xlu0 %v1681_v22, %s5109_s4  ;;  %v1158_v22 = vmul.f32 %v5897_v40, %v5887_v59 }
 0x57a   : > { %1351 = vrot.lane.b32.xlu1 %v1343_v20, %s5108_s22  ;;  %v6097_v26 = vpop.permute.xlu1 %1888  ;;  %v6113_v20 = vld [vmem:[#allocation2 + $0xa0] sm:$0xff] }
 0x57b   : > { %v1749_v40 = vmul.f32 %v1741_v36, %v6113_v20 }
 0x57c   : > { %1755 = vrot.lane.b32.xlu0 %v1747_v39, %s5107_s18 }
 0x57e   : > { %1391 = vrot.lane.b32.xlu1 %v1383_v55, %s5109_s4  ;;  %v6120_v55 = vpop.permute.xlu0 %1353 }
 0x57f   : > { %v6105_v15 = vpop.permute.xlu1 %1928 }
 0x580   : > { %1864 = vperm.xlu0 %4544, %v5615_v49  }
 0x582   : > { %1169 = vrot.lane.b32.xlu1 %v1158_v22, %s5107_s18 }
 0x584   : > { %v6117_v39 = vpop.permute.xlu1 %1968  ;;  %1795 = vrot.lane.b32.xlu0 %v1787_v47, %s5108_s22  ;;  %v6133_v47 = vpop.permute.xlu0 %1393 }
 0x585   : > { %4545 = vset.pattern.permute.xlu0 %v7047_v24  ;;  %v1454_v24 = vmul.f32 %v5923_v5, %v6003_v38 }
 0x586   : > { %1357 = vrot.lane.b32.xlu1 %v1346_v42, %s5108_s22  ;;  %v1197_v42 = vmul.f32 %v5968_v6, %v5933_v2 }
 0x588   : > { %1759 = vrot.lane.b32.xlu0 %v1749_v40, %s5107_s18  ;;  %v6146_v52 = vpop.permute.xlu0 %1163  ;;  %v1790_v40 = vmul.f32 %v5915_v8, %v6141_v0 }
 0x589   : > { %v6128_v22 = vpop.permute.xlu1 %2036 }
 0x58a   : > { %1397 = vrot.lane.b32.xlu1 %v1386_v34, %s5109_s4  ;;  %v1830_v34 = vmul.f32 %v5949_v4, %v6141_v0  ;;  %v1345_v4 = vmul.f32 %v5982_v43, %v5985_v62  ;;  %v1493_v43 = vmul.f32 %v6001_v32, %v5992_v31  ;;  %v6201_v32 = vld [vmem:[#allocation2 + $0x18] sm:$0xff] }
 0x58b   : > { %7128 = vst [vmem:[#allocation77_spill] sm:$0xff] %v6201_v32 }
 0x58c   : > { %1835 = vrot.lane.b32.xlu0 %v1827_v53, %s5109_s4  ;;  %v6159_v6 = vpop.permute.xlu0 %1203  ;;  %v1305_v53 = vmul.f32 %v5976_v10, %v5985_v62 }
 0x58e   : > { %1465 = vrot.lane.b32.xlu1 %v1454_v24, %s5107_s18  ;;  %v6139_v36 = vpop.permute.xlu1 %2076  ;;  %v1237_v24 = vmul.f32 %v5972_v9, %v5933_v2 }
 0x590   : > { %2004 = vperm.xlu0 %4545, %v5609_v45  }
 0x592   : > { %1207 = vrot.lane.b32.xlu1 %v1197_v42, %s5108_s22  ;;  %v6166_v42 = vld [vmem:[#allocation2 + $0x68] sm:$0xff] }
 0x593   : > { %v6151_v5 = vpop.permute.xlu1 %2116  ;;  %7125 = vst [vmem:[#allocation74_spill] sm:$0xff] %v6166_v42  ;;  %v1896_v9 = vmul.f32 %v5789_v37, %v6166_v42  ;;  %v1936_v37 = vmul.f32 %v5757_v23, %v6166_v42 }
 0x594   : > { %1801 = vrot.lane.b32.xlu0 %v1790_v40, %s5108_s22 }
 0x596   : > { %1247 = vrot.lane.b32.xlu1 %v1237_v24, %s5109_s4  ;;  %v6176_v24 = vpop.permute.xlu0 %1243 }
 0x598   : > { %v6163_v8 = vpop.permute.xlu1 %2216  ;;  %1841 = vrot.lane.b32.xlu0 %v1830_v34, %s5109_s4 }
 0x59a   : > { %1315 = vrot.lane.b32.xlu1 %v1305_v53, %s5107_s18  ;;  %v6185_v34 = vpop.permute.xlu0 %1459  ;;  %v6190_v53 = vld [vmem:[#allocation2 + $0xe8] sm:$0xff] }
 0x59c   : > { %v6173_v40 = vpop.permute.xlu1 %2220  ;;  %1905 = vrot.lane.b32.xlu0 %v1896_v9, %s5107_s18  ;;  %v7049_v9 = vmov 28  }
 0x59d   : > { %7126 = vst [vmem:[#allocation75_spill] sm:$0xff] %v6173_v40  ;;  %v7133_v40 = vmov 20  }
 0x59e   : > { %1355 = vrot.lane.b32.xlu1 %v1345_v4, %s5108_s22  ;;  %v1898_v4 = vmul.f32 %v5952_v1, %v6190_v53  ;;  %v1599_v1 = vmul.f32 %v5824_v11, %v6201_v32  ;;  %v1639_v11 = vmul.f32 %v5858_v48, %v6201_v32 }
 0x5a0   : > { %2016 = vperm.xlu0 %4545, %v5611_v46  }
 0x5a1   : > { %v6180_v10 = vpop.permute.xlu1 %2188 }
 0x5a2   : > { %7127 = vst [vmem:[#allocation76_spill] sm:$0xff] %v6180_v10  ;;  %1712 = vperm.xlu1 %4542, %v5605_v44   ;;  %v1976_v10 = vmul.f32 %v5797_v41, %v6166_v42 }
 0x5a4   : > { %1945 = vrot.lane.b32.xlu0 %v1936_v37, %s5108_s22  ;;  %v6203_v37 = vpop.permute.xlu0 %1499 }
 0x5a5   : > { %4548 = vset.pattern.permute.xlu0 %v7049_v9  ;;  %7129 = vst [vmem:[#allocation78_spill] sm:$0xff] %v6203_v37  ;;  %v7145_v37 = vld [vmem:[#allocation67_spill] sm:$0xff] }
 0x5a6   : > { %1503 = vrot.lane.b32.xlu1 %v1493_v43, %s5108_s22  ;;  %v6196_v23 = vpop.permute.xlu1 %2256 }
 0x5a8   : > { %1909 = vrot.lane.b32.xlu0 %v1898_v4, %s5107_s18  ;;  %v6214_v18 = vpop.permute.xlu0 %1539  ;;  %v6219_v4 = vld [vmem:[#allocation2 + $0xa8] sm:$0xff] }
 0x5a9   : > { %7130 = vst [vmem:[#allocation79_spill] sm:$0xff] %v6214_v18  ;;  %v1977_v41 = vmul.f32 %v6117_v39, %v6219_v4  ;;  %v1601_v39 = vmul.f32 %v6024_v7, %v6081_v27  ;;  %v6253_v7 = vld [vmem:[#allocation2 + $0xb0] sm:$0xff] }
 0x5aa   : > { %1543 = vrot.lane.b32.xlu1 %v1533_v19, %s5109_s4  ;;  %v6224_v19 = vld [vmem:[#allocation2 + $0x30] sm:$0xff]  ;;  %7134 = vst [vmem:[#allocation82_spill] sm:$0xff] %v6253_v7 }
 0x5ab   : > { %v6208_v9 = vpop.permute.xlu1 %1123  ;;  %7131 = vst [vmem:[#allocation80_spill] sm:$0xff] %v6224_v19  ;;  %v2043_v42 = vmul.f32 %v5876_v56, %v6224_v19  ;;  %v2083_v56 = vmul.f32 %v5881_v50, %v6224_v19  ;;  %v1641_v50 = vmul.f32 %v6038_v13, %v6081_v27  ;;  %v2085_v13 = vmul.f32 %v6139_v36, %v6253_v7 }
 0x5ac   : > { %1985 = vrot.lane.b32.xlu0 %v1976_v10, %s5109_s4 }
 0x5ae   : > { %1607 = vrot.lane.b32.xlu1 %v1599_v1, %s5107_s18  ;;  %v6231_v1 = vpop.permute.xlu0 %1209 }
 0x5af   : > { %v6216_v43 = vpop.permute.xlu1 %1128 }
 0x5b0   : > { %2156 = vperm.xlu0 %4548, %v5605_v44  }
 0x5b2   : > { %1716 = vperm.xlu1 %4542, %v5615_v49   ;;  %v6243_v48 = vpop.permute.xlu0 %1249 }
 0x5b4   : > { %v6228_v10 = vpop.permute.xlu1 %2228  ;;  %1987 = vrot.lane.b32.xlu0 %v1977_v41, %s5109_s4  ;;  %v1679_v41 = vmul.f32 %v5833_v29, %v6201_v32  ;;  %v2045_v29 = vmul.f32 %v6128_v22, %v6253_v7  ;;  %v1642_v22 = vmul.f32 %v5909_v63, %v6054_v51  ;;  %v6288_v63 = vld [vmem:[#allocation2 + $0x60] sm:$0xff] }
 0x5b5   : > { %7132 = vst [vmem:[#allocation81_spill] sm:$0xff] %v6228_v10  ;;  %v1748_v36 = vmul.f32 %v5778_v30, %v6288_v63  ;;  %v6310_v30 = vld [vmem:[#allocation2 + $0xb8] sm:$0xff] }
 0x5b6   : > { %1647 = vrot.lane.b32.xlu1 %v1639_v11, %s5108_s22  ;;  %v7144_v32 = vld [vmem:[#allocation50_spill] sm:$0xff] }
 0x5b7   : > { %4543 = vset.pattern.permute.xlu1 %v7133_v40 }
 0x5b8   : > { %2051 = vrot.lane.b32.xlu0 %v2043_v42, %s5107_s18  ;;  %v6256_v42 = vpop.permute.xlu0 %1317 }
 0x5b9   : > { %v6240_v18 = vpop.permute.xlu1 %1264 }
 0x5ba   : > { %1611 = vrot.lane.b32.xlu1 %v1601_v39, %s5107_s18 }
 0x5bc   : > { %2160 = vperm.xlu0 %4548, %v5615_v49   ;;  %v6267_v39 = vpop.permute.xlu0 %1167 }
 0x5be   : > { %1687 = vrot.lane.b32.xlu1 %v1679_v41, %s5109_s4  ;;  %v6251_v40 = vpop.permute.xlu1 %2264  ;;  %v2123_v41 = vmul.f32 %v5883_v54, %v6224_v19 }
 0x5c0   : > { %2091 = vrot.lane.b32.xlu0 %v2083_v56, %s5108_s22  ;;  %v6277_v56 = vpop.permute.xlu0 %1395 }
 0x5c1   : > { %4549 = vset.pattern.permute.xlu0 %v7108_v35 }
 0x5c2   : > { %1856 = vperm.xlu1 %4543, %v5609_v45   ;;  %v6262_v11 = vpop.permute.xlu1 %2268 }
 0x5c3   : > { %7135 = vst [vmem:[#allocation83_spill] sm:$0xff] %v6262_v11 }
 0x5c4   : > { %2055 = vrot.lane.b32.xlu0 %v2045_v29, %s5107_s18  ;;  %v1682_v29 = vmul.f32 %v5941_v3, %v6054_v51  ;;  %v6292_v19 = vpop.permute.xlu0 %1463 }
 0x5c6   : > { %1651 = vrot.lane.b32.xlu1 %v1641_v50, %s5108_s22  ;;  %v2125_v50 = vmul.f32 %v6151_v5, %v6253_v7  ;;  %v7139_v7 = vmov 24  }
 0x5c7   : > { %v6272_v35 = vpop.permute.xlu1 %1276 }
 0x5c8   : > { %2131 = vrot.lane.b32.xlu0 %v2123_v41, %s5109_s4  ;;  %v6290_v41 = vld [vmem:[#allocation2 + $0x38] sm:$0xff] }
 0x5c9   : > { %7136 = vst [vmem:[#allocation84_spill] sm:$0xff] %v6290_v41  ;;  %v2191_v3 = vmul.f32 %v5979_v25, %v6290_v41 }
 0x5ca   : > { %1653 = vrot.lane.b32.xlu1 %v1642_v22, %s5108_s22 }
 0x5cc   : > { %v1417_v54 = vpop.permute.xlu1 %1416  ;;  %2095 = vrot.lane.b32.xlu0 %v2085_v13, %s5108_s22 }
 0x5ce   : > { %1693 = vrot.lane.b32.xlu1 %v1682_v29, %s5109_s4  ;;  %v2231_v29 = vmul.f32 %v6163_v8, %v6290_v41  ;;  %v7140_v8 = vld [vmem:[#allocation61_spill] sm:$0xff] }
 0x5cf   : > { %v1750_v11 = vmul.f32 %v7140_v8, %v6141_v0  ;;  %v7143_v8 = vld [vmem:[#allocation66_spill] sm:$0xff] }
 0x5d0   : > { %v6296_v22 = vpop.permute.xlu1 %1420  ;;  %2135 = vrot.lane.b32.xlu0 %v2125_v50, %s5109_s4  ;;  %v1788_v50 = vmul.f32 %v5749_v21, %v6288_v63  ;;  %v2271_v21 = vmul.f32 %v6196_v23, %v6290_v41 }
 0x5d2   : > { %1757 = vrot.lane.b32.xlu1 %v1748_v36, %s5107_s18 }
 0x5d3   : > { %v6302_v5 = vpop.permute.xlu0 %1708 }
 0x5d4   : > { %7137 = vst [vmem:[#allocation85_spill] sm:$0xff] %v6302_v5  ;;  %2199 = vrot.lane.b32.xlu0 %v2191_v3, %s5107_s18  ;;  %v2193_v3 = vmul.f32 %v5988_v16, %v6310_v30  ;;  %v7141_v5 = vld [vmem:[#allocation47_spill] sm:$0xff] }
 0x5d5   : > { %v6305_v13 = vpop.permute.xlu1 %1560  ;;  %v1132_v16 = vmul.f32 %v7141_v5, %v6015_v58  ;;  %v1280_v58 = vmul.f32 %v7145_v37, %v7144_v32  ;;  %v2273_v5 = vmul.f32 %v6251_v40, %v6310_v30  ;;  %v1829_v32 = vmul.f32 %v6083_v28, %v6113_v20  ;;  %v6357_v40 = vld [vmem:[#allocation2 + $0x28] sm:$0xff] }
 0x5d6   : > { %7138 = vst [vmem:[#allocation86_spill] sm:$0xff] %v6305_v13  ;;  %1868 = vperm.xlu1 %4543, %v5611_v46  }
 0x5d7   : > { %v6315_v25 = vpop.permute.xlu0 %1505 }
 0x5d8   : > { %2239 = vrot.lane.b32.xlu0 %v2231_v29, %s5108_s22 }
 0x5d9   : > { %v6317_v36 = vpop.permute.xlu1 %1572 }
 0x5da   : > { %1797 = vrot.lane.b32.xlu1 %v1788_v50, %s5108_s22  ;;  %v7142_v50 = vld [vmem:[#allocation48_spill] sm:$0xff] }
 0x5db   : > { %4546 = vset.pattern.permute.xlu1 %v7139_v7  ;;  %v6329_v29 = vpop.permute.xlu0 %1545  ;;  %v1828_v13 = vmul.f32 %v7142_v50, %v6288_v63 }
 0x5dc   : > { %2203 = vrot.lane.b32.xlu0 %v2193_v3, %s5107_s18  ;;  %v2233_v3 = vmul.f32 %v7143_v8, %v6310_v30 }
 0x5dd   : > { %v1166_v10 = vpop.permute.xlu1 %1165 }
 0x5de   : > { %1761 = vrot.lane.b32.xlu1 %v1750_v11, %s5107_s18  ;;  %v1176_v0 = vadd.f32 %v1166_v10, %v1132_v16 }
 0x5df   : > { %v1610_v11 = vpop.permute.xlu0 %1609 }
 0x5e0   : > { %2279 = vrot.lane.b32.xlu0 %v2271_v21, %s5109_s4  ;;  %v1789_v21 = vmul.f32 %v6070_v14, %v6113_v20 }
 0x5e1   : > { %v1206_v7 = vpop.permute.xlu1 %1205 }
 0x5e2   : > { %1837 = vrot.lane.b32.xlu1 %v1828_v13, %s5109_s4  ;;  %v1216_v23 = vadd.f32 %v1206_v7, %v1176_v0 }
 0x5e3   : > { %v6350_v16 = vpop.permute.xlu0 %1720 }
 0x5e4   : > { %2243 = vrot.lane.b32.xlu0 %v2233_v3, %s5108_s22 }
 0x5e5   : > { %v1246_v41 = vpop.permute.xlu1 %1245 }
 0x5e6   : > { %v1256_v50 = vadd.f32 %v1246_v41, %v1216_v23  ;;  %2008 = vperm.xlu1 %4546, %v5605_v44   ;;  %v7146_v44 = vld [vmem:[#allocation45_spill] sm:$0xff]  ;;  %v1428_v41 = vmul.f32 %v1417_v54, %v6047_v12 }
 0x5e7   : > { %v1650_v23 = vpop.permute.xlu0 %1649  ;;  %v7148_v54 = vld [vmem:[#allocation57_spill] sm:$0xff] }
 0x5e8   : > { %v1284_v10 = vadd.f32 %v1280_v58, %v1256_v50  ;;  %2283 = vrot.lane.b32.xlu0 %v2273_v5, %s5109_s4  ;;  %v1576_v50 = vmul.f32 %v6076_v17, %v6027_v61 }
 0x5e9   : > { %v1462_v0 = vpop.permute.xlu1 %1461 }
 0x5ea   : > { %v1324_v13 = vadd.f32 %v6103_v33, %v1284_v10  ;;  %1799 = vrot.lane.b32.xlu1 %v1789_v21, %s5108_s22  ;;  %v7147_v33 = vld [vmem:[#allocation55_spill] sm:$0xff]  ;;  %v1935_v21 = vmul.f32 %v7148_v54, %v6357_v40 }
 0x5eb   : > { %v1895_v8 = vmul.f32 %v7147_v33, %v6357_v40 }
 0x5ec   : > { %v1364_v37 = vadd.f32 %v6120_v55, %v1324_v13  ;;  %2391 = vrot.lane.b32.xlu0 %v7146_v44, %s5109_s4 }
 0x5ed   : > { %v1502_v14 = vpop.permute.xlu1 %1501 }
 0x5ee   : > { %v1404_v7 = vadd.f32 %v6133_v47, %v1364_v37  ;;  %1839 = vrot.lane.b32.xlu1 %v1829_v32, %s5109_s4  ;;  %v6370_v47 = vpop.permute.xlu0 %1613  ;;  %v7149_v32 = vmov 28   ;;  %v1897_v37 = vmul.f32 %v6097_v26, %v6219_v4 }
 0x5f0   : > { %v1432_v3 = vadd.f32 %v1428_v41, %v1404_v7  ;;  %v7150_v41 = vld [vmem:[#allocation56_spill] sm:$0xff] }
 0x5f1   : > { %v1542_v28 = vpop.permute.xlu1 %1541  ;;  %v1975_v7 = vmul.f32 %v7150_v41, %v6357_v40 }
 0x5f2   : > { %v1472_v58 = vadd.f32 %v1462_v0, %v1432_v3  ;;  %1903 = vrot.lane.b32.xlu1 %v1895_v8, %s5107_s18  ;;  %v1690_v17 = vpop.permute.xlu0 %1689 }
 0x5f4   : > { %v1512_v55 = vadd.f32 %v1502_v14, %v1472_v58  ;;  %v1937_v58 = vmul.f32 %v6105_v15, %v6219_v4  ;;  %v7153_v15 = vld [vmem:[#allocation53_spill] sm:$0xff] }
 0x5f5   : > { %v6365_v5 = vpop.permute.xlu1 %1311 }
 0x5f6   : > { %v1552_v12 = vadd.f32 %v1542_v28, %v1512_v55  ;;  %2012 = vperm.xlu1 %4546, %v5615_v49  }
 0x5f8   : > { %v1580_v10 = vadd.f32 %v1576_v50, %v1552_v12 }
 0x5f9   : > { %v6374_v13 = vpop.permute.xlu1 %1351 }
 0x5fa   : > { %v1620_v0 = vadd.f32 %v1610_v11, %v1580_v10  ;;  %1943 = vrot.lane.b32.xlu1 %v1935_v21, %s5108_s22  ;;  %v1134_v11 = vmul.f32 %v6216_v43, %v5887_v59  ;;  %v7151_v43 = vld [vmem:[#allocation59_spill] sm:$0xff]  ;;  %v7154_v21 = vld [vmem:[#allocation58_spill] sm:$0xff] }
 0x5fb   : > { %4547 = vset.pattern.permute.xlu1 %v7149_v32  ;;  %v1131_v10 = vmul.f32 %v7154_v21, %v7153_v15 }
 0x5fc   : > { %v1660_v61 = vadd.f32 %v1650_v23, %v1620_v0  ;;  %v1282_v23 = vmul.f32 %v6272_v35, %v5907_v60  ;;  %v7152_v60 = vld [vmem:[#allocation70_spill] sm:$0xff] }
 0x5fd   : > { %v1392_v14 = vpop.permute.xlu1 %1391  ;;  %v1430_v35 = vmul.f32 %v7152_v60, %v6003_v38  ;;  %v7161_v60 = vld [vmem:[#allocation69_spill] sm:$0xff] }
 0x5fe   : > { %1907 = vrot.lane.b32.xlu1 %v1897_v37, %s5107_s18  ;;  %v6381_v49 = vadd.f32 %v1690_v17, %v1660_v61  ;;  %v6408_v61 = vld [vmem:[#allocation2 + $0x70] sm:$0xff]  ;;  %v1175_v17 = vadd.f32 %v6146_v52, %v1131_v10  ;;  %v6421_v52 = vpop.permute.xlu0 %1860 }
 0x601   : > { %v1170_v33 = vpop.permute.xlu1 %1169 }
 0x602   : > { %v1178_v8 = vadd.f32 %v1170_v33, %v1134_v11  ;;  %1983 = vrot.lane.b32.xlu1 %v1975_v7, %s5109_s4  ;;  %v1215_v7 = vadd.f32 %v6159_v6, %v1175_v17  ;;  %v1279_v11 = vmul.f32 %v6240_v18, %v6073_v57 }
 0x604   : > { %v1218_v3 = vadd.f32 %v6231_v1, %v1178_v8  ;;  %v1938_v1 = vmul.f32 %v7151_v43, %v6190_v53 }
 0x605   : > { %v1358_v26 = vpop.permute.xlu1 %1357 }
 0x606   : > { %v1258_v28 = vadd.f32 %v6243_v48, %v1218_v3  ;;  %2152 = vperm.xlu1 %4547, %v5609_v45   ;;  %v1133_v45 = vmul.f32 %v6208_v9, %v5933_v2  ;;  %v7156_v2 = vld [vmem:[#allocation49_spill] sm:$0xff]  ;;  %v7157_v3 = vld [vmem:[#allocation68_spill] sm:$0xff] }
 0x607   : > { %v2044_v9 = vmul.f32 %v7156_v2, %v6408_v61  ;;  %v7164_v2 = vld [vmem:[#allocation72_spill] sm:$0xff] }
 0x608   : > { %v1286_v55 = vadd.f32 %v1282_v23, %v1258_v28  ;;  %v1177_v38 = vadd.f32 %v6267_v39, %v1133_v45  ;;  %v1255_v39 = vadd.f32 %v6176_v24, %v1215_v7  ;;  %v1578_v28 = vmul.f32 %v6317_v36, %v6054_v51  ;;  %v6433_v24 = vpop.permute.xlu0 %1691  ;;  %v7158_v51 = vld [vmem:[#allocation46_spill] sm:$0xff] }
 0x609   : > { %v1398_v50 = vpop.permute.xlu1 %1397  ;;  %v2084_v36 = vmul.f32 %v7158_v51, %v6408_v61  ;;  %v1429_v45 = vmul.f32 %v6296_v22, %v5992_v31 }
 0x60a   : > { %v1326_v59 = vadd.f32 %v6256_v42, %v1286_v55  ;;  %1947 = vrot.lane.b32.xlu1 %v1937_v58, %s5108_s22  ;;  %v7155_v42 = vld [vmem:[#allocation62_spill] sm:$0xff]  ;;  %v1283_v57 = vadd.f32 %v1279_v11, %v1255_v39  ;;  %v7166_v11 = vld [vmem:[#allocation64_spill] sm:$0xff] }
 0x60b   : > { %v1978_v0 = vmul.f32 %v7155_v42, %v6190_v53  ;;  %v7162_v42 = vld [vmem:[#allocation51_spill] sm:$0xff] }
 0x60c   : > { %v1366_v12 = vadd.f32 %v1358_v26, %v1326_v59  ;;  %v1281_v26 = vmul.f32 %v7157_v3, %v5985_v62 }
 0x60d   : > { %v1466_v54 = vpop.permute.xlu1 %1465 }
 0x60e   : > { %v1406_v48 = vadd.f32 %v1398_v50, %v1366_v12  ;;  %1949 = vrot.lane.b32.xlu1 %v1938_v1, %s5108_s22  ;;  %v1323_v50 = vadd.f32 %v6365_v5, %v1283_v57 }
 0x610   : > { %v1434_v32 = vadd.f32 %v1430_v35, %v1406_v48 }
 0x611   : > { %v1208_v37 = vpop.permute.xlu1 %1207 }
 0x612   : > { %v1474_v41 = vadd.f32 %v1466_v54, %v1434_v32  ;;  %1989 = vrot.lane.b32.xlu1 %v1978_v0, %s5109_s4  ;;  %v1217_v8 = vadd.f32 %v1208_v37, %v1177_v38  ;;  %v6439_v54 = vld [vmem:[#allocation2 + $0xf0] sm:$0xff]  ;;  %v2124_v0 = vmul.f32 %v7162_v42, %v6408_v61 }
 0x613   : > { %v7176_v42 = vld [vmem:[#allocation81_spill] sm:$0xff] }
 0x614   : > { %v1514_v33 = vadd.f32 %v6315_v25, %v1474_v41 }
 0x615   : > { %v1248_v23 = vpop.permute.xlu1 %1247 }
 0x616   : > { %v1554_v58 = vadd.f32 %v6329_v29, %v1514_v33  ;;  %v1257_v6 = vadd.f32 %v1248_v23, %v1217_v8  ;;  %2053 = vrot.lane.b32.xlu1 %v2044_v9, %s5107_s18  ;;  %v1363_v29 = vadd.f32 %v6374_v13, %v1323_v50  ;;  %v1756_v13 = vpop.permute.xlu0 %1755  ;;  %v1577_v9 = vmul.f32 %v7164_v2, %v6081_v27  ;;  %v6468_v8 = vld [vmem:[#allocation2 + $0x78] sm:$0xff]  ;;  %v7167_v23 = vld [vmem:[#allocation79_spill] sm:$0xff] }
 0x617   : > { %v7171_v50 = vld [vmem:[#allocation75_spill] sm:$0xff] }
 0x618   : > { %v1285_v18 = vadd.f32 %v1281_v26, %v1257_v6  ;;  %v1582_v25 = vadd.f32 %v1578_v28, %v1554_v58  ;;  %v1403_v1 = vadd.f32 %v1392_v14, %v1363_v29  ;;  %v7168_v28 = vld [vmem:[#allocation52_spill] sm:$0xff]  ;;  %v7169_v58 = vld [vmem:[#allocation77_spill] sm:$0xff]  ;;  %v7170_v6 = vld [vmem:[#allocation86_spill] sm:$0xff]  ;;  %v2232_v51 = vmul.f32 %v7171_v50, %v6468_v8 }
 0x619   : > { %v1316_v55 = vpop.permute.xlu1 %1315  ;;  %v2192_v27 = vmul.f32 %v7168_v28, %v6468_v8  ;;  %v1575_v57 = vmul.f32 %v7170_v6, %v7169_v58  ;;  %v6481_v29 = vld [vmem:[#allocation2 + $0xf8] sm:$0xff]  ;;  %v2402_v58 = vld [vmem:[#allocation15 + $0x18] sm:$0xff]  ;;  %v2399_v6 = vld [vmem:[#allocation15] sm:$0xff] }
 0x61a   : > { %2164 = vperm.xlu1 %4547, %v5611_v46   ;;  %v6431_v62 = vadd.f32 %v6370_v47, %v1582_v25  ;;  %v1325_v59 = vadd.f32 %v1316_v55, %v1285_v18  ;;  %v7159_v46 = vld [vmem:[#allocation63_spill] sm:$0xff]  ;;  %v7160_v47 = vld [vmem:[#allocation54_spill] sm:$0xff]  ;;  %v6458_v22 = vpop.permute.xlu0 %1864 }
 0x61b   : > { %v2046_v5 = vmul.f32 %v7159_v46, %v6439_v54  ;;  %v1427_v35 = vmul.f32 %v7161_v60, %v7160_v47  ;;  %v7173_v60 = vld [vmem:[#allocation65_spill] sm:$0xff] }
 0x61d   : > { %v1356_v43 = vpop.permute.xlu1 %1355  ;;  %v1431_v21 = vadd.f32 %v1427_v35, %v1403_v1  ;;  %v7172_v1 = vld [vmem:[#allocation76_spill] sm:$0xff]  ;;  %v2272_v35 = vmul.f32 %v7173_v60, %v6468_v8 }
 0x61e   : > { %v1365_v12 = vadd.f32 %v1356_v43, %v1325_v59  ;;  %2093 = vrot.lane.b32.xlu1 %v2084_v36, %s5108_s22  ;;  %v1796_v3 = vpop.permute.xlu0 %1795 }
 0x61f   : > { %v1471_v31 = vadd.f32 %v6185_v34, %v1431_v21  ;;  %v2126_v34 = vmul.f32 %v7166_v11, %v6439_v54 }
 0x620   : > { %v1405_v48 = vadd.f32 %v6277_v56, %v1365_v12  ;;  %v2194_v12 = vmul.f32 %v7172_v1, %v6481_v29 }
 0x621   : > { %v1713_v15 = vpop.permute.xlu1 %1712 }
 0x622   : > { %v1724_v14 = vmul.f32 %v1713_v15, %v6288_v63  ;;  %2057 = vrot.lane.b32.xlu1 %v2046_v5, %s5107_s18  ;;  %v1433_v10 = vadd.f32 %v1429_v45, %v1405_v48  ;;  %v7163_v63 = vld [vmem:[#allocation60_spill] sm:$0xff]  ;;  %v6477_v55 = vpop.permute.xlu0 %1759  ;;  %v7174_v48 = vld [vmem:[#allocation71_spill] sm:$0xff]  ;;  %v7175_v15 = vld [vmem:[#allocation85_spill] sm:$0xff] }
 0x623   : > { %v2086_v41 = vmul.f32 %v7163_v63, %v6439_v54  ;;  %v1723_v21 = vmul.f32 %v7175_v15, %v7174_v48 }
 0x624   : > { %v1473_v32 = vadd.f32 %v6292_v19, %v1433_v10  ;;  %v6454_v37 = vadd.f32 %v1724_v14, %v6381_v49  ;;  %v7165_v19 = vld [vmem:[#allocation78_spill] sm:$0xff] }
 0x625   : > { %v1504_v17 = vpop.permute.xlu1 %1503  ;;  %v1511_v49 = vadd.f32 %v7165_v19, %v1471_v31 }
 0x626   : > { %v1513_v56 = vadd.f32 %v1504_v17, %v1473_v32  ;;  %2133 = vrot.lane.b32.xlu1 %v2124_v0, %s5109_s4  ;;  %v1836_v46 = vpop.permute.xlu0 %1835  ;;  %v2234_v0 = vmul.f32 %v7176_v42, %v6481_v29  ;;  %v7181_v42 = vld [vmem:[#allocation74_spill] sm:$0xff] }
 0x627   : > { %v1551_v39 = vadd.f32 %v7167_v23, %v1511_v49 }
 0x629   : > { %v1544_v38 = vpop.permute.xlu1 %1543  ;;  %v1579_v25 = vadd.f32 %v1575_v57, %v1551_v39  ;;  %v2401_v57 = vld [vmem:[#allocation15 + $0x10] sm:$0xff] }
 0x62a   : > { %v1553_v7 = vadd.f32 %v1544_v38, %v1513_v56  ;;  %2097 = vrot.lane.b32.xlu1 %v2086_v41, %s5108_s22  ;;  %v6492_v10 = vpop.permute.xlu0 %2004  ;;  %v7177_v56 = vld [vmem:[#allocation83_spill] sm:$0xff] }
 0x62b   : > { %v2274_v63 = vmul.f32 %v7177_v56, %v6481_v29 }
 0x62c   : > { %v1581_v33 = vadd.f32 %v1577_v9, %v1553_v7 }
 0x62d   : > { %v1608_v26 = vpop.permute.xlu1 %1607 }
 0x62e   : > { %2137 = vrot.lane.b32.xlu1 %v2126_v34, %s5109_s4  ;;  %v1619_v36 = vadd.f32 %v1608_v26, %v1579_v25  ;;  %v1802_v38 = vpop.permute.xlu0 %1801  ;;  %v2406_v25 = vld [vmem:[#allocation15 + $0x38] sm:$0xff] }
 0x631   : > { %v1717_v18 = vpop.permute.xlu1 %1716 }
 0x632   : > { %2201 = vrot.lane.b32.xlu1 %v2192_v27, %s5107_s18  ;;  %v1725_v49 = vmul.f32 %v1717_v18, %v6113_v20  ;;  %v1842_v23 = vpop.permute.xlu0 %1841  ;;  %v7180_v20 = vld [vmem:[#allocation73_spill] sm:$0xff] }
 0x633   : > { %v2400_v27 = vld [vmem:[#allocation15 + $0x8] sm:$0xff] }
 0x634   : > { %v2404_v18 = vld [vmem:[#allocation15 + $0x28] sm:$0xff] }
 0x635   : > { %v1648_v59 = vpop.permute.xlu1 %1647 }
 0x636   : > { %v1659_v43 = vadd.f32 %v1648_v59, %v1619_v36  ;;  %2241 = vrot.lane.b32.xlu1 %v2232_v51, %s5108_s22  ;;  %v4142_v51 = vpack.c.bf16 %v2401_v57, %v2399_v6  ;;  %v4144_v36 = vpack.c.bf16 %v2406_v25, %v2404_v18  ;;  %v2403_v59 = vld [vmem:[#allocation15 + $0x20] sm:$0xff]  ;;  %v1906_v1 = vpop.permute.xlu0 %1905 }
 0x639   : > { %v1612_v5 = vpop.permute.xlu1 %1611 }
 0x63a   : > { %v1621_v47 = vadd.f32 %v1612_v5, %v1581_v33  ;;  %2205 = vrot.lane.b32.xlu1 %v2194_v12, %s5107_s18 }
 0x63d   : > { %v1688_v45 = vpop.permute.xlu1 %1687 }
 0x63e   : > { %v1699_v14 = vadd.f32 %v1688_v45, %v1659_v43  ;;  %2281 = vrot.lane.b32.xlu1 %v2272_v35, %s5109_s4  ;;  %v2405_v43 = vld [vmem:[#allocation15 + $0x30] sm:$0xff] }
 0x640   : > { %v1727_v32 = vadd.f32 %v1723_v21, %v1699_v14 }
 0x641   : > { %v1857_v17 = vpop.permute.xlu1 %1856 }
 0x642   : > { %v1767_v31 = vadd.f32 %v1756_v13, %v1727_v32  ;;  %2245 = vrot.lane.b32.xlu1 %v2234_v0, %s5108_s22  ;;  %v1871_v9 = vmul.f32 %v1857_v17, %v6357_v40  ;;  %v2295_v40 = vld [vmem:[%s7179_s28] sm:$0xff]  ;;  %v1872_v0 = vmul.f32 %v6421_v52, %v7181_v42 }
 0x643   : > { %3939 = vmatprep.mubr.msk.f32.mxu1 %vm913_vm2, %v2295_v40 }
 0x644   : > { %v1807_v41 = vadd.f32 %v1796_v3, %v1767_v31  ;;  %v7178_v3 = vld [vmem:[#allocation44_spill] sm:$0xff] }
 0x645   : > { %v1652_v2 = vpop.permute.xlu1 %1651 }
 0x646   : > { %v1661_v7 = vadd.f32 %v1652_v2, %v1621_v47  ;;  %2285 = vrot.lane.b32.xlu1 %v2274_v63, %s5109_s4  ;;  %v1847_v19 = vadd.f32 %v1836_v46, %v1807_v41  ;;  %v6515_v47 = vpop.permute.xlu0 %2016 }
 0x648   : > { %v1701_v11 = vadd.f32 %v6433_v24, %v1661_v7  ;;  %v6503_v34 = vadd.f32 %v1871_v9, %v1847_v19  ;;  %v1726_v24 = vmul.f32 %v6350_v16, %v7180_v20  ;;  %v4146_v16 = vpack.c.bf16 %v2405_v43, %v2403_v59  ;;  %v7183_v43 = vld [vmem:[#allocation82_spill] sm:$0xff] }
 0x649   : > { %v1654_v13 = vpop.permute.xlu1 %1653 }
 0x64a   : > { %v1662_v33 = vadd.f32 %v1654_v13, %v6431_v62  ;;  %v1729_v26 = vadd.f32 %v1725_v49, %v1701_v11  ;;  %2393 = vrot.lane.b32.xlu1 %v7178_v3, %s5109_s4  ;;  %v4140_v62 = vpack.c.bf16 %v2402_v58, %v2400_v27  ;;  %v1946_v45 = vpop.permute.xlu0 %1945 }
 0x64c   : > { %4141 = vmatprep.subr.bf16.mxu0 %v4140_v62  ;;  %v1769_v9 = vadd.f32 %v6477_v55, %v1729_v26  ;;  %v7182_v62 = vld [vmem:[#allocation80_spill] sm:$0xff] }
 0x64d   : > { %v1694_v39 = vpop.permute.xlu1 %1693  ;;  %4143 = vmatpush1.bf16.msra.mxu0 %v4142_v51  ;;  %v2019_v57 = vmul.f32 %v6492_v10, %v7182_v62 }
 0x64e   : > { %v1702_v28 = vadd.f32 %v1694_v39, %v1662_v33  ;;  %4145 = vmatprep.subr.bf16.mxu0 %v4144_v36  ;;  %v1910_v31 = vpop.permute.xlu0 %1909 }
 0x650   : > { %v1730_v50 = vadd.f32 %v1726_v24, %v1702_v28 }
 0x651   : > { %v1758_v12 = vpop.permute.xlu1 %1757  ;;  %4147 = vmatpush1.bf16.msra.mxu0 %v4146_v16 }
 0x652   : > { %v1768_v46 = vadd.f32 %v1758_v12, %v6454_v37  ;;  %v1986_v19 = vpop.permute.xlu0 %1985 }
 0x655   : > { %v1869_v5 = vpop.permute.xlu1 %1868 }
 0x656   : > { %v1874_v32 = vmul.f32 %v1869_v5, %v6190_v53  ;;  %v1873_v53 = vmul.f32 %v6458_v22, %v6219_v4  ;;  %v2157_v39 = vpop.permute.xlu0 %2156 }
 0x659   : > { %v1798_v60 = vpop.permute.xlu1 %1797 }
 0x65a   : > { %v1808_v35 = vadd.f32 %v1798_v60, %v1768_v46  ;;  %v1988_v28 = vpop.permute.xlu0 %1987 }
 0x65d   : > { %v1762_v48 = vpop.permute.xlu1 %1761 }
 0x65e   : > { %v1770_v15 = vadd.f32 %v1762_v48, %v1730_v50  ;;  %v2052_v55 = vpop.permute.xlu0 %2051 }
 0x660   : > { %v1810_v21 = vadd.f32 %v1802_v38, %v1770_v15 }
 0x661   : > { %v1838_v14 = vpop.permute.xlu1 %1837 }
 0x662   : > { %v1850_v37 = vadd.f32 %v1842_v23, %v1810_v21  ;;  %v1848_v17 = vadd.f32 %v1838_v14, %v1808_v35  ;;  %v2161_v25 = vpop.permute.xlu0 %2160 }
 0x664   : > { %v1876_v56 = vadd.f32 %v1872_v0, %v1848_v17  ;;  %v1878_v63 = vadd.f32 %v1874_v32, %v1850_v37 }
 0x665   : > { %v2009_v41 = vpop.permute.xlu1 %2008 }
 0x666   : > { %v1916_v2 = vadd.f32 %v1906_v1, %v1876_v56  ;;  %v2020_v38 = vmul.f32 %v2009_v41, %v6408_v61  ;;  %v2092_v51 = vpop.permute.xlu0 %2091 }
 0x668   : > { %v1956_v7 = vadd.f32 %v1946_v45, %v1916_v2 }
 0x669   : > { %v1800_v49 = vpop.permute.xlu1 %1799 }
 0x66a   : > { %v1809_v11 = vadd.f32 %v1800_v49, %v1769_v9  ;;  %v1996_v13 = vadd.f32 %v1986_v19, %v1956_v7  ;;  %v2056_v5 = vpop.permute.xlu0 %2055  ;;  %v1918_v9 = vadd.f32 %v1910_v31, %v1878_v63  ;;  %v7184_v7 = vld [vmem:[#allocation84_spill] sm:$0xff]  ;;  %v2169_v63 = vmul.f32 %v2161_v25, %v6310_v30 }
 0x66c   : > { %v2024_v33 = vadd.f32 %v2020_v38, %v1996_v13 }
 0x66d   : > { %v1840_v52 = vpop.permute.xlu1 %1839 }
 0x66e   : > { %v1849_v23 = vadd.f32 %v1840_v52, %v1809_v11  ;;  %v2132_v60 = vpop.permute.xlu0 %2131 }
 0x670   : > { %v1877_v40 = vadd.f32 %v1873_v53, %v1849_v23 }
 0x671   : > { %v1904_v20 = vpop.permute.xlu1 %1903 }
 0x672   : > { %v1915_v58 = vadd.f32 %v1904_v20, %v6503_v34  ;;  %v2096_v48 = vpop.permute.xlu0 %2095  ;;  %v2022_v20 = vmul.f32 %v6515_v47, %v6439_v54 }
 0x675   : > { %v2013_v24 = vpop.permute.xlu1 %2012 }
 0x676   : > { %v2021_v1 = vmul.f32 %v2013_v24, %v7183_v43  ;;  %v2136_v15 = vpop.permute.xlu0 %2135 }
 0x679   : > { %v1944_v27 = vpop.permute.xlu1 %1943 }
 0x67a   : > { %v1955_v6 = vadd.f32 %v1944_v27, %v1915_v58  ;;  %v2200_v0 = vpop.permute.xlu0 %2199  ;;  %v2168_v27 = vmul.f32 %v2157_v39, %v6468_v8 }
 0x67d   : > { %v1908_v26 = vpop.permute.xlu1 %1907 }
 0x67e   : > { %v1917_v22 = vadd.f32 %v1908_v26, %v1877_v40  ;;  %v2240_v17 = vpop.permute.xlu0 %2239 }
 0x681   : > { %v1984_v61 = vpop.permute.xlu1 %1983 }
 0x682   : > { %v1995_v18 = vadd.f32 %v1984_v61, %v1955_v6  ;;  %v2204_v40 = vpop.permute.xlu0 %2203 }
 0x684   : > { %v2023_v50 = vadd.f32 %v2019_v57, %v1995_v18 }
 0x685   : > { %v2153_v4 = vpop.permute.xlu1 %2152 }
 0x686   : > { %v2063_v42 = vadd.f32 %v2052_v55, %v2023_v50  ;;  %v2167_v19 = vmul.f32 %v2153_v4, %v7184_v7  ;;  %v2280_v6 = vpop.permute.xlu0 %2279 }
 0x688   : > { %v2103_v37 = vadd.f32 %v2092_v51, %v2063_v42  ;;  %v2414_v42 = vld [vmem:[#allocation15 + $0x78] sm:$0xff] }
 0x689   : > { %v1948_v36 = vpop.permute.xlu1 %1947 }
 0x68a   : > { %v1957_v59 = vadd.f32 %v1948_v36, %v1917_v22  ;;  %v2143_v41 = vadd.f32 %v2132_v60, %v2103_v37  ;;  %v2244_v36 = vpop.permute.xlu0 %2243  ;;  %v2413_v37 = vld [vmem:[#allocation15 + $0x70] sm:$0xff] }
 0x68c   : > { %v1997_v12 = vadd.f32 %v1988_v28, %v1957_v59  ;;  %v2171_v13 = vadd.f32 %v2167_v19, %v2143_v41 }
 0x68d   : > { %v1950_v46 = vpop.permute.xlu1 %1949 }
 0x68e   : > { %v2025_v16 = vadd.f32 %v2021_v1, %v1997_v12  ;;  %v1958_v49 = vadd.f32 %v1950_v46, %v1918_v9  ;;  %v2211_v55 = vadd.f32 %v2200_v0, %v2171_v13  ;;  %v2284_v46 = vpop.permute.xlu0 %2283  ;;  %v3788_v9 = vld [vmem:[#allocation11] ss:$0 sm:$0xff] }
 0x690   : > { %v2065_v2 = vadd.f32 %v2056_v5, %v2025_v16  ;;  %v2251_v18 = vadd.f32 %v2240_v17, %v2211_v55 }
 0x691   : > { %v1990_v34 = vpop.permute.xlu1 %1989 }
 0x692   : > { %v2105_v52 = vadd.f32 %v2096_v48, %v2065_v2  ;;  %v1998_v53 = vadd.f32 %v1990_v34, %v1958_v49  ;;  %v2291_v51 = vadd.f32 %v2280_v6, %v2251_v18 }
 0x694   : > { %v2145_v26 = vadd.f32 %v2136_v15, %v2105_v52  ;;  %v2026_v31 = vadd.f32 %v2022_v20, %v1998_v53  ;;  %v2409_v15 = vld [vmem:[#allocation15 + $0x50] sm:$0xff] }
 0x695   : > { %v2054_v35 = vpop.permute.xlu1 %2053 }
 0x696   : > { %v2064_v38 = vadd.f32 %v2054_v35, %v2024_v33  ;;  %v2173_v50 = vadd.f32 %v2169_v63, %v2145_v26  ;;  %v2408_v35 = vld [vmem:[#allocation15 + $0x48] sm:$0xff] }
 0x698   : > { %v2213_v39 = vadd.f32 %v2204_v40, %v2173_v50  ;;  %v7185_v40 = vld [vmem:[#allocation42_spill] sm:$0xff] }
 0x699   : > { %v2165_v45 = vpop.permute.xlu1 %2164 }
 0x69a   : > { %v2170_v47 = vmul.f32 %v2165_v45, %v6481_v29  ;;  %v2253_v1 = vadd.f32 %v2244_v36, %v2213_v39  ;;  %v2296_v29 = vld [vmem:[%s7179_s28 + $0x8] sm:$0xff] }
 0x69b   : > { %v2410_v45 = vld [vmem:[#allocation15 + $0x58] sm:$0xff] }
 0x69c   : > { %v2293_v5 = vadd.f32 %v2284_v46, %v2253_v1  ;;  %v4148_v48 = vpack.c.bf16 %v2410_v45, %v2408_v35 }
 0x69d   : > { %v2094_v10 = vpop.permute.xlu1 %2093 }
 0x69e   : > { %v2104_v23 = vadd.f32 %v2094_v10, %v2064_v38  ;;  %v2407_v10 = vld [vmem:[#allocation15 + $0x40] sm:$0xff]  ;;  %4149 = vmatprep.subr.bf16.mxu0 %v4148_v48 }
 0x6a1   : > { %v2058_v21 = vpop.permute.xlu1 %2057 }
 0x6a2   : > { %v2066_v58 = vadd.f32 %v2058_v21, %v2026_v31  ;;  %v4150_v21 = vpack.c.bf16 %v2409_v15, %v2407_v10 }
 0x6a4   : > { %4151 = vmatpush1.bf16.msra.mxu0 %v4150_v21 }
 0x6a5   : > { %v2134_v14 = vpop.permute.xlu1 %2133 }
 0x6a6   : > { %v2144_v24 = vadd.f32 %v2134_v14, %v2104_v23  ;;  %v2412_v14 = vld [vmem:[#allocation15 + $0x68] sm:$0xff] }
 0x6a7   : > { %v4152_v0 = vpack.c.bf16 %v2414_v42, %v2412_v14 }
 0x6a8   : > { %v2172_v33 = vadd.f32 %v2168_v27, %v2144_v24  ;;  %v7186_v27 = vld [vmem:[#allocation43_spill] sm:$0xff] }
 0x6a9   : > { %v2098_v32 = vpop.permute.xlu1 %2097  ;;  %4153 = vmatprep.subr.bf16.mxu0 %v4152_v0 }
 0x6aa   : > { %v2106_v62 = vadd.f32 %v2098_v32, %v2066_v58  ;;  %v2411_v32 = vld [vmem:[#allocation15 + $0x60] sm:$0xff] }
 0x6ab   : > { %v4154_v17 = vpack.c.bf16 %v2413_v37, %v2411_v32 }
 0x6ad   : > { %v2138_v56 = vpop.permute.xlu1 %2137  ;;  %4155 = vmatpush1.bf16.msra.mxu0 %v4154_v17 }
 0x6ae   : > { %v2146_v4 = vadd.f32 %v2138_v56, %v2106_v62  ;;  %v5114_v56 = vmov 0.0  }
 0x6af   : > { %2497 = vmatprep.mubr.f32.mxu0 %v5114_v56 }
 0x6b0   : > { %v2174_v59 = vadd.f32 %v2170_v47, %v2146_v4 }
 0x6b1   : > { %v2202_v11 = vpop.permute.xlu1 %2201 }
 0x6b2   : > { %v2212_v57 = vadd.f32 %v2202_v11, %v2172_v33  ;;  %v6540_v11 = vpop.permute.xlu0 %2391 }
 0x6b5   : > { %v2242_v28 = vpop.permute.xlu1 %2241 }
 0x6b6   : > { %v2252_v22 = vadd.f32 %v2242_v28, %v2212_v57 }
 0x6b9   : > { %v2206_v61 = vpop.permute.xlu1 %2205 }
 0x6ba   : > { %v2214_v25 = vadd.f32 %v2206_v61, %v2174_v59 }
 0x6bd   : > { %v2282_v54 = vpop.permute.xlu1 %2281 }
 0x6be   : > { %v2292_v8 = vadd.f32 %v2282_v54, %v2252_v22 }
 0x6c0   : > { %v4132_v43 = vpack.c.bf16 %v2292_v8, %v2291_v51 }
 0x6c1   : > { %v2246_v30 = vpop.permute.xlu1 %2245 }
 0x6c2   : > { %4133 = vmatprep.subr.bf16.mxu1 %v4132_v43  ;;  %v2254_v12 = vadd.f32 %v2246_v30, %v2214_v25 }
 0x6c3   : > { %4135 = vmatpush3.bf16.msra.mxu1 %v4132_v43 }
 0x6c5   : > { %v2286_v16 = vpop.permute.xlu1 %2285 }
 0x6c6   : > { %v2294_v34 = vadd.f32 %v2286_v16, %v2254_v12 }
 0x6c8   : > { %v4136_v60 = vpack.c.bf16 %v2294_v34, %v2293_v5 }
 0x6c9   : > { %v6544_v23 = vpop.permute.xlu1 %2393 }
 0x6ca   : > { %4137 = vmatprep.subr.bf16.mxu1 %v4136_v60 }
 0x6cb   : > { %4139 = vmatpush3.bf16.msra.mxu1 %v4136_v60 }
 0x6ce   : > { %3940 = vmatmul.mubr.msk.f32.vlgmr.msra.gmra.mrb[4].mxu1 %vm913_vm2, %v2296_v29 }
 0x7a1   : > { %v3941_v41 = vpop.f32.mrb[4].mxu1 }
 0x7a2   : > { %v2375_v2 = vadd.f32 %v7178_v3, %v3941_v41  ;;  %v2369_v7 = vpop.f32.mrb[5].mxu1 }
 0x7a3   : > { %v2370_v19 = vadd.f32 %v7146_v44, %v2369_v7  ;;  %v2415_v44 = vld [vmem:[#allocation17] sm:$0x3] }
 0x7a4   : > { %v2386_v49 = vadd.f32 %v3788_v9, %v2375_v2  ;;  %v2420_v20 = vrot.slane %v2415_v44, %v7185_v40  ;;  %v2424_v55 = vrot.slane %v2415_v44, %v7186_v27  ;;  %v2696_v44 = vld [vmem:[%s7190_s5 + $0x8] sm:$0xff] (%p999_p2) }
 0x7a5   : > { %v2385_v38 = vadd.f32 %v3788_v9, %v2370_v19  ;;  %v7192_v40 = vld [vmem:[#allocation40_spill] sm:$0xff] (%p999_p2) }
 0x7a6   : > { %v2388_v52 = vmax.f32 %v2386_v49, 0.0  ;;  %v3795_v27 = vld [vmem:[#allocation14] ss:$0 sm:$0xff] (%p999_p2) }
 0x7a7   : > { %v2387_v13 = vmax.f32 %v2385_v38, 0.0 }
 0x7a8   : > { %v2398_v3 = vsel %vm913_vm2, %v2388_v52, %v6544_v23  ;;  %v7189_v52 = vld [vmem:[#allocation38_spill] sm:$0xff] (%p999_p2) }
 0x7a9   : > { %v2397_v53 = vsel %vm913_vm2, %v2387_v13, %v6540_v11 }
 0x7aa   : > { %3789 = vmatmul.mubr.msk.f32.vlgmr.msra.gmra.mrb[0].mxu0 %vm499_vm1, %v2397_v53 }
 0x7ab   : > { %2503 = vmatprep.mubr.f32.mxu0 %v5114_v56 }
 0x7ae   : > { %3790 = vmatmul.mubr.msk.f32.gmra.mrb[2].mxu0 %vm499_vm1, %v2398_v3  ;;  %v7191_v3 = vld [vmem:[#allocation39_spill] sm:$0xff] (%p999_p2) }
 0x7af   :  { %3944 = vmatprep.mubr.msk.f32.mxu0 (%p999_p2), %vm291_vm0, %v7189_v52 }
 0x87d   : > { %v2499_v24 = vpop.f32.mrb[0].mxu0 }
 0x87e   : > { %v2500_v28 = vadd.f32 %v2499_v24, %v2420_v20  ;;  %v2501_v26 = vpop.f32.mrb[1].mxu0  ;;  %v7193_v24 = vld [vmem:[#allocation41_spill] sm:$0xff] (%p999_p2) }
 0x87f   : > { %v2502_v63 = vadd.f32 %v2501_v26, %v2424_v55 }
 0x880   : > { %2512 = vrot.lane.b32.xlu0 %v2500_v28, %s5109_s4 }
 0x881   : > { %v2505_v31 = vpop.f32.mrb[2].mxu0 }
 0x882   : > { %v2506_v58 = vadd.f32 %v2505_v31, %v2420_v20  ;;  %v2507_v33 = vpop.f32.mrb[3].mxu0  ;;  %v2697_v20 = vld [vmem:[%s7190_s5 + $0x10] sm:$0xff] (%p999_p2) }
 0x883   : > { %v2508_v6 = vadd.f32 %v2507_v33, %v2424_v55 }
 0x884   : > { %2514 = vrot.lane.b32.xlu1 %v2506_v58, %s5109_s4  ;;  %2554 = vrot.lane.b32.xlu0 %v2502_v63, %s5107_s18 }
 0x888   : > { %2556 = vrot.lane.b32.xlu1 %v2508_v6, %s5107_s18 }
 0x8f2   : > { %v2513_v61 = vpop.permute.xlu0 %2512 }
 0x8f3   : > { %v2518_v62 = vadd.f32 %v2513_v61, %v2500_v28 }
 0x8f5   : > { %v3791_v57 = vmul.f32 -1.442695, %v2518_v62 }
 0x8f6   : > { %v2515_v18 = vpop.permute.xlu1 %2514  ;;  %v2555_v39 = vpop.permute.xlu0 %2554 }
 0x8f7   : > { %4550 = vpow2.f32 %v3791_v57  ;;  %v2519_v50 = vadd.f32 %v2515_v18, %v2506_v58 }
 0x8f9   : > { %v3792_v4 = vmul.f32 -1.442695, %v2519_v50  ;;  %v2817_v50 = vld [vmem:[%s7194_s12] sm:$0xff] (%p999_p2) }
 0x8fa   : > { %v2557_v43 = vpop.permute.xlu1 %2556 }
 0x8fb   : > { %4552 = vpow2.f32 %v3792_v4 }
 0x901   : > { %v4551_v22 = vpop.eup %4550 }
 0x902   : > { %v2526_v54 = vadd.f32 1.0, %v4551_v22 }
 0x904   : > { %4554 = vrcp.f32 %v2526_v54 }
 0x905   : > { %v4553_v47 = vpop.eup %4552 }
 0x906   : > { %v2527_v51 = vadd.f32 1.0, %v4553_v47 }
 0x908   : > { %4556 = vrcp.f32 %v2527_v51 }
 0x90e   : > { %v4555_v8 = vpop.eup %4554 }
 0x90f   : > { %v2560_v36 = vmul.f32 %v4555_v8, %v2555_v39 }
 0x911   : > { %2564 = vrot.lane.b32.xlu0 %v2560_v36, %s5108_s22 }
 0x912   : > { %v4557_v59 = vpop.eup %4556 }
 0x913   : > { %v2561_v30 = vmul.f32 %v4557_v59, %v2557_v43 }
 0x915   : > { %2566 = vrot.lane.b32.xlu1 %v2561_v30, %s5108_s22  ;;  %2534 = vrot.lane.b32.xlu0 %v2502_v63, %s5109_s4 }
 0x919   : > { %2536 = vrot.lane.b32.xlu1 %v2508_v6, %s5109_s4  ;;  %s6633_s4 = smov (%p999_p2), 0  }
 0x983   : > { %v2565_v25 = vpop.permute.xlu0 %2564 }
 0x984   : > { %v2570_v1 = vadd.f32 %v2565_v25, %v2500_v28 }
 0x986   : > { %4558 = vtanh.f32 %v2570_v1 }
 0x987   : > { %v2567_v12 = vpop.permute.xlu1 %2566  ;;  %v2535_v34 = vpop.permute.xlu0 %2534 }
 0x988   : > { %v2571_v46 = vadd.f32 %v2567_v12, %v2506_v58  ;;  %v2540_v60 = vadd.f32 %v2535_v34, %v2500_v28  ;;  %v2698_v28 = vld [vmem:[%s7190_s5 + $0x18] sm:$0xff] (%p999_p2) }
 0x98a   : > { %4560 = vtanh.f32 %v2571_v46  ;;  %v3793_v35 = vmul.f32 -1.442695, %v2540_v60 }
 0x98b   : > { %v2537_v29 = vpop.permute.xlu1 %2536 }
 0x98c   : > { %v2541_v45 = vadd.f32 %v2537_v29, %v2506_v58  ;;  %4562 = vpow2.f32 %v3793_v35  ;;  %v2818_v29 = vld [vmem:[%s7194_s12 + $0x8] sm:$0xff] (%p999_p2) }
 0x98e   : > { %v3794_v48 = vmul.f32 -1.442695, %v2541_v45  ;;  %v6617_v45 = vld [vmem:[%s7195_s11 + $0x8] sm:$0xff] (%p999_p2) }
 0x98f   :  { %vm2905_vm5 = vcmp.gt.f32.partialorder (%p999_p2), %v6617_v45, 0.0 }
 0x990   : > { %v4559_v16 = vpop.eup %4558  ;;  %4564 = vpow2.f32 %v3794_v48 }
 0x991   : > { %2578 = vrot.lane.b32.xlu0 %v4559_v16, %s5107_s18 }
 0x994   : > { %v4561_v5 = vpop.eup %4560 }
 0x995   : > { %2580 = vrot.lane.b32.xlu1 %v4561_v5, %s5107_s18 }
 0x996   : > { %v4563_v10 = vpop.eup %4562 }
 0x997   : > { %v2548_v15 = vadd.f32 1.0, %v4563_v10 }
 0x999   : > { %4566 = vrcp.f32 %v2548_v15  ;;  %v6623_v15 = vmov (%p999_p2), 0.0  }
 0x99a   : > { %v4565_v21 = vpop.eup %4564 }
 0x99b   : > { %v2549_v14 = vadd.f32 1.0, %v4565_v21  ;;  %v6625_v21 = vmov (%p999_p2), 0.0  }
 0x99d   : > { %4568 = vrcp.f32 %v2549_v14  ;;  %v6627_v14 = vmov (%p999_p2), 0.0  }
 0x9a3   : > { %v4567_v42 = vpop.eup %4566 }
 0x9a4   : > { %v2574_v0 = vsub.f32 1.0, %v4567_v42  ;;  %v2586_v17 = vmul.f32 %v4567_v42, %v6540_v11  ;;  %v2598_v11 = vld [vmem:[#allocation12] sm:$0xff] (%p999_p2)  ;;  %v6629_v42 = vmov (%p999_p2), 0.0  }
 0x9a5   :  { %3942 = vmatprep.subr.mxu0 (%p999_p2), %v2598_v11 }
 0x9a6   :  { %3943 = vmatpush3.msra.mxu0 (%p999_p2), %v2598_v11 }
 0x9a7   : > { %v4569_v32 = vpop.eup %4568  ;;  %3945 = vmatmul.mubr.msk.f32.vlgmr.msra.gmra.mrb[0].mxu0 (%p999_p2), %vm291_vm0, %v7191_v3 }
 0x9a8   : > { %v2575_v2 = vsub.f32 1.0, %v4569_v32  ;;  %v2587_v7 = vmul.f32 %v4569_v32, %v6544_v23  ;;  %v2695_v23 = vld [vmem:[%s7190_s5] sm:$0xff] (%p999_p2)  ;;  %3947 = vmatprep.mubr.msk.f32.mxu0 (%p999_p2), %vm291_vm0, %v7192_v40 }
 0x9a9   :  { %3954 = vmatprep.mubr.msk.f32.mxu1 (%p999_p2), %vm1009_vm3, %v2695_v23 }
 0x9ab   :  { %3948 = vmatmul.mubr.msk.f32.gmra.mrb[2].mxu0 (%p999_p2), %vm291_vm0, %v7193_v24 }
 0x9ac   :  { %3968 = vmatprep.mubr.msk.f32.mxu0 (%p999_p2), %vm913_vm2, %v2817_v50 }
 0xa03   : > { %v2579_v37 = vpop.permute.xlu0 %2578 }
 0xa04   : > { %v2584_v56 = vmul.f32 %v2579_v37, %v2574_v0  ;;  %v6631_v0 = vmov (%p999_p2), 0.0  }
 0xa06   : > { %v2588_v41 = vadd.f32 %v2586_v17, %v2584_v56 }
 0xa07   : > { %v2581_v9 = vpop.permute.xlu1 %2580 }
 0xa08   : > { %v2585_v19 = vmul.f32 %v2581_v9, %v2575_v2  ;;  %2592 = vrot.lane.b32.xlu0 %v2588_v41, %s5107_s18 }
 0xa0a   : > { %v2589_v49 = vadd.f32 %v2587_v7, %v2585_v19 }
 0xa0c   : > { %2594 = vrot.lane.b32.xlu1 %v2589_v49, %s5107_s18 }
 0xa79   :  { %1001 = sbr.rel (!%p999_p2) target bundleno = 800 (0x320), region = 206 }
 0xa7a   : > { %v2593_v38 = vpop.permute.xlu0 %2592   ;;  %v3946_v55 = vpop.f32.mrb[0].mxu0 (%p999_p2) }
 0xa7b   : > { %v7188_v36 = vmov %v2593_v38  ;;  %v2678_v26 = vadd.f32 (%p999_p2), %v3946_v55, %v3795_v27  ;;  %v2672_v31 = vpop.f32.mrb[1].mxu0 (%p999_p2) }
 0xa7c   :  { %v2673_v63 = vadd.f32 (%p999_p2), %v3795_v27, %v2672_v31 }
 0xa7d   :  { %v2692_v58 = vmax.f32 (%p999_p2), %v2678_v26, 0.0 }
 0xa7e   : > { %v2595_v13 = vpop.permute.xlu1 %2594   ;;  %v2691_v6 = vmax.f32 (%p999_p2), %v2673_v63, 0.0  ;;  %v3949_v61 = vpop.f32.mrb[2].mxu0 (%p999_p2) }
 0xa7f   : > { %v7187_v35 = vmov %v2595_v13  ;;  %v4156_v53 = vpack.c.bf16 (%p999_p2), %v2595_v13, %v2593_v38  ;;  %v2688_v57 = vadd.f32 (%p999_p2), %v3949_v61, %v3795_v27  ;;  %v2682_v18 = vpop.f32.mrb[3].mxu0 (%p999_p2) }
 0xa80   :  { %v2683_v4 = vadd.f32 %v3795_v27, %v2682_v18  ;;  %v4570_v22 = vpack.i.bf16 %v2692_v58, %v2691_v6  ;;  %v6612_v35 = vld [vmem:[%s7195_s11] sm:$0xff] }
 0xa81   :  { %4157 = vmatprep.subr.bf16.mxu1 %v4156_v53  ;;  %v2694_v54 = vmax.f32 %v2688_v57, 0.0  ;;  %vm2904_vm4 = vcmp.gt.f32.partialorder %v6612_v35, 0.0 }
 0xa82   :  { %4159 = vmatpush3.bf16.msra.mxu1 %v4156_v53  ;;  %v2693_v51 = vmax.f32 %v2683_v4, 0.0  ;;  %4571 = vrot.lane.b32.xlu0 %v4570_v22, %s5115_s23 }
 0xa84   :  { %v4575_v39 = vpack.i.bf16 %v2694_v54, %v2693_v51 }
 0xa85   :  { %3955 = vmatmul.mubr.msk.f32.vlgmr.msra.gmra.mrb[0].mxu1 %vm1009_vm3, %v2696_v44 }
 0xa86   :  { %3957 = vmatprep.mubr.msk.f32.mxu1 %vm1009_vm3, %v2697_v20  ;;  %4576 = vrot.lane.b32.xlu0 %v4575_v39, %s5115_s23 }
 0xa89   :  { %3958 = vmatmul.mubr.msk.f32.gmra.mrb[2].mxu1 %vm1009_vm3, %v2698_v28 }
 0xaf4   :  { %v4572_v36 = vpop.permute.xlu0 %4571 }
 0xaf5   :  { %v4574_v59 = vunpack.i.h.bf16 %v4572_v36  ;;  %v4573_v43 = vunpack.i.l.bf16 %v4572_v36 }
 0xaf8   :  { %v4577_v12 = vpop.permute.xlu0 %4576 }
 0xaf9   :  { %v4579_v46 = vunpack.i.h.bf16 %v4577_v12  ;;  %v4578_v16 = vunpack.i.l.bf16 %v4577_v12 }
 0xb58   :  { %v3956_v33 = vpop.f32.mrb[0].mxu1 }
 0xb59   :  { %v2778_v62 = vpop.f32.mrb[1].mxu1  ;;  %v2814_v25 = vsel %vm913_vm2, %v3956_v33, %v4574_v59 }
 0xb5a   :  { %v2813_v30 = vsel %vm913_vm2, %v2778_v62, %v4573_v43 }
 0xb5b   :  { %v4160_v1 = vpack.c.bf16 %v2814_v25, %v2813_v30 }
 0xb5c   :  { %v3959_v47 = vpop.f32.mrb[2].mxu1 }
 0xb5d   :  { %v2788_v8 = vpop.f32.mrb[3].mxu1  ;;  %4161 = vmatprep.subr.bf16.mxu0 %v4160_v1  ;;  %v2816_v34 = vsel %vm913_vm2, %v3959_v47, %v4579_v46 }
 0xb5e   :  { %v2815_v5 = vsel %vm913_vm2, %v2788_v8, %v4578_v16  ;;  %4163 = vmatpush3.bf16.msra.mxu0 %v4160_v1 }
 0xb5f   :  { %v4164_v60 = vpack.c.bf16 %v2816_v34, %v2815_v5 }
 0xb61   :  { %4165 = vmatprep.subr.bf16.mxu0 %v4164_v60 }
 0xb62   :  { %4167 = vmatpush3.bf16.msra.mxu0 %v4164_v60 }
 0xb65   :  { %3969 = vmatmul.mubr.msk.f32.vlgmr.msra.gmra.mrb[4].mxu0 %vm913_vm2, %v2818_v29 }
 0xc38   :  { %v3970_v48 = vpop.f32.mrb[4].mxu0 }
 0xc39   :  { %2901 = vst.msk [vmem:[#allocation3 + $0x8] sm:$0xff] %vm499_vm1, %v3970_v48  ;;  %v2891_v10 = vpop.f32.mrb[5].mxu0 }
 0xc3a   :  { %2900 = vst.msk [vmem:[#allocation3] sm:$0xff] %vm499_vm1, %v2891_v10 }
 0xc3b LB: > { %v2921_v32 = vld [vmem:[%s6991_s17 + $0x8] sm:$0xff]  ;;  %v2923_v37 = vld [vmem:[%s6991_s17 + $0x18] sm:$0xff]  ;;  %v2920_v17 = vld [vmem:[%s6991_s17] sm:$0xff]  ;;  %s5116_s3 = smov 64   ;;  %vm3307_vm6 = vcmask 15360   ;;  %vm5119_vm7 = vmmov 0   ;;  %s5054_s4 = sphi %s6633_s4, %s2911_s4   ;;  %v5050_v0 = vphi %v6631_v0, %v6814_v0   ;;  %v5046_v42 = vphi %v6629_v42, %v6810_v42   ;;  %v5042_v14 = vphi %v6627_v14, %v6828_v14   ;;  %v5038_v21 = vphi %v6625_v21, %v6824_v21   ;;  %v5034_v15 = vphi %v6623_v15, %v7200_v15  }
 0xc3c   : > { %v4168_v56 = vpack.c.bf16 %v2923_v37, %v2921_v32  ;;  %v2922_v41 = vld [vmem:[%s6991_s17 + $0x10] sm:$0xff]  ;;  %v2925_v2 = vld [vmem:[%s6991_s17 + $0x28] sm:$0xff]  ;;  %v2927_v9 = vld [vmem:[%s6991_s17 + $0x38] sm:$0xff]  ;;  %2918 = vrot.lane.b32.xlu0 %v5050_v0, %s5116_s3  ;;  %s7198_s28 = sld [smem:[#allocation91_spill]]  ;;  %s2911_s4 = sadd.s32 1, %s5054_s4  }
 0xc3d   : > { %v4170_v7 = vpack.c.bf16 %v2922_v41, %v2920_v17  ;;  %v4172_v19 = vpack.c.bf16 %v2927_v9, %v2925_v2  ;;  %v2924_v49 = vld [vmem:[%s6991_s17 + $0x20] sm:$0xff]  ;;  %v2926_v38 = vld [vmem:[%s6991_s17 + $0x30] sm:$0xff]  ;;  %v2929_v13 = vld [vmem:[%s6991_s17 + $0x48] sm:$0xff]  ;;  %p2908_p3 = scmp.ge.s32.totalorder %s2911_s4, 3  }
 0xc3e   : > { %4169 = vmatprep.subr.bf16.mxu0 %v4168_v56  ;;  %v2931_v11 = vld [vmem:[%s6991_s17 + $0x58] sm:$0xff]  ;;  %v4174_v52 = vpack.c.bf16 %v2926_v38, %v2924_v49  ;;  %v2928_v23 = vld [vmem:[%s6991_s17 + $0x40] sm:$0xff]  ;;  %v2930_v3 = vld [vmem:[%s6991_s17 + $0x50] sm:$0xff]  ;;  %vm5121_vm8 = vmmov (%p2908_p3), 0   ;;  %v7201_v35 = vmov (%p2908_p3), 0.0   ;;  %vm3709_vm9 = vcmask (%p2908_p3), 556032  }
 0xc3f   : > { %4171 = vmatpush1.bf16.msra.mxu0 %v4170_v7  ;;  %v4176_v53 = vpack.c.bf16 %v2931_v11, %v2929_v13  ;;  %v2933_v44 = vld [vmem:[%s6991_s17 + $0x68] sm:$0xff]  ;;  %v2935_v40 = vld [vmem:[%s6991_s17 + $0x78] sm:$0xff]  ;;  %v4178_v20 = vpack.c.bf16 %v2930_v3, %v2928_v23  ;;  %v2932_v28 = vld [vmem:[%s6991_s17 + $0x60] sm:$0xff]  ;;  %vm3711_vm10 = vcmask (%p2908_p3), 588800  }
 0xc40   : > { %4173 = vmatprep.subr.bf16.mxu0 %v4172_v19  ;;  %v4180_v24 = vpack.c.bf16 %v2935_v40, %v2933_v44  ;;  %v2934_v27 = vld [vmem:[%s6991_s17 + $0x70] sm:$0xff]  ;;  %v2937_v55 = vld [vmem:[%s6991_s17 + $0x88] sm:$0xff]  ;;  %v2939_v26 = vld [vmem:[%s6991_s17 + $0x98] sm:$0xff] }
 0xc41   : > { %v4182_v31 = vpack.c.bf16 %v2934_v27, %v2932_v28  ;;  %v4184_v63 = vpack.c.bf16 %v2939_v26, %v2937_v55  ;;  %v2936_v58 = vld [vmem:[%s6991_s17 + $0x80] sm:$0xff]  ;;  %v2938_v33 = vld [vmem:[%s6991_s17 + $0x90] sm:$0xff]  ;;  %v2941_v6 = vld [vmem:[%s6991_s17 + $0xa8] sm:$0xff] }
 0xc42   : > { %v2943_v61 = vld [vmem:[%s6991_s17 + $0xb8] sm:$0xff]  ;;  %v4186_v62 = vpack.c.bf16 %v2938_v33, %v2936_v58  ;;  %v2940_v18 = vld [vmem:[%s6991_s17 + $0xa0] sm:$0xff]  ;;  %v2942_v50 = vld [vmem:[%s6991_s17 + $0xb0] sm:$0xff] }
 0xc43   : > { %4175 = vmatpush1.bf16.msra.mxu0 %v4174_v52  ;;  %v4188_v57 = vpack.c.bf16 %v2943_v61, %v2941_v6  ;;  %v2945_v4 = vld [vmem:[%s6991_s17 + $0xc8] sm:$0xff]  ;;  %v2947_v22 = vld [vmem:[%s6991_s17 + $0xd8] sm:$0xff]  ;;  %v4190_v54 = vpack.c.bf16 %v2942_v50, %v2940_v18  ;;  %v2944_v51 = vld [vmem:[%s6991_s17 + $0xc0] sm:$0xff] }
 0xc44   : > { %4177 = vmatprep.subr.bf16.mxu0 %v4176_v53  ;;  %v4192_v47 = vpack.c.bf16 %v2947_v22, %v2945_v4  ;;  %v2946_v8 = vld [vmem:[%s6991_s17 + $0xd0] sm:$0xff]  ;;  %v2949_v39 = vld [vmem:[%s6991_s17 + $0xe8] sm:$0xff]  ;;  %v2951_v36 = vld [vmem:[%s6991_s17 + $0xf8] sm:$0xff] }
 0xc45   : > { %v4194_v59 = vpack.c.bf16 %v2946_v8, %v2944_v51  ;;  %v4196_v43 = vpack.c.bf16 %v2951_v36, %v2949_v39  ;;  %v2948_v30 = vld [vmem:[%s6991_s17 + $0xe0] sm:$0xff]  ;;  %v2950_v25 = vld [vmem:[%s6991_s17 + $0xf0] sm:$0xff]  ;;  %v2953_v1 = vld [vmem:[%s6991_s17 + $0x108] sm:$0xff] }
 0xc46   : > { %v2955_v12 = vld [vmem:[%s6991_s17 + $0x118] sm:$0xff]  ;;  %v4198_v46 = vpack.c.bf16 %v2950_v25, %v2948_v30  ;;  %v2952_v5 = vld [vmem:[%s6991_s17 + $0x100] sm:$0xff]  ;;  %v2954_v34 = vld [vmem:[%s6991_s17 + $0x110] sm:$0xff] }
 0xc47   : > { %4179 = vmatpush1.bf16.msra.mxu0 %v4178_v20  ;;  %v4200_v16 = vpack.c.bf16 %v2955_v12, %v2953_v1  ;;  %v2957_v60 = vld [vmem:[%s6991_s17 + $0x128] sm:$0xff]  ;;  %v2959_v29 = vld [vmem:[%s6991_s17 + $0x138] sm:$0xff]  ;;  %v4202_v48 = vpack.c.bf16 %v2954_v34, %v2952_v5  ;;  %v2956_v0 = vld [vmem:[%s6991_s17 + $0x120] sm:$0xff] }
 0xc48   : > { %4181 = vmatprep.subr.bf16.mxu0 %v4180_v24  ;;  %v4204_v10 = vpack.c.bf16 %v2959_v29, %v2957_v60  ;;  %v2958_v32 = vld [vmem:[%s6991_s17 + $0x130] sm:$0xff]  ;;  %v2961_v37 = vld [vmem:[%s6991_s17 + $0x148] sm:$0xff]  ;;  %v2963_v17 = vld [vmem:[%s6991_s17 + $0x158] sm:$0xff] }
 0xc49   : > { %v4206_v56 = vpack.c.bf16 %v2958_v32, %v2956_v0  ;;  %v4208_v41 = vpack.c.bf16 %v2963_v17, %v2961_v37  ;;  %v2960_v2 = vld [vmem:[%s6991_s17 + $0x140] sm:$0xff]  ;;  %v2962_v9 = vld [vmem:[%s6991_s17 + $0x150] sm:$0xff]  ;;  %v2965_v7 = vld [vmem:[%s6991_s17 + $0x168] sm:$0xff] }
 0xc4a   : > { %v2967_v19 = vld [vmem:[%s6991_s17 + $0x178] sm:$0xff]  ;;  %v4210_v49 = vpack.c.bf16 %v2962_v9, %v2960_v2  ;;  %v2964_v13 = vld [vmem:[%s6991_s17 + $0x160] sm:$0xff]  ;;  %v2966_v11 = vld [vmem:[%s6991_s17 + $0x170] sm:$0xff] }
 0xc4b   : > { %4183 = vmatpush1.bf16.msra.mxu0 %v4182_v31  ;;  %v4212_v38 = vpack.c.bf16 %v2967_v19, %v2965_v7  ;;  %v4214_v52 = vpack.c.bf16 %v2966_v11, %v2964_v13  ;;  %v2968_v23 = vld [vmem:[#allocation18] sm:$0x3]  ;;  %v7196_v3 = vld [vmem:[#allocation42_spill] sm:$0xff]  ;;  %v7197_v27 = vld [vmem:[#allocation43_spill] sm:$0xff] }
 0xc4c   : > { %4185 = vmatprep.subr.bf16.mxu0 %v4184_v63  ;;  %v2973_v44 = vrot.slane %v2968_v23, %v7196_v3  ;;  %v2977_v55 = vrot.slane %v2968_v23, %v7197_v27  ;;  %v3081_v6 = vld [vmem:[#allocation20 + $0x8] sm:$0xff]  ;;  %v3083_v61 = vld [vmem:[#allocation20 + $0x18] sm:$0xff]  ;;  %v3082_v18 = vld [vmem:[#allocation20 + $0x10] sm:$0xff] }
 0xc4d   : > { %v3085_v50 = vld [vmem:[#allocation20 + $0x28] sm:$0xff]  ;;  %v3087_v4 = vld [vmem:[#allocation20 + $0x38] sm:$0xff]  ;;  %v3086_v51 = vld [vmem:[#allocation20 + $0x30] sm:$0xff] }
 0xc4e   : > { %v3089_v8 = vld [vmem:[#allocation20 + $0x48] sm:$0xff]  ;;  %v3091_v39 = vld [vmem:[#allocation20 + $0x58] sm:$0xff]  ;;  %v3090_v30 = vld [vmem:[#allocation20 + $0x50] sm:$0xff] }
 0xc4f   : > { %4187 = vmatpush1.bf16.msra.mxu0 %v4186_v62  ;;  %v3080_v62 = vld [vmem:[#allocation20] sm:$0xff]  ;;  %v3093_v25 = vld [vmem:[#allocation20 + $0x68] sm:$0xff]  ;;  %v3095_v1 = vld [vmem:[#allocation20 + $0x78] sm:$0xff] }
 0xc50   : > { %4189 = vmatprep.subr.bf16.mxu0 %v4188_v57  ;;  %v4216_v57 = vpack.c.bf16 %v3083_v61, %v3081_v6  ;;  %v4218_v22 = vpack.c.bf16 %v3082_v18, %v3080_v62  ;;  %v3094_v5 = vld [vmem:[#allocation20 + $0x70] sm:$0xff]  ;;  %v3097_v34 = vld [vmem:[#allocation20 + $0x88] sm:$0xff]  ;;  %v3099_v60 = vld [vmem:[#allocation20 + $0x98] sm:$0xff] }
 0xc51   : > { %v3098_v0 = vld [vmem:[#allocation20 + $0x90] sm:$0xff]  ;;  %v3101_v32 = vld [vmem:[#allocation20 + $0xa8] sm:$0xff]  ;;  %v3103_v37 = vld [vmem:[#allocation20 + $0xb8] sm:$0xff] }
 0xc52   : > { %4217 = vmatprep.subr.bf16.mxu1 %v4216_v57  ;;  %v3102_v2 = vld [vmem:[#allocation20 + $0xb0] sm:$0xff]  ;;  %v3105_v9 = vld [vmem:[#allocation20 + $0xc8] sm:$0xff]  ;;  %v3107_v7 = vld [vmem:[#allocation20 + $0xd8] sm:$0xff] }
 0xc53   : > { %4191 = vmatpush1.bf16.msra.mxu0 %v4190_v54  ;;  %v4220_v54 = vpack.c.bf16 %v3087_v4, %v3085_v50  ;;  %4219 = vmatpush1.bf16.msra.mxu1 %v4218_v22  ;;  %v3106_v13 = vld [vmem:[#allocation20 + $0xd0] sm:$0xff]  ;;  %v3109_v11 = vld [vmem:[#allocation20 + $0xe8] sm:$0xff]  ;;  %v3112_v61 = vld [vmem:[#allocation21] sm:$0x3] }
 0xc54   : > { %4193 = vmatprep.subr.bf16.mxu0 %v4192_v47  ;;  %v3084_v47 = vld [vmem:[#allocation20 + $0x20] sm:$0xff]  ;;  %v3117_v62 = vrot.slane %v3112_v61, %v7196_v3  ;;  %v3121_v22 = vrot.slane %v3112_v61, %v7197_v27  ;;  %v3217_v27 = vld [vmem:[#allocation3] sm:$0xff] }
 0xc55   : > { %v4222_v36 = vpack.c.bf16 %v3086_v51, %v3084_v47  ;;  %4221 = vmatprep.subr.bf16.mxu1 %v4220_v54 }
 0xc57   : > { %4195 = vmatpush1.bf16.msra.mxu0 %v4194_v59  ;;  %v4224_v59 = vpack.c.bf16 %v3091_v39, %v3089_v8  ;;  %4223 = vmatpush1.bf16.msra.mxu1 %v4222_v36 }
 0xc58   : > { %4197 = vmatprep.subr.bf16.mxu0 %v4196_v43  ;;  %v3088_v43 = vld [vmem:[#allocation20 + $0x40] sm:$0xff] }
 0xc59   : > { %v4226_v12 = vpack.c.bf16 %v3090_v30, %v3088_v43  ;;  %4225 = vmatprep.subr.bf16.mxu1 %v4224_v59 }
 0xc5b   : > { %4199 = vmatpush1.bf16.msra.mxu0 %v4198_v46  ;;  %v4228_v46 = vpack.c.bf16 %v3095_v1, %v3093_v25  ;;  %4227 = vmatpush1.bf16.msra.mxu1 %v4226_v12 }
 0xc5c   : > { %4201 = vmatprep.subr.bf16.mxu0 %v4200_v16  ;;  %v3092_v16 = vld [vmem:[#allocation20 + $0x60] sm:$0xff] }
 0xc5d   : > { %v4230_v29 = vpack.c.bf16 %v3094_v5, %v3092_v16  ;;  %4229 = vmatprep.subr.bf16.mxu1 %v4228_v46  ;;  %v3218_v46 = vld [vmem:[#allocation3 + $0x8] sm:$0xff] }
 0xc5f   : > { %4203 = vmatpush1.bf16.msra.mxu0 %v4202_v48  ;;  %v4232_v48 = vpack.c.bf16 %v3099_v60, %v3097_v34  ;;  %4231 = vmatpush1.bf16.msra.mxu1 %v4230_v29 }
 0xc60   : > { %4205 = vmatprep.subr.bf16.mxu0 %v4204_v10  ;;  %v3096_v10 = vld [vmem:[#allocation20 + $0x80] sm:$0xff] }
 0xc61   : > { %v4234_v17 = vpack.c.bf16 %v3098_v0, %v3096_v10  ;;  %4233 = vmatprep.subr.bf16.mxu1 %v4232_v48 }
 0xc63   : > { %4207 = vmatpush1.bf16.msra.mxu0 %v4206_v56  ;;  %v4236_v56 = vpack.c.bf16 %v3103_v37, %v3101_v32  ;;  %4235 = vmatpush1.bf16.msra.mxu1 %v4234_v17 }
 0xc64   : > { %4209 = vmatprep.subr.bf16.mxu0 %v4208_v41  ;;  %v3100_v41 = vld [vmem:[#allocation20 + $0xa0] sm:$0xff] }
 0xc65   : > { %v4238_v19 = vpack.c.bf16 %v3102_v2, %v3100_v41  ;;  %4237 = vmatprep.subr.bf16.mxu1 %v4236_v56 }
 0xc67   : > { %4211 = vmatpush1.bf16.msra.mxu0 %v4210_v49  ;;  %v4240_v49 = vpack.c.bf16 %v3107_v7, %v3105_v9  ;;  %4239 = vmatpush1.bf16.msra.mxu1 %v4238_v19 }
 0xc68   : > { %4213 = vmatprep.subr.bf16.mxu0 %v4212_v38  ;;  %v3104_v38 = vld [vmem:[#allocation20 + $0xc0] sm:$0xff] }
 0xc69   : > { %4241 = vmatprep.subr.bf16.mxu1 %v4240_v49 }
 0xc6b   : > { %4215 = vmatpush1.bf16.msra.mxu0 %v4214_v52  ;;  %v3111_v52 = vld [vmem:[#allocation20 + $0xf8] sm:$0xff] }
 0xc6c   : > { %v4244_v23 = vpack.c.bf16 %v3111_v52, %v3109_v11 }
 0xcae   : > { %v2919_v53 = vpop.permute.xlu0 %2918 }
 0xcaf   : > { %3806 = vmatprep.mubr.msk.f32.mxu0 %vm499_vm1, %v2919_v53  ;;  %v4242_v53 = vpack.c.bf16 %v3106_v13, %v3104_v38 }
 0xcb0   : > { %3047 = vmatmul.mubr.f32.vlgmr.msra.gmra.mrb[0].mxu0 %v5034_v15 }
 0xcb1   : > { %4243 = vmatpush1.bf16.msra.mxu1 %v4242_v53  ;;  %4015 = vmatprep.mubr.msk.f32.mxu0 (%p2908_p3), %vm5121_vm8, %v7201_v35 }
 0xcb2   : > { %4245 = vmatprep.subr.bf16.mxu1 %v4244_v23 }
 0xd83   : > { %v3048_v40 = vpop.f32.mrb[0].mxu0 }
 0xd84   : > { %v3049_v20 = vadd.f32 %v3048_v40, %v2973_v44  ;;  %v3050_v24 = vpop.f32.mrb[1].mxu0  ;;  %v3108_v44 = vld [vmem:[#allocation20 + $0xe0] sm:$0xff]  ;;  %v3110_v40 = vld [vmem:[#allocation20 + $0xf0] sm:$0xff] }
 0xd85   : > { %v6800_v26 = vadd.f32 %v3050_v24, %v2977_v55 }
 0xd86   : > { %v3807_v28 = vmul.f32 -1.442695, %v3049_v20  ;;  %v4246_v20 = vpack.c.bf16 %v3110_v40, %v3108_v44 }
 0xd87   : > { %v3808_v24 = vmul.f32 -1.442695, %v6800_v26 }
 0xd88   : > { %4580 = vpow2.f32 %v3807_v28  ;;  %4247 = vmatpush1.bf16.msra.mxu1 %v4246_v20 }
 0xd89   : > { %4582 = vtanh.f32 %v6800_v26 }
 0xd92   : > { %v4581_v31 = vpop.eup %4580 }
 0xd93   : > { %v3056_v63 = vadd.f32 1.0, %v4581_v31  ;;  %v4583_v58 = vpop.eup %4582 }
 0xd95   : > { %4584 = vrcp.f32 %v3056_v63 }
 0xd96   : > { %4586 = vpow2.f32 %v3808_v24 }
 0xd9f   : > { %v6803_v33 = vpop.eup %4584 }
 0xda0   : > { %v3067_v15 = vmul.f32 %v6803_v33, %v4583_v58  ;;  %v4587_v28 = vpop.eup %4586  ;;  %v3066_v31 = vmul.f32 %v5046_v42, %v6803_v33  ;;  %v5117_v58 = vmov 0.0  }
 0xda1   : > { %v3063_v55 = vadd.f32 1.0, %v4587_v28  ;;  %3188 = vmatprep.mubr.f32.mxu1 %v5117_v58 }
 0xda2   : > { %3069 = vrot.lane.b32.xlu0 %v3067_v15, %s5116_s3 }
 0xda3   : > { %4588 = vrcp.f32 %v3063_v55 }
 0xdad   : > { %v4589_v15 = vpop.eup %4588 }
 0xe14   : > { %v3070_v63 = vpop.permute.xlu0 %3069 }
 0xe15   : > { %v6810_v42 = vadd.f32 %v3070_v63, %v3066_v31  }
 0xe17   : > { %4590 = vtanh.f32 %v6810_v42  ;;  %v3428_v42 = vld [vmem:[%s6995_s21 + $0x28] sm:$0xff] (%p2908_p3) }
 0xe21   : > { %v4591_v6 = vpop.eup %4590 }
 0xe22   : > { %v6814_v0 = vmul.f32 %v4591_v6, %v4589_v15  }
 0xe24   : > { %3076 = vrot.lane.b32.xlu1 %v6814_v0, %s5116_s3  ;;  %v3426_v0 = vld [vmem:[%s6995_s21 + $0x18] sm:$0xff] (%p2908_p3) }
 0xe96   : > { %v3077_v26 = vpop.permute.xlu1 %3076 }
 0xe97   : > { %v3079_v33 = vsel %vm499_vm1, %v3077_v26, %v5042_v14  ;;  %v5118_v26 = vmov 0.0|0.0  }
 0xe98   : > { %3189 = vmatmul.mubr.f32.vlgmr.msra.gmra.mrb[0].mxu1 %v3079_v33 }
 0xe99   : > { %3973 = vmatprep.mubr.msk.f32.mxu1 %vm499_vm1, %v3217_v27 }
 0xf6b   : > { %v3190_v57 = vpop.f32.mrb[0].mxu1 }
 0xf6c   : > { %v3191_v18 = vadd.f32 %v3190_v57, %v3117_v62  ;;  %v3192_v50 = vpop.f32.mrb[1].mxu1 }
 0xf6d   : > { %v3193_v54 = vadd.f32 %v3192_v50, %v3121_v22  ;;  %v3341_v50 = vld [vmem:[%s7198_s28] sm:$0x3] }
 0xf6e   : > { %v3809_v4 = vmul.f32 -1.442695, %v3191_v18 }
 0xf6f   : > { %v3810_v14 = vmul.f32 -1.442695, %v3193_v54 }
 0xf70   : > { %4592 = vpow2.f32 %v3809_v4 }
 0xf71   : > { %4594 = vtanh.f32 %v3193_v54 }
 0xf7a   : > { %v4593_v47 = vpop.eup %4592 }
 0xf7b   : > { %v3198_v51 = vadd.f32 1.0, %v4593_v47  ;;  %v4595_v8 = vpop.eup %4594  ;;  %v3423_v47 = vld [vmem:[%s6995_s21] sm:$0xff] (%p2908_p3) }
 0xf7d   : > { %4596 = vrcp.f32 %v3198_v51  ;;  %v3424_v51 = vld [vmem:[%s6995_s21 + $0x8] sm:$0xff] (%p2908_p3) }
 0xf7e   : > { %4598 = vpow2.f32 %v3810_v14 }
 0xf87   : > { %v4597_v39 = vpop.eup %4596 }
 0xf88   : > { %v3209_v36 = vmul.f32 %v4597_v39, %v4595_v8  ;;  %v4599_v3 = vpop.eup %4598  ;;  %v3208_v43 = vmul.f32 %v5038_v21, %v4597_v39  ;;  %v3425_v8 = vld [vmem:[%s6995_s21 + $0x10] sm:$0xff] (%p2908_p3)  ;;  %v5120_v39 = vmov (%p2908_p3), 0.0|0.0  }
 0xf89   : > { %v3205_v59 = vadd.f32 1.0, %v4599_v3  ;;  %4251 = vmatprep.subr.bf16.mxu0 (%p2908_p3), %v5120_v39  ;;  %v4255_v45 = vpack.c.bf16 (%p2908_p3), %v3426_v0, %v3425_v8  ;;  %v3518_v3 = vld [vmem:[#allocation24 + $0x8] sm:$0xff] (%p2908_p3) }
 0xf8a   : > { %3211 = vrot.lane.b32.xlu1 %v3209_v36, %s5116_s3  ;;  %v4252_v36 = vpack.c.bf16 (%p2908_p3), %v3424_v51, %v3423_v47 }
 0xf8b   : > { %4600 = vrcp.f32 %v3205_v59 }
 0xf8c   :  { %4253 = vmatpush3.bf16.msra.mxu0 (%p2908_p3), %v4252_v36 }
 0xf8d   :  { %4254 = vmatprep.subr.bf16.mxu0 (%p2908_p3), %v5120_v39 }
 0xf90   :  { %4256 = vmatpush3.bf16.msra.mxu0 (%p2908_p3), %v4255_v45 }
 0xf91   :  { %4257 = vmatprep.subr.bf16.mxu0 (%p2908_p3), %v5120_v39 }
 0xf95   : > { %v4601_v25 = vpop.eup %4600 }
 0xffc   : > { %v3212_v30 = vpop.permute.xlu1 %3211 }
 0xffd   : > { %v6824_v21 = vadd.f32 %v3212_v30, %v3208_v43   ;;  %v3519_v43 = vld [vmem:[#allocation24 + $0x10] sm:$0xff] (%p2908_p3)  ;;  %v3520_v30 = vld [vmem:[#allocation24 + $0x18] sm:$0xff] (%p2908_p3) }
 0xfff   : > { %4602 = vtanh.f32 %v6824_v21  ;;  %v3427_v21 = vld [vmem:[%s6995_s21 + $0x20] sm:$0xff] (%p2908_p3) }
0x1009   : > { %v4603_v1 = vpop.eup %4602 }
0x100a   : > { %v6828_v14 = vmul.f32 %v4603_v1, %v4601_v25   ;;  %v3429_v25 = vld [vmem:[%s6995_s21 + $0x30] sm:$0xff] (%p2908_p3)  ;;  %v3430_v1 = vld [vmem:[%s6995_s21 + $0x38] sm:$0xff] (%p2908_p3) }
0x100c   : > { %3220 = vrot.lane.b32.xlu0 %v6828_v14, %s5116_s3  ;;  %v3517_v14 = vld [vmem:[#allocation24] sm:$0xff] (%p2908_p3) }
0x100d   :  { %v4276_v59 = vpack.c.bf16 (%p2908_p3), %v3518_v3, %v3517_v14 }
0x107e   : > { %v3221_v12 = vpop.permute.xlu0 %3220 }
0x107f   : > { %3971 = vmatprep.subr.msk.mxu1 %vm499_vm1, %v3221_v12 }
0x1080   : > { %3972 = vmatpush3.xpose.msk.msra.mxu1 %vm499_vm1, %v3221_v12 }
0x1081   : > { %4248 = vmatprep.subr.bf16.mxu1 %v5118_v26  ;;  %v3613_v26 = vld [vmem:[%s6999_s25 + $0x38] sm:$0xff] (%p2908_p3) }
0x1083   : > { %3974 = vmatmul.mubr.msk.f32.vlgmr.msra.gmra.mrb[2].mxu1 %vm499_vm1, %v3218_v46 }
0x1084   : > { %3980 = vmatprep.mubr.msk.f32.mxu1 %vm5119_vm7, %v5117_v58 }
0x1156   : > { %v3975_v16 = vpop.f32.mrb[2].mxu1 }
0x1157   : > { %v3306_v5 = vsel %vm2905_vm5, %v3975_v16, -1e+30  ;;  %v3296_v34 = vpop.f32.mrb[3].mxu1  ;;  %v3522_v16 = vld [vmem:[#allocation24 + $0x28] sm:$0xff] (%p2908_p3) }
0x1158   : > { %v3309_v60 = vsel %vm3307_vm6, %v3306_v5, -inf  ;;  %v3305_v29 = vsel %vm2904_vm4, %v3296_v34, -1e+30  ;;  %v3431_v34 = vld [vmem:[%s6995_s21 + $0x40] sm:$0xff] (%p2908_p3) }
0x1159   : > { %v3308_v48 = vsel %vm3307_vm6, %v3305_v29, -inf }
0x115a   : > { %v3310_v10 = vmax.f32 %v3308_v48, %v3309_v60  ;;  %v3432_v60 = vld [vmem:[%s6995_s21 + $0x48] sm:$0xff] (%p2908_p3) }
0x115b   :  { %v4264_v48 = vpack.c.bf16 (%p2908_p3), %v3432_v60, %v3431_v34 }
0x115c   : > { %v3311_v32 = vrot.slane %v3310_v10, 4 }
0x115e   : > { %v3312_v37 = vmax.f32 %v3310_v10, %v3311_v32  ;;  %v3433_v10 = vld [vmem:[%s6995_s21 + $0x50] sm:$0xff] (%p2908_p3)  ;;  %v3434_v32 = vld [vmem:[%s6995_s21 + $0x58] sm:$0xff] (%p2908_p3) }
0x1160   : > { %v3313_v17 = vrot.slane %v3312_v37, 2 }
0x1162   : > { %v3314_v56 = vmax.f32 %v3312_v37, %v3313_v17  ;;  %v4267_v37 = vpack.c.bf16 (%p2908_p3), %v3434_v32, %v3433_v10  ;;  %v3435_v17 = vld [vmem:[%s6995_s21 + $0x60] sm:$0xff] (%p2908_p3) }
0x1164   : > { %v3315_v41 = vrot.slane %v3314_v56, 1 }
0x1166   : > { %v3316_v2 = vmax.f32 %v3314_v56, %v3315_v41  ;;  %v3436_v56 = vld [vmem:[%s6995_s21 + $0x68] sm:$0xff] (%p2908_p3) }
0x1167   :  { %v4270_v41 = vpack.c.bf16 (%p2908_p3), %v3436_v56, %v3435_v17 }
0x1168   : > { %v3317_v9 = vsub.f32 %v3305_v29, %v3316_v2  ;;  %v3318_v7 = vsub.f32 %v3306_v5, %v3316_v2  ;;  %v4261_v5 = vpack.c.bf16 (%p2908_p3), %v3430_v1, %v3429_v25  ;;  %v3437_v2 = vld [vmem:[%s6995_s21 + $0x70] sm:$0xff] (%p2908_p3) }
0x116a   : > { %v3319_v19 = vmul.f32 1.442695, %v3317_v9  ;;  %v3321_v49 = vmul.f32 1.442695, %v3318_v7  ;;  %v3438_v9 = vld [vmem:[%s6995_s21 + $0x78] sm:$0xff] (%p2908_p3) }
0x116b   :  { %v4273_v7 = vpack.c.bf16 (%p2908_p3), %v3438_v9, %v3437_v2 }
0x116c   : > { %4604 = vpow2.f32 %v3319_v19  ;;  %v3523_v19 = vld [vmem:[#allocation24 + $0x30] sm:$0xff] (%p2908_p3) }
0x116d   : > { %4606 = vpow2.f32 %v3321_v49  ;;  %v3524_v49 = vld [vmem:[#allocation24 + $0x38] sm:$0xff] (%p2908_p3) }
0x1176   : > { %v4605_v38 = vpop.eup %4604 }
0x1177   : > { %v4607_v13 = vpop.eup %4606  ;;  %v3323_v11 = vsel %vm3307_vm6, %v4605_v38, 0.0 }
0x1178   : > { %v3324_v52 = vsel %vm3307_vm6, %v4607_v13, 0.0 }
0x1179   : > { %v3325_v53 = vadd.f32 %v3324_v52, %v3323_v11  ;;  %v3606_v11 = vld [vmem:[%s6999_s25] sm:$0xff] (%p2908_p3)  ;;  %v3607_v52 = vld [vmem:[%s6999_s25 + $0x8] sm:$0xff] (%p2908_p3) }
0x117b   : > { %v3326_v23 = vrot.slane %v3325_v53, 4 }
0x117d   : > { %v3327_v44 = vadd.f32 %v3326_v23, %v3325_v53 }
0x117f   : > { %v3328_v40 = vrot.slane %v3327_v44, 2 }
0x1181   : > { %v3329_v20 = vadd.f32 %v3328_v40, %v3327_v44  ;;  %v4288_v40 = vpack.c.bf16 (%p2908_p3), %v3607_v52, %v3606_v11 }
0x1183   : > { %v3330_v24 = vrot.slane %v3329_v20, 1 }
0x1185   : > { %v3331_v28 = vadd.f32 %v3330_v24, %v3329_v20  ;;  %v3608_v24 = vld [vmem:[%s6999_s25 + $0x10] sm:$0xff] (%p2908_p3) }
0x1187   : > { %4608 = vrcp.f32 %v3331_v28  ;;  %v3609_v28 = vld [vmem:[%s6999_s25 + $0x18] sm:$0xff] (%p2908_p3) }
0x1191   : > { %v4609_v55 = vpop.eup %4608 }
0x1192   : > { %v3334_v31 = vmul.f32 %v4609_v55, %v4607_v13  ;;  %v3333_v63 = vmul.f32 %v4609_v55, %v4605_v38  ;;  %v4285_v38 = vpack.c.bf16 (%p2908_p3), %v3524_v49, %v3523_v19  ;;  %v3815_v13 = vld [vmem:[#allocation23] ss:$0 sm:$0xff] (%p2908_p3)  ;;  %v4291_v55 = vpack.c.bf16 (%p2908_p3), %v3609_v28, %v3608_v24 }
0x1194   : > { %v3338_v15 = vsel %vm3307_vm6, %v3334_v31, 0.0  ;;  %v3335_v6 = vsel %vm3307_vm6, %v3333_v63, 0.0  ;;  %v3610_v31 = vld [vmem:[%s6999_s25 + $0x20] sm:$0xff] (%p2908_p3)  ;;  %v3611_v63 = vld [vmem:[%s6999_s25 + $0x28] sm:$0xff] (%p2908_p3) }
0x1195   : > { %3339 = vadd.xlane.f32.xlu0 %v3338_v15  ;;  %3336 = vadd.xlane.f32.xlu1 %v3335_v6  ;;  %v3612_v6 = vld [vmem:[%s6999_s25 + $0x30] sm:$0xff] (%p2908_p3)  ;;  %s5122_s25 = smov (%p2908_p3), 68  }
0x1222   : > { %v3340_v33 = vpop.xlane.xlu0 %3339  ;;  %v3337_v61 = vpop.xlane.xlu1 %3336 }
0x1223   : > { %v3343_v62 = vmul.f32 %v3340_v33, %v3218_v46  ;;  %v3342_v57 = vmul.f32 %v3337_v61, %v3217_v27  ;;  %v4258_v27 = vpack.c.bf16 (%p2908_p3), %v3428_v42, %v3427_v21  ;;  %v3521_v46 = vld [vmem:[#allocation24 + $0x20] sm:$0xff] (%p2908_p3)  ;;  %v4297_v33 = vpack.c.bf16 (%p2908_p3), %v3613_v26, %v3612_v6 }
0x1224   :  { %v4282_v29 = vpack.c.bf16 (%p2908_p3), %v3522_v16, %v3521_v46  ;;  %v3816_v61 = vld [vmem:[#allocation26] ss:$0 sm:$0xff] (%p2908_p3) }
0x1225   : > { %v4249_v18 = vpack.c.bf16 %v3343_v62, %v3342_v57  ;;  %4259 = vmatpush3.bf16.msra.mxu0 (%p2908_p3), %v4258_v27 }
0x1226   :  { %4260 = vmatprep.subr.bf16.mxu0 (%p2908_p3), %v5120_v39 }
0x1227   : > { %4250 = vmatpush3.bf16.msra.mxu1 %v4249_v18 }
0x1228   :  { %4275 = vmatprep.subr.bf16.mxu1 (%p2908_p3), %v5120_v39 }
0x1229   :  { %4262 = vmatpush3.bf16.msra.mxu0 (%p2908_p3), %v4261_v5 }
0x122a   : > { %3981 = vmatmul.mubr.msk.f32.vlgmr.msra.gmra.mrb[4].mxu1 %vm1009_vm3, %v3341_v50  ;;  %4263 = vmatprep.subr.bf16.mxu0 (%p2908_p3), %v5120_v39 }
0x122b   :  { %4034 = vmatprep.mubr.msk.f32.mxu1 (%p2908_p3), %vm5121_vm8, %v7201_v35  ;;  %4277 = vmatpush3.bf16.msra.mxu1 (%p2908_p3), %v4276_v59 }
0x122c   :  { %4278 = vmatprep.subr.bf16.mxu1 (%p2908_p3), %v5120_v39 }
0x122d   :  { %4265 = vmatpush3.bf16.msra.mxu0 (%p2908_p3), %v4264_v48 }
0x122e   :  { %4266 = vmatprep.subr.bf16.mxu0 (%p2908_p3), %v5120_v39 }
0x1231   :  { %4268 = vmatpush3.bf16.msra.mxu0 (%p2908_p3), %v4267_v37 }
0x1232   :  { %4269 = vmatprep.subr.bf16.mxu0 (%p2908_p3), %v5120_v39 }
0x1235   :  { %4271 = vmatpush3.bf16.msra.mxu0 (%p2908_p3), %v4270_v41 }
0x1236   :  { %4272 = vmatprep.subr.bf16.mxu0 (%p2908_p3), %v5120_v39 }
0x1239   :  { %4274 = vmatpush3.bf16.msra.mxu0 (%p2908_p3), %v4273_v7 }
0x12fd   : > { %v3413_v4 = vpop.f32.mrb[4].mxu1 }
0x12fe   : > { %3419 = vrot.lane.b32.xlu0 %v3413_v4, %s5116_s3  ;;  %v3982_v22 = vpop.f32.mrb[5].mxu1  ;;  %v3818_v4 = vld [vmem:[#allocation27] ss:$0 sm:$0xff] (%p2908_p3) }
0x136d   :  { %2910 = sbr.rel (!%p2908_p3) target bundleno = 3131 (0xc3b), region = 217 }
0x1370   : > { %v3420_v54 = vpop.permute.xlu0 %3419 }
0x1371   : > { %v6852_v15 = vsel %vm499_vm1, %v3221_v12, %v3420_v54   ;;  %v4279_v12 = vpack.c.bf16 (%p2908_p3), %v3520_v30, %v3519_v43 }
0x1372   : > { %v7199_v58 = vmov %v6852_v15 }
0x1373   : > { %v7200_v15 = vmov %v7199_v58  ;;  %4280 = vmatpush3.bf16.msra.mxu1 (%p2908_p3), %v4279_v12  ;;  %4016 = vmatmul.mubr.f32.vlgmr.msra.gmra.mrb[0].mxu0 (%p2908_p3), %v7199_v58 }
0x1374   :  { %4281 = vmatprep.subr.bf16.mxu1 %v5120_v39  ;;  %v4294_v15 = vpack.c.bf16 %v3611_v63, %v3610_v31 }
0x1377   :  { %4283 = vmatpush3.bf16.msra.mxu1 %v4282_v29 }
0x1378   :  { %4284 = vmatprep.subr.bf16.mxu1 %v5120_v39 }
0x137b   :  { %4286 = vmatpush3.bf16.msra.mxu1 %v4285_v38 }
0x137c   :  { %4287 = vmatprep.subr.bf16.mxu1 %v5120_v39 }
0x1446   :  { %v3512_v53 = vpop.f32.mrb[0].mxu0 }
0x1447   :  { %v3513_v23 = vadd.f32 %v3815_v13, %v3512_v53  ;;  %v4017_v44 = vpop.f32.mrb[1].mxu0 }
0x1449   :  { %v3516_v20 = vmax.f32 %v3513_v23, 0.0 }
0x144b   :  { %4035 = vmatmul.mubr.msk.f32.vlgmr.msra.gmra.mrb[0].mxu1 %vm499_vm1, %v3516_v20 }
0x144c   :  { %4289 = vmatpush3.bf16.msra.mxu1 %v4288_v40  ;;  %4053 = vmatprep.mubr.msk.f32.mxu1 %vm5121_vm8, %v7201_v35 }
0x144d   :  { %4290 = vmatprep.subr.bf16.mxu1 %v5120_v39 }
0x1450   :  { %4292 = vmatpush3.bf16.msra.mxu1 %v4291_v55 }
0x1451   :  { %4293 = vmatprep.subr.bf16.mxu1 %v5120_v39 }
0x1454   :  { %4295 = vmatpush3.bf16.msra.mxu1 %v4294_v15 }
0x1455   :  { %4296 = vmatprep.subr.bf16.mxu1 %v5120_v39 }
0x1458   :  { %4298 = vmatpush3.bf16.msra.mxu1 %v4297_v33 }
0x151e   :  { %v3601_v62 = vpop.f32.mrb[0].mxu1 }
0x151f   :  { %v3602_v57 = vadd.f32 %v3816_v61, %v3601_v62  ;;  %v4036_v18 = vpop.f32.mrb[1].mxu1 }
0x1521   :  { %v3605_v50 = vmax.f32 %v3602_v57, 0.0 }
0x1523   :  { %4054 = vmatmul.mubr.msk.f32.vlgmr.msra.gmra.mrb[2].mxu1 %vm499_vm1, %v3605_v50 }
0x15f6   :  { %v3690_v22 = vpop.f32.mrb[2].mxu1 }
0x15f7   :  { %v3691_v54 = vadd.f32 %v3818_v4, %v3690_v22  ;;  %v4055_v58 = vpop.f32.mrb[3].mxu1 }
0x15f9   :  { %v3820_v47 = vmul.f32 -1.442695, %v3691_v54  ;;  %3701 = vrot.lane.b32.xlu0 %v3691_v54, %s5070_s6 }
0x15fb   :  { %4610 = vpow2.f32 %v3820_v47 }
0x1605   :  { %v4611_v51 = vpop.eup %4610 }
0x1606   :  { %v3697_v8 = vadd.f32 1.0, %v4611_v51 }
0x1608   :  { %4612 = vrcp.f32 %v3697_v8 }
0x1612   :  { %v4613_v39 = vpop.eup %4612 }
0x1613   :  { %3705 = vrot.lane.b32.xlu0 %v4613_v39, %s5122_s25 }
0x166b   :  { %v3702_v36 = vpop.permute.xlu0 %3701 }
0x166c   :  { %v3708_v0 = vsel %vm499_vm1, %v3605_v50, %v3702_v36 }
0x1685   :  { %v3706_v35 = vpop.permute.xlu0 %3705 }
0x1686   :  { %v3710_v45 = vsel %vm3709_vm9, %v3708_v0, %v3706_v35 }
0x1687   :  { %v3712_v21 = vsel %vm3711_vm10, %v3710_v45, 0.0 }
0x1688   :  { %3713 = vst [vmem:[%s7001_s27] sm:$0x3] %v3712_v21 }
0x1689   :  { %3718 = vsyncpa [#allocation5], 1 }
0x168a   :  { %3719 = vsyncpa [#allocation7], 1 }
0x168b   :  { %3720 = vsyncpa [#allocation10], 1 }
0x168c   :  { %3721 = vsyncpa [#allocation13], 1 }
0x168d   :  { %3722 = vsyncpa [#allocation16], 1 }
0x168e   :  { %3723 = vsyncpa [#allocation19], 1 }
0x168f   :  { %3724 = vsyncpa [#allocation22], 1 }
0x1690   :  { %3725 = vsyncpa [#allocation25], 1 }
0x1691   :  { %3726 = vsyncpa [#allocation28], 1 }

</bundles_post_ra>
